<compile_context>
chip_gen: v6e
topology: v6e:2x2x1
jax: 0.10.0
libtpu: 0.0.40
codegen_flags: <defaults>
</compile_context>

<pallas_src>
import math
from functools import partial

import jax
import jax.numpy as jnp
from jax.experimental import pallas as pl
from jax.experimental.pallas import tpu as pltpu


# Lane-padded dimensions (multiples of 128 -> unmasked vst, whole-vreg gates).
O_PAD = 128          # per-conv-branch output channels (100 -> 128)
H_PAD = 128          # LSTM hidden size (mem_dim 32 -> 128)
C_PAD = 128          # classifier logits (num_classes 3 -> 128)
K_WIN = 5            # fused conv window (k=3 taps live at positions 1..3)
NEG_INF = -1e30


# ----------------------------------------------------------------------------
# Fused Pallas kernel: conv -> input projection -> LSTM -> Linear+LogSoftmax
# ----------------------------------------------------------------------------
def _lstm_sentiment_kernel(emb_ref, wt_ref, bc_ref, wih_ref, bl_ref,
                           whh_ref, wl1_ref, bl1_ref, out_ref, xg_sc):
    T = xg_sc.shape[0]
    Hp = whh_ref.shape[0]          # padded hidden (128)
    k_win = wt_ref.shape[0]        # conv window (5)

    # --- fused 2-branch conv as k shifted matmuls (no im2col in HBM) --------
    acc = jnp.dot(emb_ref[pl.ds(0, T), :], wt_ref[0],
                  preferred_element_type=jnp.float32)
    for j in range(1, k_win):      # static 5-tap unroll
        acc += jnp.dot(emb_ref[pl.ds(j, T), :], wt_ref[j],
                       preferred_element_type=jnp.float32)
    conv = jnp.maximum(acc + bc_ref[...], 0.0)               # (T, 2*O_PAD)

    # --- input projection for ALL timesteps (hoisted out of recurrence) -----
    xg_sc[...] = jnp.dot(conv, wih_ref[...],
                         preferred_element_type=jnp.float32) + bl_ref[...]

    # --- serial LSTM recurrence: only h @ W_hh (K = H_PAD) per step ----------
    def step(t, carry):
        h, c = carry
        gates = xg_sc[pl.ds(t, 1), :] + jnp.dot(
            h, whh_ref[...], preferred_element_type=jnp.float32)   # (1, 4*Hp)
        i = jax.nn.sigmoid(gates[:, 0 * Hp:1 * Hp])   # 128-lane aligned slices
        f = jax.nn.sigmoid(gates[:, 1 * Hp:2 * Hp])
        g = jnp.tanh(gates[:, 2 * Hp:3 * Hp])
        o = jax.nn.sigmoid(gates[:, 3 * Hp:4 * Hp])
        c = f * c + i * g
        h = o * jnp.tanh(c)
        return (h, c)

    zero = jnp.zeros((1, Hp), jnp.float32)
    h, _ = jax.lax.fori_loop(0, T, step, (zero, zero), unroll=True)

    # --- classifier head: Linear + LogSoftmax (padded logits held at -inf) ---
    z = jnp.dot(h, wl1_ref[...], preferred_element_type=jnp.float32) + bl1_ref[...]
    m = jnp.max(z, axis=-1, keepdims=True)
    s = jnp.sum(jnp.exp(z - m), axis=-1, keepdims=True)
    out_ref[...] = (z - m) - jnp.log(s)


# ----------------------------------------------------------------------------
# Parameter packing (done once): pad/transpose everything for the kernel
# ----------------------------------------------------------------------------
def pack_params(params):
    w5, b5 = params["w_conv5"], params["b_conv5"]     # (100, C, 5, D), (100,)
    w3, b3 = params["w_conv3"], params["b_conv3"]     # (100, C, 3, D), (100,)
    n5, C, _, D = w5.shape
    n3 = w3.shape[0]
    CD = C * D
    H = params["w_hh"].shape[1]
    ncls = params["w_l1"].shape[0]

    # Fused conv taps: (K_WIN, C*D, 2*O_PAD); cols [0,n5) = conv5, [O_PAD,..) = conv3.
    w_taps = jnp.zeros((K_WIN, CD, 2 * O_PAD), jnp.float32)
    w_taps = w_taps.at[:, :, :n5].set(
        jnp.transpose(w5, (2, 1, 3, 0)).reshape(K_WIN, CD, n5))
    w_taps = w_taps.at[1:4, :, O_PAD:O_PAD + n3].set(        # k=3 taps -> positions 1..3
        jnp.transpose(w3, (2, 1, 3, 0)).reshape(3, CD, n3))

    b_conv = jnp.zeros((1, 2 * O_PAD), jnp.float32)
    b_conv = b_conv.at[0, :n5].set(b5)
    b_conv = b_conv.at[0, O_PAD:O_PAD + n3].set(b3)

    # Input projection + recurrent weights, each gate on a 128-lane boundary.
    w_ih_t = params["w_ih"].T                                 # (200, 4H), i,f,g,o
    w_hh_t = params["w_hh"].T                                 # (H, 4H)
    b_lstm = params["b_ih"] + params["b_hh"]                  # (4H,)
    w_ih = jnp.zeros((2 * O_PAD, 4 * H_PAD), jnp.float32)
    w_hh = jnp.zeros((H_PAD, 4 * H_PAD), jnp.float32)
    b_l = jnp.zeros((1, 4 * H_PAD), jnp.float32)
    for g in range(4):
        blk = w_ih_t[:, g * H:(g + 1) * H]                    # (200, H)
        w_ih = w_ih.at[:n5, g * H_PAD:g * H_PAD + H].set(blk[:n5])
        w_ih = w_ih.at[O_PAD:O_PAD + n3, g * H_PAD:g * H_PAD + H].set(blk[n5:n5 + n3])
        w_hh = w_hh.at[:H, g * H_PAD:g * H_PAD + H].set(w_hh_t[:, g * H:(g + 1) * H])
        b_l = b_l.at[0, g * H_PAD:g * H_PAD + H].set(b_lstm[g * H:(g + 1) * H])

    # Classifier head: padded logits get bias -inf so LogSoftmax stays exact.
    w_l1 = jnp.zeros((H_PAD, C_PAD), jnp.float32)
    w_l1 = w_l1.at[:H, :ncls].set(params["w_l1"].T)
    b_l1 = jnp.full((1, C_PAD), NEG_INF, jnp.float32)
    b_l1 = b_l1.at[0, :ncls].set(params["b_l1"])

    return {"w_taps": w_taps, "b_conv": b_conv, "w_ih": w_ih, "b_lstm": b_l,
            "w_hh": w_hh, "w_l1": w_l1, "b_l1": b_l1}


# ----------------------------------------------------------------------------
# Forward pass (jitted)
# ----------------------------------------------------------------------------
@partial(jax.jit, static_argnames=("num_classes", "training"))
def lstm_sentiment_forward(embedding, packed, num_classes, training=False):
    """LSTMSentiment forward (eval path: dropout identity, loss=None)."""
    B, C, T, D = embedding.shape
    assert B == 1, "torch.squeeze(hn[0], 1) semantics require batch == 1"
    pad = K_WIN // 2
    emb = jnp.transpose(embedding[0], (1, 0, 2)).reshape(T, C * D)   # (T, C*D)
    emb = jnp.pad(emb, ((pad, pad), (0, 0)))                         # (T+4, C*D)

    vmem = pl.BlockSpec(memory_space=pltpu.MemorySpace.VMEM)
    out_pad = pl.pallas_call(
        _lstm_sentiment_kernel,
        out_shape=jax.ShapeDtypeStruct((1, C_PAD), jnp.float32),
        in_specs=[vmem] * 8,
        out_specs=vmem,
        scratch_shapes=[pltpu.VMEM((T, 4 * H_PAD), jnp.float32)],    # precomputed x-gates
    )(emb, packed["w_taps"], packed["b_conv"], packed["w_ih"],
      packed["b_lstm"], packed["w_hh"], packed["w_l1"], packed["b_l1"])

    out = out_pad[:, :num_classes]
    loss = None   # TODO(synk): criterion/loss only exists for training=True
    return out, loss


# ----------------------------------------------------------------------------
# Init (PyTorch-style uniform +-1/sqrt(fan_in)) and pure-JAX reference
# ----------------------------------------------------------------------------
def init_params(key, in_channel, emb_dim, mem_dim, num_classes):
    ks = jax.random.split(key, 10)

    def u(k, shape, bound):
        return jax.random.uniform(k, shape, jnp.float32, -bound, bound)

    b5 = 1.0 / math.sqrt(in_channel * 5 * emb_dim)
    b3 = 1.0 / math.sqrt(in_channel * 3 * emb_dim)
    bh = 1.0 / math.sqrt(mem_dim)
    in_dim = 200
    return {
        "w_conv5": u(ks[0], (100, in_channel, 5, emb_dim), b5),
        "b_conv5": u(ks[1], (100,), b5),
        "w_conv3": u(ks[2], (100, in_channel, 3, emb_dim), b3),
        "b_conv3": u(ks[3], (100,), b3),
        "w_ih": u(ks[4], (4 * mem_dim, in_dim), bh),   # gate order i,f,g,o (PyTorch)
        "w_hh": u(ks[5], (4 * mem_dim, mem_dim), bh),
        "b_ih": u(ks[6], (4 * mem_dim,), bh),
        "b_hh": u(ks[7], (4 * mem_dim,), bh),
        "w_l1": u(ks[8], (num_classes, mem_dim), bh),
        "b_l1": u(ks[9], (num_classes,), bh),
    }


def _reference_forward(embedding, params):
    """Plain-JAX reference mirroring the PyTorch module (for a sanity check)."""
    B, C, T, D = embedding.shape

    def conv(w, b, k):
        pad = k // 2
        xp = jnp.pad(embedding, ((0, 0), (0, 0), (pad, pad), (0, 0)))
        windows = jnp.stack([xp[:, :, i:i + T, :] for i in range(k)], axis=3)
        patches = jnp.transpose(windows, (0, 2, 1, 3, 4)).reshape(B * T, -1)
        out = jnp.maximum(patches @ w.reshape(w.shape[0], -1).T + b, 0.0)
        return out.reshape(B, T, -1)

    c5 = conv(params["w_conv5"], params["b_conv5"], 5)
    c3 = conv(params["w_conv3"], params["b_conv3"], 3)
    x = jnp.concatenate([c5, c3], -1)[0]                      # (T, 200)

    H = params["w_hh"].shape[1]
    wih, whh = params["w_ih"], params["w_hh"]
    bias = params["b_ih"] + params["b_hh"]

    def step(carry, xt):
        h, c = carry
        gates = xt @ wih.T + h @ whh.T + bias
        i, f, g, o = jnp.split(gates, 4)
        i, f, o = jax.nn.sigmoid(i), jax.nn.sigmoid(f), jax.nn.sigmoid(o)
        g = jnp.tanh(g)
        c = f * c + i * g
        h = o * jnp.tanh(c)
        return (h, c), None

    (h, _), _ = jax.lax.scan(step, (jnp.zeros(H), jnp.zeros(H)), x)
    logits = h @ params["w_l1"].T + params["b_l1"]
    return jax.nn.log_softmax(logits)[None, :]


if __name__ == "__main__":
    # batch=1 as implied by torch.squeeze(hn[0], 1) in the unidirectional path.
    B, C_in, T, D = 1, 1, 16, 32        # batch, in_channel, seq_len, emb_dim
    mem_dim, num_classes = 32, 3

    key = jax.random.PRNGKey(0)
    k_emb, k_par = jax.random.split(key)
    embedding = jax.random.normal(k_emb, (B, C_in, T, D), jnp.float32)
    params = init_params(k_par, C_in, D, mem_dim, num_classes)
    packed = pack_params(params)

    out, loss = lstm_sentiment_forward(embedding, packed, num_classes, training=False)
    out = jax.block_until_ready(out)

    assert out.shape == (1, num_classes)
    # log-softmax sanity: exp(out) rows sum to ~1
    assert abs(float(jnp.sum(jnp.exp(out))) - 1.0) < 1e-3
    # numerical check vs plain-JAX reference of the original module
    ref = _reference_forward(embedding, params)
    max_diff = float(jnp.max(jnp.abs(out - ref)))
    assert max_diff < 5e-2, f"mismatch vs reference: {max_diff}"

    print("KERNEL_OK")
</pallas_src>

<mosaic_0001>
module attributes {stable_mosaic.version = 11 : i64} {
  func.func @_lstm_sentiment_kernel(%arg0: memref<20x32xf32, #tpu.memory_space<vmem>>, %arg1: memref<5x32x256xf32, #tpu.memory_space<vmem>>, %arg2: memref<1x256xf32, #tpu.memory_space<vmem>>, %arg3: memref<256x512xf32, #tpu.memory_space<vmem>>, %arg4: memref<1x512xf32, #tpu.memory_space<vmem>>, %arg5: memref<128x512xf32, #tpu.memory_space<vmem>>, %arg6: memref<128x128xf32, #tpu.memory_space<vmem>>, %arg7: memref<1x128xf32, #tpu.memory_space<vmem>>, %arg8: memref<1x128xf32, #tpu.memory_space<vmem>>, %arg9: memref<16x512xf32, #tpu.memory_space<vmem>>) attributes {dimension_semantics = [], scalar_prefetch = 0 : i64, scratch_operands = 1 : i64, tpu.core_type = #tpu.core_type<tc>} {
    %c0 = arith.constant 0 : index
    %c0_0 = arith.constant 0 : index
    %0 = vector.load %arg0[%c0, %c0_0] : memref<20x32xf32, #tpu.memory_space<vmem>>, vector<16x32xf32>
    %c0_1 = arith.constant 0 : index
    %c0_2 = arith.constant 0 : index
    %c0_3 = arith.constant 0 : index
    %1 = vector.load %arg1[%c0_1, %c0_2, %c0_3] : memref<5x32x256xf32, #tpu.memory_space<vmem>>, vector<1x32x256xf32>
    %2 = vector.shape_cast %1 : vector<1x32x256xf32> to vector<32x256xf32>
    %cst = arith.constant dense<0.000000e+00> : vector<16x256xf32>
    %3 = tpu.matmul %0, %2, %cst {dimension_numbers = #tpu.dot_dimension_numbers<[1], [0], [0], [1], [0, 0, 1, 1], [], []>} : vector<16x32xf32>, vector<32x256xf32>, vector<16x256xf32> -> vector<16x256xf32>
    %c1 = arith.constant 1 : index
    %c0_4 = arith.constant 0 : index
    %4 = vector.load %arg0[%c1, %c0_4] : memref<20x32xf32, #tpu.memory_space<vmem>>, vector<16x32xf32>
    %c1_5 = arith.constant 1 : index
    %c0_6 = arith.constant 0 : index
    %c0_7 = arith.constant 0 : index
    %5 = vector.load %arg1[%c1_5, %c0_6, %c0_7] : memref<5x32x256xf32, #tpu.memory_space<vmem>>, vector<1x32x256xf32>
    %6 = vector.shape_cast %5 : vector<1x32x256xf32> to vector<32x256xf32>
    %cst_8 = arith.constant dense<0.000000e+00> : vector<16x256xf32>
    %7 = tpu.matmul %4, %6, %cst_8 {dimension_numbers = #tpu.dot_dimension_numbers<[1], [0], [0], [1], [0, 0, 1, 1], [], []>} : vector<16x32xf32>, vector<32x256xf32>, vector<16x256xf32> -> vector<16x256xf32>
    %8 = arith.addf %3, %7 : vector<16x256xf32>
    %c2 = arith.constant 2 : index
    %c0_9 = arith.constant 0 : index
    %9 = vector.load %arg0[%c2, %c0_9] : memref<20x32xf32, #tpu.memory_space<vmem>>, vector<16x32xf32>
    %c2_10 = arith.constant 2 : index
    %c0_11 = arith.constant 0 : index
    %c0_12 = arith.constant 0 : index
    %10 = vector.load %arg1[%c2_10, %c0_11, %c0_12] : memref<5x32x256xf32, #tpu.memory_space<vmem>>, vector<1x32x256xf32>
    %11 = vector.shape_cast %10 : vector<1x32x256xf32> to vector<32x256xf32>
    %cst_13 = arith.constant dense<0.000000e+00> : vector<16x256xf32>
    %12 = tpu.matmul %9, %11, %cst_13 {dimension_numbers = #tpu.dot_dimension_numbers<[1], [0], [0], [1], [0, 0, 1, 1], [], []>} : vector<16x32xf32>, vector<32x256xf32>, vector<16x256xf32> -> vector<16x256xf32>
    %13 = arith.addf %8, %12 : vector<16x256xf32>
    %c3 = arith.constant 3 : index
    %c0_14 = arith.constant 0 : index
    %14 = vector.load %arg0[%c3, %c0_14] : memref<20x32xf32, #tpu.memory_space<vmem>>, vector<16x32xf32>
    %c3_15 = arith.constant 3 : index
    %c0_16 = arith.constant 0 : index
    %c0_17 = arith.constant 0 : index
    %15 = vector.load %arg1[%c3_15, %c0_16, %c0_17] : memref<5x32x256xf32, #tpu.memory_space<vmem>>, vector<1x32x256xf32>
    %16 = vector.shape_cast %15 : vector<1x32x256xf32> to vector<32x256xf32>
    %cst_18 = arith.constant dense<0.000000e+00> : vector<16x256xf32>
    %17 = tpu.matmul %14, %16, %cst_18 {dimension_numbers = #tpu.dot_dimension_numbers<[1], [0], [0], [1], [0, 0, 1, 1], [], []>} : vector<16x32xf32>, vector<32x256xf32>, vector<16x256xf32> -> vector<16x256xf32>
    %18 = arith.addf %13, %17 : vector<16x256xf32>
    %c4 = arith.constant 4 : index
    %c0_19 = arith.constant 0 : index
    %19 = vector.load %arg0[%c4, %c0_19] : memref<20x32xf32, #tpu.memory_space<vmem>>, vector<16x32xf32>
    %c4_20 = arith.constant 4 : index
    %c0_21 = arith.constant 0 : index
    %c0_22 = arith.constant 0 : index
    %20 = vector.load %arg1[%c4_20, %c0_21, %c0_22] : memref<5x32x256xf32, #tpu.memory_space<vmem>>, vector<1x32x256xf32>
    %21 = vector.shape_cast %20 : vector<1x32x256xf32> to vector<32x256xf32>
    %cst_23 = arith.constant dense<0.000000e+00> : vector<16x256xf32>
    %22 = tpu.matmul %19, %21, %cst_23 {dimension_numbers = #tpu.dot_dimension_numbers<[1], [0], [0], [1], [0, 0, 1, 1], [], []>} : vector<16x32xf32>, vector<32x256xf32>, vector<16x256xf32> -> vector<16x256xf32>
    %23 = arith.addf %18, %22 : vector<16x256xf32>
    %c0_24 = arith.constant 0 : index
    %c0_25 = arith.constant 0 : index
    %24 = vector.load %arg2[%c0_24, %c0_25] : memref<1x256xf32, #tpu.memory_space<vmem>>, vector<1x256xf32>
    %25 = vector.broadcast %24 : vector<1x256xf32> to vector<16x256xf32>
    %26 = arith.addf %23, %25 : vector<16x256xf32>
    %cst_26 = arith.constant 0.000000e+00 : f32
    %27 = vector.broadcast %cst_26 : f32 to vector<16x256xf32>
    %28 = arith.maximumf %26, %27 : vector<16x256xf32>
    %c0_27 = arith.constant 0 : index
    %c0_28 = arith.constant 0 : index
    %29 = vector.load %arg3[%c0_27, %c0_28] : memref<256x512xf32, #tpu.memory_space<vmem>>, vector<256x512xf32>
    %cst_29 = arith.constant dense<0.000000e+00> : vector<16x512xf32>
    %30 = tpu.matmul %28, %29, %cst_29 {dimension_numbers = #tpu.dot_dimension_numbers<[1], [0], [0], [1], [0, 0, 1, 1], [], []>} : vector<16x256xf32>, vector<256x512xf32>, vector<16x512xf32> -> vector<16x512xf32>
    %c0_30 = arith.constant 0 : index
    %c0_31 = arith.constant 0 : index
    %31 = vector.load %arg4[%c0_30, %c0_31] : memref<1x512xf32, #tpu.memory_space<vmem>>, vector<1x512xf32>
    %32 = vector.broadcast %31 : vector<1x512xf32> to vector<16x512xf32>
    %33 = arith.addf %30, %32 : vector<16x512xf32>
    %c0_32 = arith.constant 0 : index
    %c0_33 = arith.constant 0 : index
    %34 = vector.load %arg9[%c0_32, %c0_33] : memref<16x512xf32, #tpu.memory_space<vmem>>, vector<16x512xf32>
    tpu.vector_store %arg9[%c0_32, %c0_33], %33 {strides = array<i32>} : memref<16x512xf32, #tpu.memory_space<vmem>>, vector<16x512xf32>,
    %cst_34 = arith.constant 0.000000e+00 : f32
    %35 = vector.broadcast %cst_34 : f32 to vector<1x128xf32>
    %c0_i32 = arith.constant 0 : i32
    %36 = arith.index_cast %c0_i32 : i32 to index
    %c0_35 = arith.constant 0 : index
    %37 = vector.load %arg9[%36, %c0_35] : memref<16x512xf32, #tpu.memory_space<vmem>>, vector<1x512xf32>
    %c0_36 = arith.constant 0 : index
    %c0_37 = arith.constant 0 : index
    %38 = vector.load %arg5[%c0_36, %c0_37] : memref<128x512xf32, #tpu.memory_space<vmem>>, vector<128x512xf32>
    %cst_38 = arith.constant dense<0.000000e+00> : vector<1x512xf32>
    %39 = tpu.matmul %35, %38, %cst_38 {dimension_numbers = #tpu.dot_dimension_numbers<[1], [0], [0], [1], [0, 0, 1, 1], [], []>} : vector<1x128xf32>, vector<128x512xf32>, vector<1x512xf32> -> vector<1x512xf32>
    %40 = arith.addf %37, %39 : vector<1x512xf32>
    %41 = vector.extract_strided_slice %40 {offsets = [0, 0], sizes = [1, 128], strides = [1, 1]} : vector<1x512xf32> to vector<1x128xf32>
    %42 = arith.negf %41 : vector<1x128xf32>
    %43 = math.exp %42 : vector<1x128xf32>
    %cst_39 = arith.constant 1.000000e+00 : f32
    %44 = vector.broadcast %cst_39 : f32 to vector<1x128xf32>
    %45 = arith.addf %44, %43 : vector<1x128xf32>
    %46 = arith.divf %44, %45 : vector<1x128xf32>
    %47 = vector.extract_strided_slice %40 {offsets = [0, 128], sizes = [1, 128], strides = [1, 1]} : vector<1x512xf32> to vector<1x128xf32>
    %48 = arith.negf %47 : vector<1x128xf32>
    %49 = math.exp %48 : vector<1x128xf32>
    %cst_40 = arith.constant 1.000000e+00 : f32
    %50 = vector.broadcast %cst_40 : f32 to vector<1x128xf32>
    %51 = arith.addf %50, %49 : vector<1x128xf32>
    %52 = arith.divf %50, %51 : vector<1x128xf32>
    %53 = vector.extract_strided_slice %40 {offsets = [0, 256], sizes = [1, 128], strides = [1, 1]} : vector<1x512xf32> to vector<1x128xf32>
    %54 = math.tanh %53 : vector<1x128xf32>
    %55 = vector.extract_strided_slice %40 {offsets = [0, 384], sizes = [1, 128], strides = [1, 1]} : vector<1x512xf32> to vector<1x128xf32>
    %56 = arith.negf %55 : vector<1x128xf32>
    %57 = math.exp %56 : vector<1x128xf32>
    %cst_41 = arith.constant 1.000000e+00 : f32
    %58 = vector.broadcast %cst_41 : f32 to vector<1x128xf32>
    %59 = arith.addf %58, %57 : vector<1x128xf32>
    %60 = arith.divf %58, %59 : vector<1x128xf32>
    %61 = arith.mulf %52, %35 : vector<1x128xf32>
    %62 = arith.mulf %46, %54 : vector<1x128xf32>
    %63 = arith.addf %61, %62 : vector<1x128xf32>
    %64 = math.tanh %63 : vector<1x128xf32>
    %65 = arith.mulf %60, %64 : vector<1x128xf32>
    %c1_i32 = arith.constant 1 : i32
    %66 = arith.index_cast %c1_i32 : i32 to index
    %c0_42 = arith.constant 0 : index
    %67 = vector.load %arg9[%66, %c0_42] : memref<16x512xf32, #tpu.memory_space<vmem>>, vector<1x512xf32>
    %c0_43 = arith.constant 0 : index
    %c0_44 = arith.constant 0 : index
    %68 = vector.load %arg5[%c0_43, %c0_44] : memref<128x512xf32, #tpu.memory_space<vmem>>, vector<128x512xf32>
    %cst_45 = arith.constant dense<0.000000e+00> : vector<1x512xf32>
    %69 = tpu.matmul %65, %68, %cst_45 {dimension_numbers = #tpu.dot_dimension_numbers<[1], [0], [0], [1], [0, 0, 1, 1], [], []>} : vector<1x128xf32>, vector<128x512xf32>, vector<1x512xf32> -> vector<1x512xf32>
    %70 = arith.addf %67, %69 : vector<1x512xf32>
    %71 = vector.extract_strided_slice %70 {offsets = [0, 0], sizes = [1, 128], strides = [1, 1]} : vector<1x512xf32> to vector<1x128xf32>
    %72 = arith.negf %71 : vector<1x128xf32>
    %73 = math.exp %72 : vector<1x128xf32>
    %cst_46 = arith.constant 1.000000e+00 : f32
    %74 = vector.broadcast %cst_46 : f32 to vector<1x128xf32>
    %75 = arith.addf %74, %73 : vector<1x128xf32>
    %76 = arith.divf %74, %75 : vector<1x128xf32>
    %77 = vector.extract_strided_slice %70 {offsets = [0, 128], sizes = [1, 128], strides = [1, 1]} : vector<1x512xf32> to vector<1x128xf32>
    %78 = arith.negf %77 : vector<1x128xf32>
    %79 = math.exp %78 : vector<1x128xf32>
    %cst_47 = arith.constant 1.000000e+00 : f32
    %80 = vector.broadcast %cst_47 : f32 to vector<1x128xf32>
    %81 = arith.addf %80, %79 : vector<1x128xf32>
    %82 = arith.divf %80, %81 : vector<1x128xf32>
    %83 = vector.extract_strided_slice %70 {offsets = [0, 256], sizes = [1, 128], strides = [1, 1]} : vector<1x512xf32> to vector<1x128xf32>
    %84 = math.tanh %83 : vector<1x128xf32>
    %85 = vector.extract_strided_slice %70 {offsets = [0, 384], sizes = [1, 128], strides = [1, 1]} : vector<1x512xf32> to vector<1x128xf32>
    %86 = arith.negf %85 : vector<1x128xf32>
    %87 = math.exp %86 : vector<1x128xf32>
    %cst_48 = arith.constant 1.000000e+00 : f32
    %88 = vector.broadcast %cst_48 : f32 to vector<1x128xf32>
    %89 = arith.addf %88, %87 : vector<1x128xf32>
    %90 = arith.divf %88, %89 : vector<1x128xf32>
    %91 = arith.mulf %82, %63 : vector<1x128xf32>
    %92 = arith.mulf %76, %84 : vector<1x128xf32>
    %93 = arith.addf %91, %92 : vector<1x128xf32>
    %94 = math.tanh %93 : vector<1x128xf32>
    %95 = arith.mulf %90, %94 : vector<1x128xf32>
    %c2_i32 = arith.constant 2 : i32
    %96 = arith.index_cast %c2_i32 : i32 to index
    %c0_49 = arith.constant 0 : index
    %97 = vector.load %arg9[%96, %c0_49] : memref<16x512xf32, #tpu.memory_space<vmem>>, vector<1x512xf32>
    %c0_50 = arith.constant 0 : index
    %c0_51 = arith.constant 0 : index
    %98 = vector.load %arg5[%c0_50, %c0_51] : memref<128x512xf32, #tpu.memory_space<vmem>>, vector<128x512xf32>
    %cst_52 = arith.constant dense<0.000000e+00> : vector<1x512xf32>
    %99 = tpu.matmul %95, %98, %cst_52 {dimension_numbers = #tpu.dot_dimension_numbers<[1], [0], [0], [1], [0, 0, 1, 1], [], []>} : vector<1x128xf32>, vector<128x512xf32>, vector<1x512xf32> -> vector<1x512xf32>
    %100 = arith.addf %97, %99 : vector<1x512xf32>
    %101 = vector.extract_strided_slice %100 {offsets = [0, 0], sizes = [1, 128], strides = [1, 1]} : vector<1x512xf32> to vector<1x128xf32>
    %102 = arith.negf %101 : vector<1x128xf32>
    %103 = math.exp %102 : vector<1x128xf32>
    %cst_53 = arith.constant 1.000000e+00 : f32
    %104 = vector.broadcast %cst_53 : f32 to vector<1x128xf32>
    %105 = arith.addf %104, %103 : vector<1x128xf32>
    %106 = arith.divf %104, %105 : vector<1x128xf32>
    %107 = vector.extract_strided_slice %100 {offsets = [0, 128], sizes = [1, 128], strides = [1, 1]} : vector<1x512xf32> to vector<1x128xf32>
    %108 = arith.negf %107 : vector<1x128xf32>
    %109 = math.exp %108 : vector<1x128xf32>
    %cst_54 = arith.constant 1.000000e+00 : f32
    %110 = vector.broadcast %cst_54 : f32 to vector<1x128xf32>
    %111 = arith.addf %110, %109 : vector<1x128xf32>
    %112 = arith.divf %110, %111 : vector<1x128xf32>
    %113 = vector.extract_strided_slice %100 {offsets = [0, 256], sizes = [1, 128], strides = [1, 1]} : vector<1x512xf32> to vector<1x128xf32>
    %114 = math.tanh %113 : vector<1x128xf32>
    %115 = vector.extract_strided_slice %100 {offsets = [0, 384], sizes = [1, 128], strides = [1, 1]} : vector<1x512xf32> to vector<1x128xf32>
    %116 = arith.negf %115 : vector<1x128xf32>
    %117 = math.exp %116 : vector<1x128xf32>
    %cst_55 = arith.constant 1.000000e+00 : f32
    %118 = vector.broadcast %cst_55 : f32 to vector<1x128xf32>
    %119 = arith.addf %118, %117 : vector<1x128xf32>
    %120 = arith.divf %118, %119 : vector<1x128xf32>
    %121 = arith.mulf %112, %93 : vector<1x128xf32>
    %122 = arith.mulf %106, %114 : vector<1x128xf32>
    %123 = arith.addf %121, %122 : vector<1x128xf32>
    %124 = math.tanh %123 : vector<1x128xf32>
    %125 = arith.mulf %120, %124 : vector<1x128xf32>
    %c3_i32 = arith.constant 3 : i32
    %126 = arith.index_cast %c3_i32 : i32 to index
    %c0_56 = arith.constant 0 : index
    %127 = vector.load %arg9[%126, %c0_56] : memref<16x512xf32, #tpu.memory_space<vmem>>, vector<1x512xf32>
    %c0_57 = arith.constant 0 : index
    %c0_58 = arith.constant 0 : index
    %128 = vector.load %arg5[%c0_57, %c0_58] : memref<128x512xf32, #tpu.memory_space<vmem>>, vector<128x512xf32>
    %cst_59 = arith.constant dense<0.000000e+00> : vector<1x512xf32>
    %129 = tpu.matmul %125, %128, %cst_59 {dimension_numbers = #tpu.dot_dimension_numbers<[1], [0], [0], [1], [0, 0, 1, 1], [], []>} : vector<1x128xf32>, vector<128x512xf32>, vector<1x512xf32> -> vector<1x512xf32>
    %130 = arith.addf %127, %129 : vector<1x512xf32>
    %131 = vector.extract_strided_slice %130 {offsets = [0, 0], sizes = [1, 128], strides = [1, 1]} : vector<1x512xf32> to vector<1x128xf32>
    %132 = arith.negf %131 : vector<1x128xf32>
    %133 = math.exp %132 : vector<1x128xf32>
    %cst_60 = arith.constant 1.000000e+00 : f32
    %134 = vector.broadcast %cst_60 : f32 to vector<1x128xf32>
    %135 = arith.addf %134, %133 : vector<1x128xf32>
    %136 = arith.divf %134, %135 : vector<1x128xf32>
    %137 = vector.extract_strided_slice %130 {offsets = [0, 128], sizes = [1, 128], strides = [1, 1]} : vector<1x512xf32> to vector<1x128xf32>
    %138 = arith.negf %137 : vector<1x128xf32>
    %139 = math.exp %138 : vector<1x128xf32>
    %cst_61 = arith.constant 1.000000e+00 : f32
    %140 = vector.broadcast %cst_61 : f32 to vector<1x128xf32>
    %141 = arith.addf %140, %139 : vector<1x128xf32>
    %142 = arith.divf %140, %141 : vector<1x128xf32>
    %143 = vector.extract_strided_slice %130 {offsets = [0, 256], sizes = [1, 128], strides = [1, 1]} : vector<1x512xf32> to vector<1x128xf32>
    %144 = math.tanh %143 : vector<1x128xf32>
    %145 = vector.extract_strided_slice %130 {offsets = [0, 384], sizes = [1, 128], strides = [1, 1]} : vector<1x512xf32> to vector<1x128xf32>
    %146 = arith.negf %145 : vector<1x128xf32>
    %147 = math.exp %146 : vector<1x128xf32>
    %cst_62 = arith.constant 1.000000e+00 : f32
    %148 = vector.broadcast %cst_62 : f32 to vector<1x128xf32>
    %149 = arith.addf %148, %147 : vector<1x128xf32>
    %150 = arith.divf %148, %149 : vector<1x128xf32>
    %151 = arith.mulf %142, %123 : vector<1x128xf32>
    %152 = arith.mulf %136, %144 : vector<1x128xf32>
    %153 = arith.addf %151, %152 : vector<1x128xf32>
    %154 = math.tanh %153 : vector<1x128xf32>
    %155 = arith.mulf %150, %154 : vector<1x128xf32>
    %c4_i32 = arith.constant 4 : i32
    %156 = arith.index_cast %c4_i32 : i32 to index
    %c0_63 = arith.constant 0 : index
    %157 = vector.load %arg9[%156, %c0_63] : memref<16x512xf32, #tpu.memory_space<vmem>>, vector<1x512xf32>
    %c0_64 = arith.constant 0 : index
    %c0_65 = arith.constant 0 : index
    %158 = vector.load %arg5[%c0_64, %c0_65] : memref<128x512xf32, #tpu.memory_space<vmem>>, vector<128x512xf32>
    %cst_66 = arith.constant dense<0.000000e+00> : vector<1x512xf32>
    %159 = tpu.matmul %155, %158, %cst_66 {dimension_numbers = #tpu.dot_dimension_numbers<[1], [0], [0], [1], [0, 0, 1, 1], [], []>} : vector<1x128xf32>, vector<128x512xf32>, vector<1x512xf32> -> vector<1x512xf32>
    %160 = arith.addf %157, %159 : vector<1x512xf32>
    %161 = vector.extract_strided_slice %160 {offsets = [0, 0], sizes = [1, 128], strides = [1, 1]} : vector<1x512xf32> to vector<1x128xf32>
    %162 = arith.negf %161 : vector<1x128xf32>
    %163 = math.exp %162 : vector<1x128xf32>
    %cst_67 = arith.constant 1.000000e+00 : f32
    %164 = vector.broadcast %cst_67 : f32 to vector<1x128xf32>
    %165 = arith.addf %164, %163 : vector<1x128xf32>
    %166 = arith.divf %164, %165 : vector<1x128xf32>
    %167 = vector.extract_strided_slice %160 {offsets = [0, 128], sizes = [1, 128], strides = [1, 1]} : vector<1x512xf32> to vector<1x128xf32>
    %168 = arith.negf %167 : vector<1x128xf32>
    %169 = math.exp %168 : vector<1x128xf32>
    %cst_68 = arith.constant 1.000000e+00 : f32
    %170 = vector.broadcast %cst_68 : f32 to vector<1x128xf32>
    %171 = arith.addf %170, %169 : vector<1x128xf32>
    %172 = arith.divf %170, %171 : vector<1x128xf32>
    %173 = vector.extract_strided_slice %160 {offsets = [0, 256], sizes = [1, 128], strides = [1, 1]} : vector<1x512xf32> to vector<1x128xf32>
    %174 = math.tanh %173 : vector<1x128xf32>
    %175 = vector.extract_strided_slice %160 {offsets = [0, 384], sizes = [1, 128], strides = [1, 1]} : vector<1x512xf32> to vector<1x128xf32>
    %176 = arith.negf %175 : vector<1x128xf32>
    %177 = math.exp %176 : vector<1x128xf32>
    %cst_69 = arith.constant 1.000000e+00 : f32
    %178 = vector.broadcast %cst_69 : f32 to vector<1x128xf32>
    %179 = arith.addf %178, %177 : vector<1x128xf32>
    %180 = arith.divf %178, %179 : vector<1x128xf32>
    %181 = arith.mulf %172, %153 : vector<1x128xf32>
    %182 = arith.mulf %166, %174 : vector<1x128xf32>
    %183 = arith.addf %181, %182 : vector<1x128xf32>
    %184 = math.tanh %183 : vector<1x128xf32>
    %185 = arith.mulf %180, %184 : vector<1x128xf32>
    %c5_i32 = arith.constant 5 : i32
    %186 = arith.index_cast %c5_i32 : i32 to index
    %c0_70 = arith.constant 0 : index
    %187 = vector.load %arg9[%186, %c0_70] : memref<16x512xf32, #tpu.memory_space<vmem>>, vector<1x512xf32>
    %c0_71 = arith.constant 0 : index
    %c0_72 = arith.constant 0 : index
    %188 = vector.load %arg5[%c0_71, %c0_72] : memref<128x512xf32, #tpu.memory_space<vmem>>, vector<128x512xf32>
    %cst_73 = arith.constant dense<0.000000e+00> : vector<1x512xf32>
    %189 = tpu.matmul %185, %188, %cst_73 {dimension_numbers = #tpu.dot_dimension_numbers<[1], [0], [0], [1], [0, 0, 1, 1], [], []>} : vector<1x128xf32>, vector<128x512xf32>, vector<1x512xf32> -> vector<1x512xf32>
    %190 = arith.addf %187, %189 : vector<1x512xf32>
    %191 = vector.extract_strided_slice %190 {offsets = [0, 0], sizes = [1, 128], strides = [1, 1]} : vector<1x512xf32> to vector<1x128xf32>
    %192 = arith.negf %191 : vector<1x128xf32>
    %193 = math.exp %192 : vector<1x128xf32>
    %cst_74 = arith.constant 1.000000e+00 : f32
    %194 = vector.broadcast %cst_74 : f32 to vector<1x128xf32>
    %195 = arith.addf %194, %193 : vector<1x128xf32>
    %196 = arith.divf %194, %195 : vector<1x128xf32>
    %197 = vector.extract_strided_slice %190 {offsets = [0, 128], sizes = [1, 128], strides = [1, 1]} : vector<1x512xf32> to vector<1x128xf32>
    %198 = arith.negf %197 : vector<1x128xf32>
    %199 = math.exp %198 : vector<1x128xf32>
    %cst_75 = arith.constant 1.000000e+00 : f32
    %200 = vector.broadcast %cst_75 : f32 to vector<1x128xf32>
    %201 = arith.addf %200, %199 : vector<1x128xf32>
    %202 = arith.divf %200, %201 : vector<1x128xf32>
    %203 = vector.extract_strided_slice %190 {offsets = [0, 256], sizes = [1, 128], strides = [1, 1]} : vector<1x512xf32> to vector<1x128xf32>
    %204 = math.tanh %203 : vector<1x128xf32>
    %205 = vector.extract_strided_slice %190 {offsets = [0, 384], sizes = [1, 128], strides = [1, 1]} : vector<1x512xf32> to vector<1x128xf32>
    %206 = arith.negf %205 : vector<1x128xf32>
    %207 = math.exp %206 : vector<1x128xf32>
    %cst_76 = arith.constant 1.000000e+00 : f32
    %208 = vector.broadcast %cst_76 : f32 to vector<1x128xf32>
    %209 = arith.addf %208, %207 : vector<1x128xf32>
    %210 = arith.divf %208, %209 : vector<1x128xf32>
    %211 = arith.mulf %202, %183 : vector<1x128xf32>
    %212 = arith.mulf %196, %204 : vector<1x128xf32>
    %213 = arith.addf %211, %212 : vector<1x128xf32>
    %214 = math.tanh %213 : vector<1x128xf32>
    %215 = arith.mulf %210, %214 : vector<1x128xf32>
    %c6_i32 = arith.constant 6 : i32
    %216 = arith.index_cast %c6_i32 : i32 to index
    %c0_77 = arith.constant 0 : index
    %217 = vector.load %arg9[%216, %c0_77] : memref<16x512xf32, #tpu.memory_space<vmem>>, vector<1x512xf32>
    %c0_78 = arith.constant 0 : index
    %c0_79 = arith.constant 0 : index
    %218 = vector.load %arg5[%c0_78, %c0_79] : memref<128x512xf32, #tpu.memory_space<vmem>>, vector<128x512xf32>
    %cst_80 = arith.constant dense<0.000000e+00> : vector<1x512xf32>
    %219 = tpu.matmul %215, %218, %cst_80 {dimension_numbers = #tpu.dot_dimension_numbers<[1], [0], [0], [1], [0, 0, 1, 1], [], []>} : vector<1x128xf32>, vector<128x512xf32>, vector<1x512xf32> -> vector<1x512xf32>
    %220 = arith.addf %217, %219 : vector<1x512xf32>
    %221 = vector.extract_strided_slice %220 {offsets = [0, 0], sizes = [1, 128], strides = [1, 1]} : vector<1x512xf32> to vector<1x128xf32>
    %222 = arith.negf %221 : vector<1x128xf32>
    %223 = math.exp %222 : vector<1x128xf32>
    %cst_81 = arith.constant 1.000000e+00 : f32
    %224 = vector.broadcast %cst_81 : f32 to vector<1x128xf32>
    %225 = arith.addf %224, %223 : vector<1x128xf32>
    %226 = arith.divf %224, %225 : vector<1x128xf32>
    %227 = vector.extract_strided_slice %220 {offsets = [0, 128], sizes = [1, 128], strides = [1, 1]} : vector<1x512xf32> to vector<1x128xf32>
    %228 = arith.negf %227 : vector<1x128xf32>
    %229 = math.exp %228 : vector<1x128xf32>
    %cst_82 = arith.constant 1.000000e+00 : f32
    %230 = vector.broadcast %cst_82 : f32 to vector<1x128xf32>
    %231 = arith.addf %230, %229 : vector<1x128xf32>
    %232 = arith.divf %230, %231 : vector<1x128xf32>
    %233 = vector.extract_strided_slice %220 {offsets = [0, 256], sizes = [1, 128], strides = [1, 1]} : vector<1x512xf32> to vector<1x128xf32>
    %234 = math.tanh %233 : vector<1x128xf32>
    %235 = vector.extract_strided_slice %220 {offsets = [0, 384], sizes = [1, 128], strides = [1, 1]} : vector<1x512xf32> to vector<1x128xf32>
    %236 = arith.negf %235 : vector<1x128xf32>
    %237 = math.exp %236 : vector<1x128xf32>
    %cst_83 = arith.constant 1.000000e+00 : f32
    %238 = vector.broadcast %cst_83 : f32 to vector<1x128xf32>
    %239 = arith.addf %238, %237 : vector<1x128xf32>
    %240 = arith.divf %238, %239 : vector<1x128xf32>
    %241 = arith.mulf %232, %213 : vector<1x128xf32>
    %242 = arith.mulf %226, %234 : vector<1x128xf32>
    %243 = arith.addf %241, %242 : vector<1x128xf32>
    %244 = math.tanh %243 : vector<1x128xf32>
    %245 = arith.mulf %240, %244 : vector<1x128xf32>
    %c7_i32 = arith.constant 7 : i32
    %246 = arith.index_cast %c7_i32 : i32 to index
    %c0_84 = arith.constant 0 : index
    %247 = vector.load %arg9[%246, %c0_84] : memref<16x512xf32, #tpu.memory_space<vmem>>, vector<1x512xf32>
    %c0_85 = arith.constant 0 : index
    %c0_86 = arith.constant 0 : index
    %248 = vector.load %arg5[%c0_85, %c0_86] : memref<128x512xf32, #tpu.memory_space<vmem>>, vector<128x512xf32>
    %cst_87 = arith.constant dense<0.000000e+00> : vector<1x512xf32>
    %249 = tpu.matmul %245, %248, %cst_87 {dimension_numbers = #tpu.dot_dimension_numbers<[1], [0], [0], [1], [0, 0, 1, 1], [], []>} : vector<1x128xf32>, vector<128x512xf32>, vector<1x512xf32> -> vector<1x512xf32>
    %250 = arith.addf %247, %249 : vector<1x512xf32>
    %251 = vector.extract_strided_slice %250 {offsets = [0, 0], sizes = [1, 128], strides = [1, 1]} : vector<1x512xf32> to vector<1x128xf32>
    %252 = arith.negf %251 : vector<1x128xf32>
    %253 = math.exp %252 : vector<1x128xf32>
    %cst_88 = arith.constant 1.000000e+00 : f32
    %254 = vector.broadcast %cst_88 : f32 to vector<1x128xf32>
    %255 = arith.addf %254, %253 : vector<1x128xf32>
    %256 = arith.divf %254, %255 : vector<1x128xf32>
    %257 = vector.extract_strided_slice %250 {offsets = [0, 128], sizes = [1, 128], strides = [1, 1]} : vector<1x512xf32> to vector<1x128xf32>
    %258 = arith.negf %257 : vector<1x128xf32>
    %259 = math.exp %258 : vector<1x128xf32>
    %cst_89 = arith.constant 1.000000e+00 : f32
    %260 = vector.broadcast %cst_89 : f32 to vector<1x128xf32>
    %261 = arith.addf %260, %259 : vector<1x128xf32>
    %262 = arith.divf %260, %261 : vector<1x128xf32>
    %263 = vector.extract_strided_slice %250 {offsets = [0, 256], sizes = [1, 128], strides = [1, 1]} : vector<1x512xf32> to vector<1x128xf32>
    %264 = math.tanh %263 : vector<1x128xf32>
    %265 = vector.extract_strided_slice %250 {offsets = [0, 384], sizes = [1, 128], strides = [1, 1]} : vector<1x512xf32> to vector<1x128xf32>
    %266 = arith.negf %265 : vector<1x128xf32>
    %267 = math.exp %266 : vector<1x128xf32>
    %cst_90 = arith.constant 1.000000e+00 : f32
    %268 = vector.broadcast %cst_90 : f32 to vector<1x128xf32>
    %269 = arith.addf %268, %267 : vector<1x128xf32>
    %270 = arith.divf %268, %269 : vector<1x128xf32>
    %271 = arith.mulf %262, %243 : vector<1x128xf32>
    %272 = arith.mulf %256, %264 : vector<1x128xf32>
    %273 = arith.addf %271, %272 : vector<1x128xf32>
    %274 = math.tanh %273 : vector<1x128xf32>
    %275 = arith.mulf %270, %274 : vector<1x128xf32>
    %c8_i32 = arith.constant 8 : i32
    %276 = arith.index_cast %c8_i32 : i32 to index
    %c0_91 = arith.constant 0 : index
    %277 = vector.load %arg9[%276, %c0_91] : memref<16x512xf32, #tpu.memory_space<vmem>>, vector<1x512xf32>
    %c0_92 = arith.constant 0 : index
    %c0_93 = arith.constant 0 : index
    %278 = vector.load %arg5[%c0_92, %c0_93] : memref<128x512xf32, #tpu.memory_space<vmem>>, vector<128x512xf32>
    %cst_94 = arith.constant dense<0.000000e+00> : vector<1x512xf32>
    %279 = tpu.matmul %275, %278, %cst_94 {dimension_numbers = #tpu.dot_dimension_numbers<[1], [0], [0], [1], [0, 0, 1, 1], [], []>} : vector<1x128xf32>, vector<128x512xf32>, vector<1x512xf32> -> vector<1x512xf32>
    %280 = arith.addf %277, %279 : vector<1x512xf32>
    %281 = vector.extract_strided_slice %280 {offsets = [0, 0], sizes = [1, 128], strides = [1, 1]} : vector<1x512xf32> to vector<1x128xf32>
    %282 = arith.negf %281 : vector<1x128xf32>
    %283 = math.exp %282 : vector<1x128xf32>
    %cst_95 = arith.constant 1.000000e+00 : f32
    %284 = vector.broadcast %cst_95 : f32 to vector<1x128xf32>
    %285 = arith.addf %284, %283 : vector<1x128xf32>
    %286 = arith.divf %284, %285 : vector<1x128xf32>
    %287 = vector.extract_strided_slice %280 {offsets = [0, 128], sizes = [1, 128], strides = [1, 1]} : vector<1x512xf32> to vector<1x128xf32>
    %288 = arith.negf %287 : vector<1x128xf32>
    %289 = math.exp %288 : vector<1x128xf32>
    %cst_96 = arith.constant 1.000000e+00 : f32
    %290 = vector.broadcast %cst_96 : f32 to vector<1x128xf32>
    %291 = arith.addf %290, %289 : vector<1x128xf32>
    %292 = arith.divf %290, %291 : vector<1x128xf32>
    %293 = vector.extract_strided_slice %280 {offsets = [0, 256], sizes = [1, 128], strides = [1, 1]} : vector<1x512xf32> to vector<1x128xf32>
    %294 = math.tanh %293 : vector<1x128xf32>
    %295 = vector.extract_strided_slice %280 {offsets = [0, 384], sizes = [1, 128], strides = [1, 1]} : vector<1x512xf32> to vector<1x128xf32>
    %296 = arith.negf %295 : vector<1x128xf32>
    %297 = math.exp %296 : vector<1x128xf32>
    %cst_97 = arith.constant 1.000000e+00 : f32
    %298 = vector.broadcast %cst_97 : f32 to vector<1x128xf32>
    %299 = arith.addf %298, %297 : vector<1x128xf32>
    %300 = arith.divf %298, %299 : vector<1x128xf32>
    %301 = arith.mulf %292, %273 : vector<1x128xf32>
    %302 = arith.mulf %286, %294 : vector<1x128xf32>
    %303 = arith.addf %301, %302 : vector<1x128xf32>
    %304 = math.tanh %303 : vector<1x128xf32>
    %305 = arith.mulf %300, %304 : vector<1x128xf32>
    %c9_i32 = arith.constant 9 : i32
    %306 = arith.index_cast %c9_i32 : i32 to index
    %c0_98 = arith.constant 0 : index
    %307 = vector.load %arg9[%306, %c0_98] : memref<16x512xf32, #tpu.memory_space<vmem>>, vector<1x512xf32>
    %c0_99 = arith.constant 0 : index
    %c0_100 = arith.constant 0 : index
    %308 = vector.load %arg5[%c0_99, %c0_100] : memref<128x512xf32, #tpu.memory_space<vmem>>, vector<128x512xf32>
    %cst_101 = arith.constant dense<0.000000e+00> : vector<1x512xf32>
    %309 = tpu.matmul %305, %308, %cst_101 {dimension_numbers = #tpu.dot_dimension_numbers<[1], [0], [0], [1], [0, 0, 1, 1], [], []>} : vector<1x128xf32>, vector<128x512xf32>, vector<1x512xf32> -> vector<1x512xf32>
    %310 = arith.addf %307, %309 : vector<1x512xf32>
    %311 = vector.extract_strided_slice %310 {offsets = [0, 0], sizes = [1, 128], strides = [1, 1]} : vector<1x512xf32> to vector<1x128xf32>
    %312 = arith.negf %311 : vector<1x128xf32>
    %313 = math.exp %312 : vector<1x128xf32>
    %cst_102 = arith.constant 1.000000e+00 : f32
    %314 = vector.broadcast %cst_102 : f32 to vector<1x128xf32>
    %315 = arith.addf %314, %313 : vector<1x128xf32>
    %316 = arith.divf %314, %315 : vector<1x128xf32>
    %317 = vector.extract_strided_slice %310 {offsets = [0, 128], sizes = [1, 128], strides = [1, 1]} : vector<1x512xf32> to vector<1x128xf32>
    %318 = arith.negf %317 : vector<1x128xf32>
    %319 = math.exp %318 : vector<1x128xf32>
    %cst_103 = arith.constant 1.000000e+00 : f32
    %320 = vector.broadcast %cst_103 : f32 to vector<1x128xf32>
    %321 = arith.addf %320, %319 : vector<1x128xf32>
    %322 = arith.divf %320, %321 : vector<1x128xf32>
    %323 = vector.extract_strided_slice %310 {offsets = [0, 256], sizes = [1, 128], strides = [1, 1]} : vector<1x512xf32> to vector<1x128xf32>
    %324 = math.tanh %323 : vector<1x128xf32>
    %325 = vector.extract_strided_slice %310 {offsets = [0, 384], sizes = [1, 128], strides = [1, 1]} : vector<1x512xf32> to vector<1x128xf32>
    %326 = arith.negf %325 : vector<1x128xf32>
    %327 = math.exp %326 : vector<1x128xf32>
    %cst_104 = arith.constant 1.000000e+00 : f32
    %328 = vector.broadcast %cst_104 : f32 to vector<1x128xf32>
    %329 = arith.addf %328, %327 : vector<1x128xf32>
    %330 = arith.divf %328, %329 : vector<1x128xf32>
    %331 = arith.mulf %322, %303 : vector<1x128xf32>
    %332 = arith.mulf %316, %324 : vector<1x128xf32>
    %333 = arith.addf %331, %332 : vector<1x128xf32>
    %334 = math.tanh %333 : vector<1x128xf32>
    %335 = arith.mulf %330, %334 : vector<1x128xf32>
    %c10_i32 = arith.constant 10 : i32
    %336 = arith.index_cast %c10_i32 : i32 to index
    %c0_105 = arith.constant 0 : index
    %337 = vector.load %arg9[%336, %c0_105] : memref<16x512xf32, #tpu.memory_space<vmem>>, vector<1x512xf32>
    %c0_106 = arith.constant 0 : index
    %c0_107 = arith.constant 0 : index
    %338 = vector.load %arg5[%c0_106, %c0_107] : memref<128x512xf32, #tpu.memory_space<vmem>>, vector<128x512xf32>
    %cst_108 = arith.constant dense<0.000000e+00> : vector<1x512xf32>
    %339 = tpu.matmul %335, %338, %cst_108 {dimension_numbers = #tpu.dot_dimension_numbers<[1], [0], [0], [1], [0, 0, 1, 1], [], []>} : vector<1x128xf32>, vector<128x512xf32>, vector<1x512xf32> -> vector<1x512xf32>
    %340 = arith.addf %337, %339 : vector<1x512xf32>
    %341 = vector.extract_strided_slice %340 {offsets = [0, 0], sizes = [1, 128], strides = [1, 1]} : vector<1x512xf32> to vector<1x128xf32>
    %342 = arith.negf %341 : vector<1x128xf32>
    %343 = math.exp %342 : vector<1x128xf32>
    %cst_109 = arith.constant 1.000000e+00 : f32
    %344 = vector.broadcast %cst_109 : f32 to vector<1x128xf32>
    %345 = arith.addf %344, %343 : vector<1x128xf32>
    %346 = arith.divf %344, %345 : vector<1x128xf32>
    %347 = vector.extract_strided_slice %340 {offsets = [0, 128], sizes = [1, 128], strides = [1, 1]} : vector<1x512xf32> to vector<1x128xf32>
    %348 = arith.negf %347 : vector<1x128xf32>
    %349 = math.exp %348 : vector<1x128xf32>
    %cst_110 = arith.constant 1.000000e+00 : f32
    %350 = vector.broadcast %cst_110 : f32 to vector<1x128xf32>
    %351 = arith.addf %350, %349 : vector<1x128xf32>
    %352 = arith.divf %350, %351 : vector<1x128xf32>
    %353 = vector.extract_strided_slice %340 {offsets = [0, 256], sizes = [1, 128], strides = [1, 1]} : vector<1x512xf32> to vector<1x128xf32>
    %354 = math.tanh %353 : vector<1x128xf32>
    %355 = vector.extract_strided_slice %340 {offsets = [0, 384], sizes = [1, 128], strides = [1, 1]} : vector<1x512xf32> to vector<1x128xf32>
    %356 = arith.negf %355 : vector<1x128xf32>
    %357 = math.exp %356 : vector<1x128xf32>
    %cst_111 = arith.constant 1.000000e+00 : f32
    %358 = vector.broadcast %cst_111 : f32 to vector<1x128xf32>
    %359 = arith.addf %358, %357 : vector<1x128xf32>
    %360 = arith.divf %358, %359 : vector<1x128xf32>
    %361 = arith.mulf %352, %333 : vector<1x128xf32>
    %362 = arith.mulf %346, %354 : vector<1x128xf32>
    %363 = arith.addf %361, %362 : vector<1x128xf32>
    %364 = math.tanh %363 : vector<1x128xf32>
    %365 = arith.mulf %360, %364 : vector<1x128xf32>
    %c11_i32 = arith.constant 11 : i32
    %366 = arith.index_cast %c11_i32 : i32 to index
    %c0_112 = arith.constant 0 : index
    %367 = vector.load %arg9[%366, %c0_112] : memref<16x512xf32, #tpu.memory_space<vmem>>, vector<1x512xf32>
    %c0_113 = arith.constant 0 : index
    %c0_114 = arith.constant 0 : index
    %368 = vector.load %arg5[%c0_113, %c0_114] : memref<128x512xf32, #tpu.memory_space<vmem>>, vector<128x512xf32>
    %cst_115 = arith.constant dense<0.000000e+00> : vector<1x512xf32>
    %369 = tpu.matmul %365, %368, %cst_115 {dimension_numbers = #tpu.dot_dimension_numbers<[1], [0], [0], [1], [0, 0, 1, 1], [], []>} : vector<1x128xf32>, vector<128x512xf32>, vector<1x512xf32> -> vector<1x512xf32>
    %370 = arith.addf %367, %369 : vector<1x512xf32>
    %371 = vector.extract_strided_slice %370 {offsets = [0, 0], sizes = [1, 128], strides = [1, 1]} : vector<1x512xf32> to vector<1x128xf32>
    %372 = arith.negf %371 : vector<1x128xf32>
    %373 = math.exp %372 : vector<1x128xf32>
    %cst_116 = arith.constant 1.000000e+00 : f32
    %374 = vector.broadcast %cst_116 : f32 to vector<1x128xf32>
    %375 = arith.addf %374, %373 : vector<1x128xf32>
    %376 = arith.divf %374, %375 : vector<1x128xf32>
    %377 = vector.extract_strided_slice %370 {offsets = [0, 128], sizes = [1, 128], strides = [1, 1]} : vector<1x512xf32> to vector<1x128xf32>
    %378 = arith.negf %377 : vector<1x128xf32>
    %379 = math.exp %378 : vector<1x128xf32>
    %cst_117 = arith.constant 1.000000e+00 : f32
    %380 = vector.broadcast %cst_117 : f32 to vector<1x128xf32>
    %381 = arith.addf %380, %379 : vector<1x128xf32>
    %382 = arith.divf %380, %381 : vector<1x128xf32>
    %383 = vector.extract_strided_slice %370 {offsets = [0, 256], sizes = [1, 128], strides = [1, 1]} : vector<1x512xf32> to vector<1x128xf32>
    %384 = math.tanh %383 : vector<1x128xf32>
    %385 = vector.extract_strided_slice %370 {offsets = [0, 384], sizes = [1, 128], strides = [1, 1]} : vector<1x512xf32> to vector<1x128xf32>
    %386 = arith.negf %385 : vector<1x128xf32>
    %387 = math.exp %386 : vector<1x128xf32>
    %cst_118 = arith.constant 1.000000e+00 : f32
    %388 = vector.broadcast %cst_118 : f32 to vector<1x128xf32>
    %389 = arith.addf %388, %387 : vector<1x128xf32>
    %390 = arith.divf %388, %389 : vector<1x128xf32>
    %391 = arith.mulf %382, %363 : vector<1x128xf32>
    %392 = arith.mulf %376, %384 : vector<1x128xf32>
    %393 = arith.addf %391, %392 : vector<1x128xf32>
    %394 = math.tanh %393 : vector<1x128xf32>
    %395 = arith.mulf %390, %394 : vector<1x128xf32>
    %c12_i32 = arith.constant 12 : i32
    %396 = arith.index_cast %c12_i32 : i32 to index
    %c0_119 = arith.constant 0 : index
    %397 = vector.load %arg9[%396, %c0_119] : memref<16x512xf32, #tpu.memory_space<vmem>>, vector<1x512xf32>
    %c0_120 = arith.constant 0 : index
    %c0_121 = arith.constant 0 : index
    %398 = vector.load %arg5[%c0_120, %c0_121] : memref<128x512xf32, #tpu.memory_space<vmem>>, vector<128x512xf32>
    %cst_122 = arith.constant dense<0.000000e+00> : vector<1x512xf32>
    %399 = tpu.matmul %395, %398, %cst_122 {dimension_numbers = #tpu.dot_dimension_numbers<[1], [0], [0], [1], [0, 0, 1, 1], [], []>} : vector<1x128xf32>, vector<128x512xf32>, vector<1x512xf32> -> vector<1x512xf32>
    %400 = arith.addf %397, %399 : vector<1x512xf32>
    %401 = vector.extract_strided_slice %400 {offsets = [0, 0], sizes = [1, 128], strides = [1, 1]} : vector<1x512xf32> to vector<1x128xf32>
    %402 = arith.negf %401 : vector<1x128xf32>
    %403 = math.exp %402 : vector<1x128xf32>
    %cst_123 = arith.constant 1.000000e+00 : f32
    %404 = vector.broadcast %cst_123 : f32 to vector<1x128xf32>
    %405 = arith.addf %404, %403 : vector<1x128xf32>
    %406 = arith.divf %404, %405 : vector<1x128xf32>
    %407 = vector.extract_strided_slice %400 {offsets = [0, 128], sizes = [1, 128], strides = [1, 1]} : vector<1x512xf32> to vector<1x128xf32>
    %408 = arith.negf %407 : vector<1x128xf32>
    %409 = math.exp %408 : vector<1x128xf32>
    %cst_124 = arith.constant 1.000000e+00 : f32
    %410 = vector.broadcast %cst_124 : f32 to vector<1x128xf32>
    %411 = arith.addf %410, %409 : vector<1x128xf32>
    %412 = arith.divf %410, %411 : vector<1x128xf32>
    %413 = vector.extract_strided_slice %400 {offsets = [0, 256], sizes = [1, 128], strides = [1, 1]} : vector<1x512xf32> to vector<1x128xf32>
    %414 = math.tanh %413 : vector<1x128xf32>
    %415 = vector.extract_strided_slice %400 {offsets = [0, 384], sizes = [1, 128], strides = [1, 1]} : vector<1x512xf32> to vector<1x128xf32>
    %416 = arith.negf %415 : vector<1x128xf32>
    %417 = math.exp %416 : vector<1x128xf32>
    %cst_125 = arith.constant 1.000000e+00 : f32
    %418 = vector.broadcast %cst_125 : f32 to vector<1x128xf32>
    %419 = arith.addf %418, %417 : vector<1x128xf32>
    %420 = arith.divf %418, %419 : vector<1x128xf32>
    %421 = arith.mulf %412, %393 : vector<1x128xf32>
    %422 = arith.mulf %406, %414 : vector<1x128xf32>
    %423 = arith.addf %421, %422 : vector<1x128xf32>
    %424 = math.tanh %423 : vector<1x128xf32>
    %425 = arith.mulf %420, %424 : vector<1x128xf32>
    %c13_i32 = arith.constant 13 : i32
    %426 = arith.index_cast %c13_i32 : i32 to index
    %c0_126 = arith.constant 0 : index
    %427 = vector.load %arg9[%426, %c0_126] : memref<16x512xf32, #tpu.memory_space<vmem>>, vector<1x512xf32>
    %c0_127 = arith.constant 0 : index
    %c0_128 = arith.constant 0 : index
    %428 = vector.load %arg5[%c0_127, %c0_128] : memref<128x512xf32, #tpu.memory_space<vmem>>, vector<128x512xf32>
    %cst_129 = arith.constant dense<0.000000e+00> : vector<1x512xf32>
    %429 = tpu.matmul %425, %428, %cst_129 {dimension_numbers = #tpu.dot_dimension_numbers<[1], [0], [0], [1], [0, 0, 1, 1], [], []>} : vector<1x128xf32>, vector<128x512xf32>, vector<1x512xf32> -> vector<1x512xf32>
    %430 = arith.addf %427, %429 : vector<1x512xf32>
    %431 = vector.extract_strided_slice %430 {offsets = [0, 0], sizes = [1, 128], strides = [1, 1]} : vector<1x512xf32> to vector<1x128xf32>
    %432 = arith.negf %431 : vector<1x128xf32>
    %433 = math.exp %432 : vector<1x128xf32>
    %cst_130 = arith.constant 1.000000e+00 : f32
    %434 = vector.broadcast %cst_130 : f32 to vector<1x128xf32>
    %435 = arith.addf %434, %433 : vector<1x128xf32>
    %436 = arith.divf %434, %435 : vector<1x128xf32>
    %437 = vector.extract_strided_slice %430 {offsets = [0, 128], sizes = [1, 128], strides = [1, 1]} : vector<1x512xf32> to vector<1x128xf32>
    %438 = arith.negf %437 : vector<1x128xf32>
    %439 = math.exp %438 : vector<1x128xf32>
    %cst_131 = arith.constant 1.000000e+00 : f32
    %440 = vector.broadcast %cst_131 : f32 to vector<1x128xf32>
    %441 = arith.addf %440, %439 : vector<1x128xf32>
    %442 = arith.divf %440, %441 : vector<1x128xf32>
    %443 = vector.extract_strided_slice %430 {offsets = [0, 256], sizes = [1, 128], strides = [1, 1]} : vector<1x512xf32> to vector<1x128xf32>
    %444 = math.tanh %443 : vector<1x128xf32>
    %445 = vector.extract_strided_slice %430 {offsets = [0, 384], sizes = [1, 128], strides = [1, 1]} : vector<1x512xf32> to vector<1x128xf32>
    %446 = arith.negf %445 : vector<1x128xf32>
    %447 = math.exp %446 : vector<1x128xf32>
    %cst_132 = arith.constant 1.000000e+00 : f32
    %448 = vector.broadcast %cst_132 : f32 to vector<1x128xf32>
    %449 = arith.addf %448, %447 : vector<1x128xf32>
    %450 = arith.divf %448, %449 : vector<1x128xf32>
    %451 = arith.mulf %442, %423 : vector<1x128xf32>
    %452 = arith.mulf %436, %444 : vector<1x128xf32>
    %453 = arith.addf %451, %452 : vector<1x128xf32>
    %454 = math.tanh %453 : vector<1x128xf32>
    %455 = arith.mulf %450, %454 : vector<1x128xf32>
    %c14_i32 = arith.constant 14 : i32
    %456 = arith.index_cast %c14_i32 : i32 to index
    %c0_133 = arith.constant 0 : index
    %457 = vector.load %arg9[%456, %c0_133] : memref<16x512xf32, #tpu.memory_space<vmem>>, vector<1x512xf32>
    %c0_134 = arith.constant 0 : index
    %c0_135 = arith.constant 0 : index
    %458 = vector.load %arg5[%c0_134, %c0_135] : memref<128x512xf32, #tpu.memory_space<vmem>>, vector<128x512xf32>
    %cst_136 = arith.constant dense<0.000000e+00> : vector<1x512xf32>
    %459 = tpu.matmul %455, %458, %cst_136 {dimension_numbers = #tpu.dot_dimension_numbers<[1], [0], [0], [1], [0, 0, 1, 1], [], []>} : vector<1x128xf32>, vector<128x512xf32>, vector<1x512xf32> -> vector<1x512xf32>
    %460 = arith.addf %457, %459 : vector<1x512xf32>
    %461 = vector.extract_strided_slice %460 {offsets = [0, 0], sizes = [1, 128], strides = [1, 1]} : vector<1x512xf32> to vector<1x128xf32>
    %462 = arith.negf %461 : vector<1x128xf32>
    %463 = math.exp %462 : vector<1x128xf32>
    %cst_137 = arith.constant 1.000000e+00 : f32
    %464 = vector.broadcast %cst_137 : f32 to vector<1x128xf32>
    %465 = arith.addf %464, %463 : vector<1x128xf32>
    %466 = arith.divf %464, %465 : vector<1x128xf32>
    %467 = vector.extract_strided_slice %460 {offsets = [0, 128], sizes = [1, 128], strides = [1, 1]} : vector<1x512xf32> to vector<1x128xf32>
    %468 = arith.negf %467 : vector<1x128xf32>
    %469 = math.exp %468 : vector<1x128xf32>
    %cst_138 = arith.constant 1.000000e+00 : f32
    %470 = vector.broadcast %cst_138 : f32 to vector<1x128xf32>
    %471 = arith.addf %470, %469 : vector<1x128xf32>
    %472 = arith.divf %470, %471 : vector<1x128xf32>
    %473 = vector.extract_strided_slice %460 {offsets = [0, 256], sizes = [1, 128], strides = [1, 1]} : vector<1x512xf32> to vector<1x128xf32>
    %474 = math.tanh %473 : vector<1x128xf32>
    %475 = vector.extract_strided_slice %460 {offsets = [0, 384], sizes = [1, 128], strides = [1, 1]} : vector<1x512xf32> to vector<1x128xf32>
    %476 = arith.negf %475 : vector<1x128xf32>
    %477 = math.exp %476 : vector<1x128xf32>
    %cst_139 = arith.constant 1.000000e+00 : f32
    %478 = vector.broadcast %cst_139 : f32 to vector<1x128xf32>
    %479 = arith.addf %478, %477 : vector<1x128xf32>
    %480 = arith.divf %478, %479 : vector<1x128xf32>
    %481 = arith.mulf %472, %453 : vector<1x128xf32>
    %482 = arith.mulf %466, %474 : vector<1x128xf32>
    %483 = arith.addf %481, %482 : vector<1x128xf32>
    %484 = math.tanh %483 : vector<1x128xf32>
    %485 = arith.mulf %480, %484 : vector<1x128xf32>
    %c15_i32 = arith.constant 15 : i32
    %486 = arith.index_cast %c15_i32 : i32 to index
    %c0_140 = arith.constant 0 : index
    %487 = vector.load %arg9[%486, %c0_140] : memref<16x512xf32, #tpu.memory_space<vmem>>, vector<1x512xf32>
    %c0_141 = arith.constant 0 : index
    %c0_142 = arith.constant 0 : index
    %488 = vector.load %arg5[%c0_141, %c0_142] : memref<128x512xf32, #tpu.memory_space<vmem>>, vector<128x512xf32>
    %cst_143 = arith.constant dense<0.000000e+00> : vector<1x512xf32>
    %489 = tpu.matmul %485, %488, %cst_143 {dimension_numbers = #tpu.dot_dimension_numbers<[1], [0], [0], [1], [0, 0, 1, 1], [], []>} : vector<1x128xf32>, vector<128x512xf32>, vector<1x512xf32> -> vector<1x512xf32>
    %490 = arith.addf %487, %489 : vector<1x512xf32>
    %491 = vector.extract_strided_slice %490 {offsets = [0, 0], sizes = [1, 128], strides = [1, 1]} : vector<1x512xf32> to vector<1x128xf32>
    %492 = arith.negf %491 : vector<1x128xf32>
    %493 = math.exp %492 : vector<1x128xf32>
    %cst_144 = arith.constant 1.000000e+00 : f32
    %494 = vector.broadcast %cst_144 : f32 to vector<1x128xf32>
    %495 = arith.addf %494, %493 : vector<1x128xf32>
    %496 = arith.divf %494, %495 : vector<1x128xf32>
    %497 = vector.extract_strided_slice %490 {offsets = [0, 128], sizes = [1, 128], strides = [1, 1]} : vector<1x512xf32> to vector<1x128xf32>
    %498 = arith.negf %497 : vector<1x128xf32>
    %499 = math.exp %498 : vector<1x128xf32>
    %cst_145 = arith.constant 1.000000e+00 : f32
    %500 = vector.broadcast %cst_145 : f32 to vector<1x128xf32>
    %501 = arith.addf %500, %499 : vector<1x128xf32>
    %502 = arith.divf %500, %501 : vector<1x128xf32>
    %503 = vector.extract_strided_slice %490 {offsets = [0, 256], sizes = [1, 128], strides = [1, 1]} : vector<1x512xf32> to vector<1x128xf32>
    %504 = math.tanh %503 : vector<1x128xf32>
    %505 = vector.extract_strided_slice %490 {offsets = [0, 384], sizes = [1, 128], strides = [1, 1]} : vector<1x512xf32> to vector<1x128xf32>
    %506 = arith.negf %505 : vector<1x128xf32>
    %507 = math.exp %506 : vector<1x128xf32>
    %cst_146 = arith.constant 1.000000e+00 : f32
    %508 = vector.broadcast %cst_146 : f32 to vector<1x128xf32>
    %509 = arith.addf %508, %507 : vector<1x128xf32>
    %510 = arith.divf %508, %509 : vector<1x128xf32>
    %511 = arith.mulf %502, %483 : vector<1x128xf32>
    %512 = arith.mulf %496, %504 : vector<1x128xf32>
    %513 = arith.addf %511, %512 : vector<1x128xf32>
    %514 = math.tanh %513 : vector<1x128xf32>
    %515 = arith.mulf %510, %514 : vector<1x128xf32>
    %c16_i32 = arith.constant 16 : i32
    %c0_147 = arith.constant 0 : index
    %c0_148 = arith.constant 0 : index
    %516 = vector.load %arg6[%c0_147, %c0_148] : memref<128x128xf32, #tpu.memory_space<vmem>>, vector<128x128xf32>
    %cst_149 = arith.constant dense<0.000000e+00> : vector<1x128xf32>
    %517 = tpu.matmul %515, %516, %cst_149 {dimension_numbers = #tpu.dot_dimension_numbers<[1], [0], [0], [1], [0, 0, 1, 1], [], []>} : vector<1x128xf32>, vector<128x128xf32>, vector<1x128xf32> -> vector<1x128xf32>
    %c0_150 = arith.constant 0 : index
    %c0_151 = arith.constant 0 : index
    %518 = vector.load %arg7[%c0_150, %c0_151] : memref<1x128xf32, #tpu.memory_space<vmem>>, vector<1x128xf32>
    %519 = arith.addf %517, %518 : vector<1x128xf32>
    %cst_152 = arith.constant dense<0xFF800000> : vector<1xf32>
    %520 = vector.multi_reduction <maximumf>, %519, %cst_152 [1] : vector<1x128xf32> to vector<1xf32>
    %521 = vector.shape_cast %520 : vector<1xf32> to vector<1x1xf32>
    %522 = vector.broadcast %521 : vector<1x1xf32> to vector<1x128xf32>
    %523 = arith.subf %519, %522 : vector<1x128xf32>
    %524 = math.exp %523 : vector<1x128xf32>
    %cst_153 = arith.constant dense<0.000000e+00> : vector<1xf32>
    %525 = vector.multi_reduction <add>, %524, %cst_153 [1] : vector<1x128xf32> to vector<1xf32>
    %526 = vector.shape_cast %525 : vector<1xf32> to vector<1x1xf32>
    %527 = vector.broadcast %521 : vector<1x1xf32> to vector<1x128xf32>
    %528 = arith.subf %519, %527 : vector<1x128xf32>
    %529 = math.log %526 : vector<1x1xf32>
    %530 = vector.broadcast %529 : vector<1x1xf32> to vector<1x128xf32>
    %531 = arith.subf %528, %530 : vector<1x128xf32>
    %c0_154 = arith.constant 0 : index
    %c0_155 = arith.constant 0 : index
    %532 = vector.load %arg8[%c0_154, %c0_155] : memref<1x128xf32, #tpu.memory_space<vmem>>, vector<1x128xf32>
    tpu.vector_store %arg8[%c0_154, %c0_155], %531 {strides = array<i32>} : memref<1x128xf32, #tpu.memory_space<vmem>>, vector<1x128xf32>,
    return
  }
}

</mosaic_0001>

<bundles_post_ra>
// kernel: lstm_sentiment_forward.1
= control target key start
LH: loop header
LB: loop body
LE: loop exit
PB: predicated region body
PF: predicated region fallthrough
CT: control target
= control target key end

     0   :  { %13 = vsyncpa [#allocation4], 0  ;;  %s6703_s0 = inlined_call_operand.vmem [shape: f32[20,32], index: 0, kind: input, shape index: {}]   ;;  %s6704_s1 = inlined_call_operand.hbm [shape: f32[5,32,256], index: 1, kind: input, shape index: {}]   ;;  %s6705_s2 = inlined_call_operand.vmem [shape: f32[1,256], index: 2, kind: input, shape index: {}]   ;;  %s6706_s3 = inlined_call_operand.hbm [shape: f32[256,512], index: 3, kind: input, shape index: {}]   ;;  %s6707_s4 = inlined_call_operand.vmem [shape: f32[1,512], index: 4, kind: input, shape index: {}]   ;;  %s6708_s5 = inlined_call_operand.hbm [shape: f32[128,512], index: 5, kind: input, shape index: {}]   ;;  %s6709_s6 = inlined_call_operand.hbm [shape: f32[128,128], index: 6, kind: input, shape index: {}]   ;;  %s6710_s7 = inlined_call_operand.vmem [shape: f32[1,128], index: 7, kind: input, shape index: {}]   ;;  %s6711_s8 = inlined_call_operand.hbm [shape: f32[1,128], index: 8, kind: output, shape index: {}]  }
   0x1   :  { %14 = vsyncpa [#allocation7], 0 }
   0x2   :  { %15 = vsyncpa [#allocation10], 0 }
   0x3   :  { %16 = vsyncpa [#allocation5], 0  ;;  %s5044_s27 = smov [#allocation6]  }
   0x4   :  { %s38_s28 = sshll.u32 %s5044_s27, 4  ;;  %s39_s28 = int_to_ptr.vmem [resolvable:$true] %s38_s28 }
   0x5   :  { %s4944_s29 = scalar_lea.vmem %s39_s28, 16384  ;;  %p4949_p1 = scmp.lt.s32.totalorder %s39_s28, %s39_s28 }
   0x6   :  { %p4945_p0 = scmp.ne.s32.totalorder %s39_s28, %s4944_s29  ;;  %p4950_p2 = scmp.lt.s32.totalorder %s4944_s29, %s4944_s29 }
   0x8   :  { %p4951_p3 = por %p4950_p2, %p4949_p1 }
   0xa   :  { %p4952_p4 = pnand %p4951_p3, %p4945_p0 }
   0xc   :  { %4955 = shalt.err (!%p4952_p4)
}
   0xd   :  { %s5045_s30 = smov 512   ;;  %s5046_s9 = smov 32  }
   0xe   :  { %44 = dma.hbm_to_vmem [thread:$0]  %s6706_s3, 16384, %s39_s28, [#allocation7], %s5045_s30, %s5045_s30, %s5046_s9  }
   0xf   :  { %s5047_s12 = smov [#allocation3]  }
  0x10   :  { %s24_s13 = sshll.u32 %s5047_s12, 4  ;;  %s25_s13 = int_to_ptr.vmem [resolvable:$true] %s24_s13 }
  0x11   :  { %s4964_s14 = scalar_lea.vmem %s25_s13, 5120  ;;  %p4969_p6 = scmp.lt.s32.totalorder %s25_s13, %s25_s13 }
  0x12   :  { %p4965_p5 = scmp.ne.s32.totalorder %s25_s13, %s4964_s14  ;;  %p4970_p7 = scmp.lt.s32.totalorder %s4964_s14, %s4964_s14 }
  0x14   :  { %p4971_p8 = por %p4970_p7, %p4969_p6 }
  0x16   :  { %p4972_p9 = pnand %p4971_p8, %p4965_p5 }
  0x18   :  { %4975 = shalt.err (!%p4972_p9)
}
  0x19   :  { %s5048_s15 = smov 256   ;;  %s5049_s16 = smov 16  }
  0x1a   :  { %30 = dma.hbm_to_vmem [thread:$0]  %s6704_s1, 5120, %s25_s13, [#allocation4], %s5048_s15, %s5048_s15, %s5049_s16  }
  0x1b   :  { %s5050_s19 = smov [#allocation8]   ;;  %s5051_s21 = smov [#allocation9]  }
  0x1c   :  { %s52_s20 = sshll.u32 %s5050_s19, 4  ;;  %s64_s3 = sshll.u32 %s5051_s21, 4  ;;  %s53_s20 = int_to_ptr.vmem [resolvable:$true] %s52_s20  ;;  %s65_s3 = int_to_ptr.vmem [resolvable:$true] %s64_s3 }
  0x1d   :  { %s4984_s22 = scalar_lea.vmem %s53_s20, 8192  ;;  %p4989_p11 = scmp.lt.s32.totalorder %s53_s20, %s53_s20 }
  0x1e   :  { %p4985_p10 = scmp.ne.s32.totalorder %s53_s20, %s4984_s22  ;;  %p4990_p12 = scmp.lt.s32.totalorder %s4984_s22, %s4984_s22 }
  0x20   :  { %p4991_p13 = por %p4990_p12, %p4989_p11 }
  0x22   :  { %p4992_p0 = pnand %p4991_p13, %p4985_p10 }
  0x24   :  { %4995 = shalt.err (!%p4992_p0)
}
  0x25   :  { %58 = dma.hbm_to_vmem [thread:$0]  %s6708_s5, 8192, %s53_s20, [#allocation7], %s5045_s30, %s5045_s30, %s5046_s9  }
  0x26   :  { %s5004_s1 = scalar_lea.vmem %s65_s3, 2048  ;;  %p5009_p2 = scmp.lt.s32.totalorder %s65_s3, %s65_s3 }
  0x27   :  { %p5005_p1 = scmp.ne.s32.totalorder %s65_s3, %s5004_s1  ;;  %p5010_p3 = scmp.lt.s32.totalorder %s5004_s1, %s5004_s1 }
  0x29   :  { %p5011_p4 = por %p5010_p3, %p5009_p2 }
  0x2b   :  { %p5012_p5 = pnand %p5011_p4, %p5005_p1 }
  0x2d   :  { %5015 = shalt.err (!%p5012_p5)
}
  0x2e   :  { %s5052_s25 = smov 128   ;;  %s5053_s26 = smov 8  }
  0x2f   :  { %70 = dma.hbm_to_vmem [thread:$0]  %s6709_s6, 2048, %s65_s3, [#allocation10], %s5052_s25, %s5052_s25, %s5053_s26  }
  0x30   :  { %5036 = dma.done.wait [#allocation4], 5120  }
  0x31   :  { %5037 = vsyncadd [#allocation4], 4294962176 }
  0x32   :  { %5038 = dma.done.wait [#allocation7], 24576  }
  0x33   :  { %5039 = vsyncadd [#allocation7], 4294942720 }
  0x34   :  { %5040 = dma.done.wait [#allocation10], 2048  }
  0x35   :  { %5041 = vsyncadd [#allocation10], 4294965248  ;;  %v6714_v0 = vmov 0.0   ;;  %v105_v1 = vld [vmem:[#allocation3 + $0x78] sm:$0xff]  ;;  %v104_v2 = vld [vmem:[#allocation3 + $0x70] sm:$0xff]  ;;  %vm106_vm0 = vcmask 261120  }
  0x36   :  { %177 = vmatprep.mubr.f32.mxu0 %v6714_v0  ;;  %452 = vmatprep.mubr.f32.mxu1 %v6714_v0  ;;  %v103_v3 = vld [vmem:[#allocation3 + $0x68] sm:$0xff]  ;;  %v102_v4 = vld [vmem:[#allocation3 + $0x60] sm:$0xff]  ;;  %v101_v5 = vld [vmem:[#allocation3 + $0x58] sm:$0xff]  ;;  %vm5056_vm1 = vmmov 0   ;;  %vm4329_vm2 = vcmask 1040384   ;;  %s5057_s26 = smov [#allocation11]  }
  0x37   :  { %137 = vmatprep.subr.mxu0 %v105_v1  ;;  %v100_v6 = vld [vmem:[#allocation3 + $0x50] sm:$0xff]  ;;  %v99_v7 = vld [vmem:[#allocation3 + $0x48] sm:$0xff]  ;;  %v98_v8 = vld [vmem:[#allocation3 + $0x40] sm:$0xff]  ;;  %s4349_s27 = sshll.u32 %s5057_s26, 4  ;;  %s4350_s27 = int_to_ptr.vmem [resolvable:$true] %s4349_s27 }
  0x38   :  { %138 = vmatpush1.msra.mxu0 %v104_v2  ;;  %v95_v9 = vld [vmem:[%s6703_s0 + $0x1] sm:$0xff]  ;;  %v94_v10 = vld [vmem:[#allocation3 + $0x38] sm:$0xff]  ;;  %v93_v11 = vld [vmem:[#allocation3 + $0x30] sm:$0xff]  ;;  %s5020_s28 = scalar_lea.vmem %s4350_s27, 32  ;;  %p5021_p7 = scmp.lt.s32.totalorder %s4350_s27, %s4350_s27 }
  0x39   :  { %139 = vmatprep.subr.mxu0 %v103_v3  ;;  %v381_v12 = vld [vmem:[#allocation3 + $0xf8] sm:$0xff]  ;;  %v92_v13 = vld [vmem:[#allocation3 + $0x28] sm:$0xff]  ;;  %v380_v14 = vld [vmem:[#allocation3 + $0xf0] sm:$0xff] }
  0x3a   :  { %140 = vmatpush1.msra.mxu0 %v102_v4  ;;  %412 = vmatprep.subr.mxu1 %v381_v12  ;;  %v91_v15 = vld [vmem:[#allocation3 + $0x20] sm:$0xff]  ;;  %v379_v16 = vld [vmem:[#allocation3 + $0xe8] sm:$0xff]  ;;  %v90_v18 = vld [vmem:[#allocation3 + $0x18] sm:$0xff] }
  0x3b   :  { %141 = vmatprep.subr.mxu0 %v101_v5  ;;  %v96_v17 = vld [vmem:[%s6703_s0 + $0x9] sm:$0xff]  ;;  %413 = vmatpush1.msra.mxu1 %v380_v14  ;;  %v378_v21 = vld [vmem:[#allocation3 + $0xe0] sm:$0xff]  ;;  %v377_v23 = vld [vmem:[#allocation3 + $0xd8] sm:$0xff] }
  0x3c   :  { %142 = vmatpush1.msra.mxu0 %v100_v6  ;;  %v89_v19 = vld [vmem:[#allocation3 + $0x10] sm:$0xff]  ;;  %v88_v20 = vld [vmem:[#allocation3 + $0x8] sm:$0xff]  ;;  %414 = vmatprep.subr.mxu1 %v379_v16  ;;  %v87_v22 = vld [vmem:[#allocation3] sm:$0xff] }
  0x3d   :  { %143 = vmatprep.subr.mxu0 %v99_v7  ;;  %v85_v24 = vld [vmem:[%s6703_s0] sm:$0xff]  ;;  %v283_v25 = vld [vmem:[#allocation3 + $0xb8] sm:$0xff]  ;;  %v282_v26 = vld [vmem:[#allocation3 + $0xb0] sm:$0xff]  ;;  %415 = vmatpush1.msra.mxu1 %v378_v21 }
  0x3e   :  { %144 = vmatpush1.msra.mxu0 %v98_v8  ;;  %v281_v27 = vld [vmem:[#allocation3 + $0xa8] sm:$0xff]  ;;  %416 = vmatprep.subr.mxu1 %v377_v23  ;;  %v376_v28 = vld [vmem:[#allocation3 + $0xd0] sm:$0xff]  ;;  %v280_v29 = vld [vmem:[#allocation3 + $0xa0] sm:$0xff] }
  0x3f   :  { %4360 = vmatmul.mubr.msk.f32.vlgmr.msra.gmra.mxu0 %vm106_vm0, %v95_v9  ;;  %220 = vmatprep.subr.mxu0 %v94_v10  ;;  %v375_v30 = vld [vmem:[#allocation3 + $0xc8] sm:$0xff]  ;;  %v279_v32 = vld [vmem:[#allocation3 + $0x98] sm:$0xff]  ;;  %v278_v33 = vld [vmem:[#allocation3 + $0x90] sm:$0xff] }
  0x40   :  { %221 = vmatpush1.msra.mxu0 %v93_v11  ;;  %183 = vmatprep.mubr.f32.mxu0 %v6714_v0  ;;  %v86_v31 = vld [vmem:[%s6703_s0 + $0x8] sm:$0xff]  ;;  %v374_v35 = vld [vmem:[#allocation3 + $0xc0] sm:$0xff]  ;;  %v479_v39 = vld [vmem:[#allocation3 + $0x138] sm:$0xff] }
  0x41   :  { %222 = vmatprep.subr.mxu0 %v92_v13  ;;  %417 = vmatpush1.msra.mxu1 %v376_v28  ;;  %v277_v34 = vld [vmem:[#allocation3 + $0x88] sm:$0xff]  ;;  %v276_v36 = vld [vmem:[#allocation3 + $0x80] sm:$0xff]  ;;  %v478_v40 = vld [vmem:[#allocation3 + $0x130] sm:$0xff] }
  0x42   :  { %223 = vmatpush1.msra.mxu0 %v91_v15  ;;  %418 = vmatprep.subr.mxu1 %v375_v30  ;;  %v371_v37 = vld [vmem:[%s6703_s0 + $0x3] sm:$0xff]  ;;  %v372_v43 = vld [vmem:[%s6703_s0 + $0xb] sm:$0xff]  ;;  %v475_v45 = vld [vmem:[#allocation3 + $0x118] sm:$0xff] }
  0x43   :  { %4361 = vmatmul.mubr.msk.f32.gmra.mxu0 %vm106_vm0, %v96_v17  ;;  %224 = vmatprep.subr.mxu0 %v90_v18  ;;  %v273_v38 = vld [vmem:[%s6703_s0 + $0x2] sm:$0xff]  ;;  %v274_v44 = vld [vmem:[%s6703_s0 + $0xa] sm:$0xff]  ;;  %v650_v52 = vld [vmem:[#allocation6 + $0x1f8] sm:$0xff] }
  0x44   :  { %225 = vmatpush1.msra.mxu0 %v89_v19  ;;  %260 = vmatprep.mubr.f32.mxu0 %v6714_v0  ;;  %v477_v41 = vld [vmem:[#allocation3 + $0x128] sm:$0xff]  ;;  %v476_v42 = vld [vmem:[#allocation3 + $0x120] sm:$0xff]  ;;  %v474_v46 = vld [vmem:[#allocation3 + $0x110] sm:$0xff] }
  0x45   :  { %226 = vmatprep.subr.mxu0 %v88_v20  ;;  %419 = vmatpush1.msra.mxu1 %v374_v35  ;;  %v473_v47 = vld [vmem:[#allocation3 + $0x108] sm:$0xff]  ;;  %v472_v49 = vld [vmem:[#allocation3 + $0x100] sm:$0xff]  ;;  %v649_v53 = vld [vmem:[#allocation6 + $0x1f0] sm:$0xff] }
  0x46   :  { %227 = vmatpush1.msra.mxu0 %v87_v22  ;;  %4366 = vmatmul.mubr.msk.f32.vlgmr.msra.gmra.mxu1 %vm106_vm0, %v371_v37  ;;  %v648_v48 = vld [vmem:[#allocation6 + $0x1e8] sm:$0xff]  ;;  %v647_v50 = vld [vmem:[#allocation6 + $0x1e0] sm:$0xff]  ;;  %v646_v55 = vld [vmem:[#allocation6 + $0x1d8] sm:$0xff] }
  0x47   :  { %4362 = vmatmul.mubr.msk.f32.vlgmr.msra.gmra.mxu0 %vm106_vm0, %v85_v24  ;;  %314 = vmatprep.subr.mxu0 %v283_v25  ;;  %v469_v51 = vld [vmem:[%s6703_s0 + $0x4] sm:$0xff]  ;;  %v645_v57 = vld [vmem:[#allocation6 + $0x1d0] sm:$0xff]  ;;  %v642_v60 = vld [vmem:[#allocation6 + $0x1b8] sm:$0xff] }
  0x48   :  { %315 = vmatpush1.msra.mxu0 %v282_v26  ;;  %266 = vmatprep.mubr.f32.mxu0 %v6714_v0  ;;  %v644_v54 = vld [vmem:[#allocation6 + $0x1c8] sm:$0xff]  ;;  %v643_v56 = vld [vmem:[#allocation6 + $0x1c0] sm:$0xff]  ;;  %v641_v62 = vld [vmem:[#allocation6 + $0x1b0] sm:$0xff] }
  0x49   :  { %316 = vmatprep.subr.mxu0 %v281_v27  ;;  %458 = vmatprep.mubr.f32.mxu1 %v6714_v0  ;;  %v470_v58 = vld [vmem:[%s6703_s0 + $0xc] sm:$0xff]  ;;  %v639_v61 = vld [vmem:[#allocation6 + $0x1a0] sm:$0xff]  ;;  %v638_v1 = vld [vmem:[#allocation6 + $0x198] sm:$0xff] }
  0x4a   :  { %317 = vmatpush1.msra.mxu0 %v280_v29  ;;  %4367 = vmatmul.mubr.msk.f32.gmra.mxu1 %vm106_vm0, %v372_v43  ;;  %v640_v59 = vld [vmem:[#allocation6 + $0x1a8] sm:$0xff]  ;;  %v635_v2 = vld [vmem:[#allocation6 + $0x180] sm:$0xff]  ;;  %v637_v3 = vld [vmem:[#allocation6 + $0x190] sm:$0xff] }
  0x4b   :  { %4363 = vmatmul.mubr.msk.f32.gmra.mxu0 %vm106_vm0, %v86_v31  ;;  %318 = vmatprep.subr.mxu0 %v279_v32  ;;  %v636_v63 = vld [vmem:[#allocation6 + $0x188] sm:$0xff]  ;;  %v634_v5 = vld [vmem:[#allocation6 + $0x178] sm:$0xff]  ;;  %v631_v6 = vld [vmem:[#allocation6 + $0x160] sm:$0xff] }
  0x4c   :  { %319 = vmatpush1.msra.mxu0 %v278_v33  ;;  %354 = vmatprep.mubr.f32.mxu0 %v6714_v0  ;;  %v632_v4 = vld [vmem:[#allocation6 + $0x168] sm:$0xff]  ;;  %v633_v7 = vld [vmem:[#allocation6 + $0x170] sm:$0xff]  ;;  %v630_v9 = vld [vmem:[#allocation6 + $0x158] sm:$0xff] }
  0x4d   :  { %320 = vmatprep.subr.mxu0 %v277_v34  ;;  %737 = vmatprep.subr.mxu1 %v648_v48  ;;  %v628_v8 = vld [vmem:[#allocation6 + $0x148] sm:$0xff]  ;;  %v627_v10 = vld [vmem:[#allocation6 + $0x140] sm:$0xff]  ;;  %v629_v11 = vld [vmem:[#allocation6 + $0x150] sm:$0xff] }
  0x4e   :  { %321 = vmatpush1.msra.mxu0 %v276_v36  ;;  %738 = vmatpush1.msra.mxu1 %v647_v50  ;;  %v624_v12 = vld [vmem:[#allocation6 + $0x128] sm:$0xff]  ;;  %v626_v13 = vld [vmem:[#allocation6 + $0x138] sm:$0xff]  ;;  %v623_v14 = vld [vmem:[#allocation6 + $0x120] sm:$0xff] }
  0x4f   :  { %4364 = vmatmul.mubr.msk.f32.vlgmr.msra.gmra.mxu0 %vm106_vm0, %v273_v38  ;;  %510 = vmatprep.subr.mxu0 %v479_v39  ;;  %v625_v15 = vld [vmem:[#allocation6 + $0x130] sm:$0xff]  ;;  %v620_v16 = vld [vmem:[#allocation6 + $0x108] sm:$0xff]  ;;  %v622_v17 = vld [vmem:[#allocation6 + $0x118] sm:$0xff] }
  0x50   :  { %511 = vmatpush1.msra.mxu0 %v478_v40  ;;  %360 = vmatprep.mubr.f32.mxu0 %v6714_v0  ;;  %v619_v18 = vld [vmem:[#allocation6 + $0x100] sm:$0xff]  ;;  %v621_v19 = vld [vmem:[#allocation6 + $0x110] sm:$0xff]  ;;  %v616_v20 = vld [vmem:[#allocation6 + $0xe8] sm:$0xff] }
  0x51   :  { %512 = vmatprep.subr.mxu0 %v477_v41  ;;  %739 = vmatprep.subr.mxu1 %v644_v54  ;;  %v618_v21 = vld [vmem:[#allocation6 + $0xf8] sm:$0xff]  ;;  %v615_v22 = vld [vmem:[#allocation6 + $0xe0] sm:$0xff]  ;;  %v617_v23 = vld [vmem:[#allocation6 + $0xf0] sm:$0xff] }
  0x52   :  { %513 = vmatpush1.msra.mxu0 %v476_v42  ;;  %740 = vmatpush1.msra.mxu1 %v643_v56  ;;  %v612_v24 = vld [vmem:[#allocation6 + $0xc8] sm:$0xff]  ;;  %v614_v25 = vld [vmem:[#allocation6 + $0xd8] sm:$0xff]  ;;  %v611_v26 = vld [vmem:[#allocation6 + $0xc0] sm:$0xff] }
  0x53   :  { %4365 = vmatmul.mubr.msk.f32.gmra.mxu0 %vm106_vm0, %v274_v44  ;;  %514 = vmatprep.subr.mxu0 %v475_v45  ;;  %v613_v27 = vld [vmem:[#allocation6 + $0xd0] sm:$0xff]  ;;  %v608_v28 = vld [vmem:[#allocation6 + $0xa8] sm:$0xff]  ;;  %v610_v29 = vld [vmem:[#allocation6 + $0xb8] sm:$0xff] }
  0x54   :  { %515 = vmatpush1.msra.mxu0 %v474_v46  ;;  %550 = vmatprep.mubr.f32.mxu0 %v6714_v0  ;;  %v607_v30 = vld [vmem:[#allocation6 + $0xa0] sm:$0xff]  ;;  %v609_v31 = vld [vmem:[#allocation6 + $0xb0] sm:$0xff]  ;;  %v604_v32 = vld [vmem:[#allocation6 + $0x88] sm:$0xff] }
  0x55   :  { %516 = vmatprep.subr.mxu0 %v473_v47  ;;  %741 = vmatprep.subr.mxu1 %v640_v59  ;;  %v606_v33 = vld [vmem:[#allocation6 + $0x98] sm:$0xff]  ;;  %v603_v34 = vld [vmem:[#allocation6 + $0x80] sm:$0xff]  ;;  %v605_v35 = vld [vmem:[#allocation6 + $0x90] sm:$0xff] }
  0x56   :  { %517 = vmatpush1.msra.mxu0 %v472_v49  ;;  %742 = vmatpush1.msra.mxu1 %v639_v61  ;;  %v600_v36 = vld [vmem:[#allocation6 + $0x68] sm:$0xff]  ;;  %v602_v37 = vld [vmem:[#allocation6 + $0x78] sm:$0xff]  ;;  %v599_v38 = vld [vmem:[#allocation6 + $0x60] sm:$0xff] }
  0x57   :  { %4368 = vmatmul.mubr.msk.f32.vlgmr.msra.gmra.mxu0 %vm106_vm0, %v469_v51  ;;  %814 = vmatprep.subr.mxu0 %v650_v52  ;;  %v601_v39 = vld [vmem:[#allocation6 + $0x70] sm:$0xff]  ;;  %v596_v40 = vld [vmem:[#allocation6 + $0x48] sm:$0xff]  ;;  %v598_v41 = vld [vmem:[#allocation6 + $0x58] sm:$0xff] }
  0x58   :  { %556 = vmatprep.mubr.f32.mxu0 %v6714_v0  ;;  %815 = vmatpush1.msra.mxu0 %v649_v53  ;;  %v595_v42 = vld [vmem:[#allocation6 + $0x40] sm:$0xff]  ;;  %v597_v43 = vld [vmem:[#allocation6 + $0x50] sm:$0xff]  ;;  %v592_v44 = vld [vmem:[#allocation6 + $0x28] sm:$0xff] }
  0x59   :  { %816 = vmatprep.subr.mxu0 %v646_v55  ;;  %743 = vmatprep.subr.mxu1 %v636_v63  ;;  %v594_v45 = vld [vmem:[#allocation6 + $0x38] sm:$0xff]  ;;  %v591_v46 = vld [vmem:[#allocation6 + $0x20] sm:$0xff]  ;;  %v593_v47 = vld [vmem:[#allocation6 + $0x30] sm:$0xff] }
  0x5a   :  { %817 = vmatpush1.msra.mxu0 %v645_v57  ;;  %744 = vmatpush1.msra.mxu1 %v635_v2  ;;  %v588_v48 = vld [vmem:[#allocation6 + $0x8] sm:$0xff]  ;;  %v590_v49 = vld [vmem:[#allocation6 + $0x18] sm:$0xff]  ;;  %v587_v50 = vld [vmem:[#allocation6] sm:$0xff] }
  0x5b   :  { %4369 = vmatmul.mubr.msk.f32.gmra.mxu0 %vm106_vm0, %v470_v58  ;;  %818 = vmatprep.subr.mxu0 %v642_v60  ;;  %v589_v51 = vld [vmem:[#allocation6 + $0x10] sm:$0xff]  ;;  %v712_v52 = vld [vmem:[#allocation6 + $0x3e8] sm:$0xff]  ;;  %v714_v53 = vld [vmem:[#allocation6 + $0x3f8] sm:$0xff] }
  0x5c   :  { %819 = vmatpush1.msra.mxu0 %v641_v62  ;;  %745 = vmatprep.subr.mxu1 %v632_v4  ;;  %v711_v54 = vld [vmem:[#allocation6 + $0x3e0] sm:$0xff]  ;;  %v713_v55 = vld [vmem:[#allocation6 + $0x3f0] sm:$0xff]  ;;  %v708_v56 = vld [vmem:[#allocation6 + $0x3c8] sm:$0xff] }
  0x5d   :  { %820 = vmatprep.subr.mxu0 %v638_v1  ;;  %746 = vmatpush1.msra.mxu1 %v631_v6  ;;  %v710_v57 = vld [vmem:[#allocation6 + $0x3d8] sm:$0xff]  ;;  %v707_v58 = vld [vmem:[#allocation6 + $0x3c0] sm:$0xff]  ;;  %v709_v59 = vld [vmem:[#allocation6 + $0x3d0] sm:$0xff] }
  0x5e   :  { %821 = vmatpush1.msra.mxu0 %v637_v3  ;;  %747 = vmatprep.subr.mxu1 %v628_v8  ;;  %v704_v60 = vld [vmem:[#allocation6 + $0x3a8] sm:$0xff]  ;;  %v706_v61 = vld [vmem:[#allocation6 + $0x3b8] sm:$0xff]  ;;  %v703_v62 = vld [vmem:[#allocation6 + $0x3a0] sm:$0xff] }
  0x5f   :  { %822 = vmatprep.subr.mxu0 %v634_v5  ;;  %748 = vmatpush1.msra.mxu1 %v627_v10  ;;  %v705_v63 = vld [vmem:[#allocation6 + $0x3b0] sm:$0xff]  ;;  %v700_v1 = vld [vmem:[#allocation6 + $0x388] sm:$0xff]  ;;  %v702_v2 = vld [vmem:[#allocation6 + $0x398] sm:$0xff] }
  0x60   :  { %823 = vmatpush1.msra.mxu0 %v633_v7  ;;  %749 = vmatprep.subr.mxu1 %v624_v12  ;;  %v699_v3 = vld [vmem:[#allocation6 + $0x380] sm:$0xff]  ;;  %v701_v4 = vld [vmem:[#allocation6 + $0x390] sm:$0xff]  ;;  %v696_v5 = vld [vmem:[#allocation6 + $0x368] sm:$0xff] }
  0x61   :  { %824 = vmatprep.subr.mxu0 %v630_v9  ;;  %750 = vmatpush1.msra.mxu1 %v623_v14  ;;  %v698_v6 = vld [vmem:[#allocation6 + $0x378] sm:$0xff]  ;;  %v695_v7 = vld [vmem:[#allocation6 + $0x360] sm:$0xff]  ;;  %v697_v8 = vld [vmem:[#allocation6 + $0x370] sm:$0xff] }
  0x62   :  { %825 = vmatpush1.msra.mxu0 %v629_v11  ;;  %751 = vmatprep.subr.mxu1 %v620_v16  ;;  %v692_v9 = vld [vmem:[#allocation6 + $0x348] sm:$0xff]  ;;  %v694_v10 = vld [vmem:[#allocation6 + $0x358] sm:$0xff]  ;;  %v691_v11 = vld [vmem:[#allocation6 + $0x340] sm:$0xff] }
  0x63   :  { %826 = vmatprep.subr.mxu0 %v626_v13  ;;  %752 = vmatpush1.msra.mxu1 %v619_v18  ;;  %v693_v12 = vld [vmem:[#allocation6 + $0x350] sm:$0xff]  ;;  %v688_v13 = vld [vmem:[#allocation6 + $0x328] sm:$0xff]  ;;  %v690_v14 = vld [vmem:[#allocation6 + $0x338] sm:$0xff] }
  0x64   :  { %827 = vmatpush1.msra.mxu0 %v625_v15  ;;  %753 = vmatprep.subr.mxu1 %v616_v20  ;;  %v687_v15 = vld [vmem:[#allocation6 + $0x320] sm:$0xff]  ;;  %v689_v16 = vld [vmem:[#allocation6 + $0x330] sm:$0xff]  ;;  %v686_v18 = vld [vmem:[#allocation6 + $0x318] sm:$0xff] }
  0x65   :  { %828 = vmatprep.subr.mxu0 %v622_v17  ;;  %754 = vmatpush1.msra.mxu1 %v615_v22  ;;  %v684_v17 = vld [vmem:[#allocation6 + $0x308] sm:$0xff]  ;;  %v685_v20 = vld [vmem:[#allocation6 + $0x310] sm:$0xff]  ;;  %v682_v22 = vld [vmem:[#allocation6 + $0x2f8] sm:$0xff] }
  0x66   :  { %829 = vmatpush1.msra.mxu0 %v621_v19  ;;  %755 = vmatprep.subr.mxu1 %v612_v24  ;;  %v683_v19 = vld [vmem:[#allocation6 + $0x300] sm:$0xff]  ;;  %v681_v24 = vld [vmem:[#allocation6 + $0x2f0] sm:$0xff] }
  0x67   :  { %830 = vmatprep.subr.mxu0 %v618_v21  ;;  %756 = vmatpush1.msra.mxu1 %v611_v26  ;;  %v680_v21 = vld [vmem:[#allocation6 + $0x2e8] sm:$0xff]  ;;  %v678_v26 = vld [vmem:[#allocation6 + $0x2d8] sm:$0xff]  ;;  %v5364_v0 = vld [vmem:[#allocation8] sm:$0xff] }
  0x68   :  { %831 = vmatpush1.msra.mxu0 %v617_v23  ;;  %757 = vmatprep.subr.mxu1 %v608_v28  ;;  %v679_v23 = vld [vmem:[#allocation6 + $0x2e0] sm:$0xff]  ;;  %v677_v28 = vld [vmem:[#allocation6 + $0x2d0] sm:$0xff]  ;;  %6878 = vst [vmem:[#allocation37_spill] sm:$0xff] %v5364_v0 }
  0x69   :  { %832 = vmatprep.subr.mxu0 %v614_v25  ;;  %758 = vmatpush1.msra.mxu1 %v607_v30  ;;  %v676_v25 = vld [vmem:[#allocation6 + $0x2c8] sm:$0xff]  ;;  %v674_v30 = vld [vmem:[#allocation6 + $0x2b8] sm:$0xff] }
  0x6a   :  { %833 = vmatpush1.msra.mxu0 %v613_v27  ;;  %759 = vmatprep.subr.mxu1 %v604_v32  ;;  %v675_v27 = vld [vmem:[#allocation6 + $0x2c0] sm:$0xff]  ;;  %v673_v32 = vld [vmem:[#allocation6 + $0x2b0] sm:$0xff] }
  0x6b   :  { %834 = vmatprep.subr.mxu0 %v610_v29  ;;  %760 = vmatpush1.msra.mxu1 %v603_v34  ;;  %v672_v29 = vld [vmem:[#allocation6 + $0x2a8] sm:$0xff]  ;;  %v670_v34 = vld [vmem:[#allocation6 + $0x298] sm:$0xff] }
  0x6c   :  { %835 = vmatpush1.msra.mxu0 %v609_v31  ;;  %761 = vmatprep.subr.mxu1 %v600_v36  ;;  %v671_v31 = vld [vmem:[#allocation6 + $0x2a0] sm:$0xff]  ;;  %v669_v36 = vld [vmem:[#allocation6 + $0x290] sm:$0xff] }
  0x6d   :  { %836 = vmatprep.subr.mxu0 %v606_v33  ;;  %762 = vmatpush1.msra.mxu1 %v599_v38  ;;  %v668_v33 = vld [vmem:[#allocation6 + $0x288] sm:$0xff]  ;;  %v666_v38 = vld [vmem:[#allocation6 + $0x278] sm:$0xff] }
  0x6e   :  { %837 = vmatpush1.msra.mxu0 %v605_v35  ;;  %763 = vmatprep.subr.mxu1 %v596_v40  ;;  %v667_v35 = vld [vmem:[#allocation6 + $0x280] sm:$0xff]  ;;  %v665_v40 = vld [vmem:[#allocation6 + $0x270] sm:$0xff] }
  0x6f   :  { %838 = vmatprep.subr.mxu0 %v602_v37  ;;  %764 = vmatpush1.msra.mxu1 %v595_v42  ;;  %v664_v37 = vld [vmem:[#allocation6 + $0x268] sm:$0xff]  ;;  %v662_v42 = vld [vmem:[#allocation6 + $0x258] sm:$0xff] }
  0x70   :  { %839 = vmatpush1.msra.mxu0 %v601_v39  ;;  %765 = vmatprep.subr.mxu1 %v592_v44  ;;  %v663_v39 = vld [vmem:[#allocation6 + $0x260] sm:$0xff]  ;;  %v661_v44 = vld [vmem:[#allocation6 + $0x250] sm:$0xff] }
  0x71   :  { %840 = vmatprep.subr.mxu0 %v598_v41  ;;  %766 = vmatpush1.msra.mxu1 %v591_v46  ;;  %v660_v41 = vld [vmem:[#allocation6 + $0x248] sm:$0xff]  ;;  %v658_v46 = vld [vmem:[#allocation6 + $0x238] sm:$0xff] }
  0x72   :  { %841 = vmatpush1.msra.mxu0 %v597_v43  ;;  %767 = vmatprep.subr.mxu1 %v588_v48  ;;  %v659_v43 = vld [vmem:[#allocation6 + $0x240] sm:$0xff]  ;;  %v657_v48 = vld [vmem:[#allocation6 + $0x230] sm:$0xff] }
  0x73   :  { %842 = vmatprep.subr.mxu0 %v594_v45  ;;  %768 = vmatpush1.msra.mxu1 %v587_v50  ;;  %v656_v45 = vld [vmem:[#allocation6 + $0x228] sm:$0xff]  ;;  %v654_v50 = vld [vmem:[#allocation6 + $0x218] sm:$0xff] }
  0x74   :  { %843 = vmatpush1.msra.mxu0 %v593_v47  ;;  %769 = vmatprep.subr.mxu1 %v712_v52  ;;  %v655_v47 = vld [vmem:[#allocation6 + $0x220] sm:$0xff]  ;;  %v653_v52 = vld [vmem:[#allocation6 + $0x210] sm:$0xff] }
  0x75   :  { %844 = vmatprep.subr.mxu0 %v590_v49  ;;  %770 = vmatpush2.msra.mxu1 %v711_v54  ;;  %v652_v49 = vld [vmem:[#allocation6 + $0x208] sm:$0xff]  ;;  %v5173_v54 = vld [vmem:[#allocation8 + $0x1f8] sm:$0xff] }
  0x76   :  { %845 = vmatpush1.msra.mxu0 %v589_v51  ;;  %771 = vmatprep.subr.mxu1 %v708_v56  ;;  %v651_v51 = vld [vmem:[#allocation6 + $0x200] sm:$0xff]  ;;  %6858 = vst [vmem:[#allocation17_spill] sm:$0xff] %v5173_v54 }
  0x77   :  { %846 = vmatprep.subr.mxu0 %v714_v53  ;;  %772 = vmatpush2.msra.mxu1 %v707_v58  ;;  %v5171_v53 = vld [vmem:[#allocation8 + $0x1e8] sm:$0xff] }
  0x78   :  { %847 = vmatpush2.msra.mxu0 %v713_v55  ;;  %773 = vmatprep.subr.mxu1 %v704_v60  ;;  %6857 = vst [vmem:[#allocation16_spill] sm:$0xff] %v5171_v53 }
  0x79   :  { %848 = vmatprep.subr.mxu0 %v710_v57  ;;  %774 = vmatpush2.msra.mxu1 %v703_v62  ;;  %v569_v62 = vlaneseq }
  0x7a   :  { %849 = vmatpush2.msra.mxu0 %v709_v59  ;;  %775 = vmatprep.subr.mxu1 %v700_v1 }
  0x7b   :  { %850 = vmatprep.subr.mxu0 %v706_v61  ;;  %776 = vmatpush2.msra.mxu1 %v699_v3  ;;  %v5177_v3 = vshrl.u32 %v569_v62, 7  ;;  %v5234_v62 = vld [vmem:[#allocation8 + $0x170] sm:$0xff] }
  0x7c   :  { %851 = vmatpush2.msra.mxu0 %v705_v63  ;;  %777 = vmatprep.subr.mxu1 %v696_v5 }
  0x7d   :  { %852 = vmatprep.subr.mxu0 %v702_v2  ;;  %778 = vmatpush2.msra.mxu1 %v695_v7  ;;  %6859 = vst [vmem:[#allocation18_spill] sm:$0xff] %v5177_v3 }
  0x7e   :  { %853 = vmatpush2.msra.mxu0 %v701_v4  ;;  %779 = vmatprep.subr.mxu1 %v692_v9 }
  0x7f   :  { %854 = vmatprep.subr.mxu0 %v698_v6  ;;  %780 = vmatpush2.msra.mxu1 %v691_v11 }
  0x80   :  { %855 = vmatpush2.msra.mxu0 %v697_v8  ;;  %781 = vmatprep.subr.mxu1 %v688_v13  ;;  %v6712_v13 = vsub.s32 1, %v5177_v3 }
  0x81   :  { %856 = vmatprep.subr.mxu0 %v694_v10  ;;  %782 = vmatpush2.msra.mxu1 %v687_v15  ;;  %v6713_v10 = vsub.s32 0, %v5177_v3  ;;  %v5368_v3 = vld [vmem:[#allocation8 + $0x10] sm:$0xff] }
  0x82   :  { %857 = vmatpush2.msra.mxu0 %v693_v12  ;;  %783 = vmatprep.subr.mxu1 %v684_v17  ;;  %v567_v12 = vld [vmem:[%s6705_s2] sm:$0x3]  ;;  %6879 = vst [vmem:[#allocation38_spill] sm:$0xff] %v5368_v3 }
  0x83   :  { %858 = vmatprep.subr.mxu0 %v690_v14  ;;  %784 = vmatpush2.msra.mxu1 %v683_v19 }
  0x84   :  { %859 = vmatpush2.msra.mxu0 %v689_v16  ;;  %785 = vmatprep.subr.mxu1 %v680_v21  ;;  %v572_v21 = vrot.slane %v567_v12, %v6713_v10  ;;  %v5360_v10 = vld [vmem:[#allocation8 + $0x18] sm:$0xff] }
  0x85   :  { %860 = vmatprep.subr.mxu0 %v686_v18  ;;  %786 = vmatpush2.msra.mxu1 %v679_v23  ;;  %6877 = vst [vmem:[#allocation36_spill] sm:$0xff] %v5360_v10 }
  0x86   :  { %861 = vmatpush2.msra.mxu0 %v685_v20  ;;  %787 = vmatprep.subr.mxu1 %v676_v25  ;;  %v576_v25 = vrot.slane %v567_v12, %v6712_v13  ;;  %v5268_v12 = vld [vmem:[#allocation8 + $0x100] sm:$0xff]  ;;  %v5358_v13 = vld [vmem:[#allocation8 + $0x8] sm:$0xff] }
  0x87   :  { %862 = vmatprep.subr.mxu0 %v682_v22  ;;  %788 = vmatpush2.msra.mxu1 %v675_v27  ;;  %6876 = vst [vmem:[#allocation35_spill] sm:$0xff] %v5358_v13 }
  0x88   :  { %863 = vmatpush2.msra.mxu0 %v681_v24  ;;  %789 = vmatprep.subr.mxu1 %v672_v29 }
  0x89   :  { %864 = vmatprep.subr.mxu0 %v678_v26  ;;  %790 = vmatpush2.msra.mxu1 %v671_v31 }
  0x8a   :  { %865 = vmatpush2.msra.mxu0 %v677_v28  ;;  %791 = vmatprep.subr.mxu1 %v668_v33 }
  0x8b   :  { %866 = vmatprep.subr.mxu0 %v674_v30  ;;  %792 = vmatpush2.msra.mxu1 %v667_v35 }
  0x8c   :  { %867 = vmatpush2.msra.mxu0 %v673_v32  ;;  %793 = vmatprep.subr.mxu1 %v664_v37 }
  0x8d   :  { %868 = vmatprep.subr.mxu0 %v670_v34  ;;  %794 = vmatpush2.msra.mxu1 %v663_v39  ;;  %v5188_v39 = vld [vmem:[#allocation8 + $0x1e0] sm:$0xff] }
  0x8e   :  { %869 = vmatpush2.msra.mxu0 %v669_v36  ;;  %795 = vmatprep.subr.mxu1 %v660_v41 }
  0x8f   :  { %870 = vmatprep.subr.mxu0 %v666_v38  ;;  %796 = vmatpush2.msra.mxu1 %v659_v43  ;;  %v5194_v43 = vld [vmem:[#allocation8 + $0x1d8] sm:$0xff] }
  0x90   :  { %871 = vmatpush2.msra.mxu0 %v665_v40  ;;  %797 = vmatprep.subr.mxu1 %v656_v45  ;;  %v5190_v40 = vld [vmem:[#allocation8 + $0x1f0] sm:$0xff]  ;;  %v5196_v45 = vld [vmem:[#allocation8 + $0x1c0] sm:$0xff] }
  0x91   :  { %872 = vmatprep.subr.mxu0 %v662_v42  ;;  %798 = vmatpush2.msra.mxu1 %v655_v47  ;;  %v5192_v42 = vld [vmem:[#allocation8 + $0x1c8] sm:$0xff] }
  0x92   :  { %873 = vmatpush2.msra.mxu0 %v661_v44  ;;  %799 = vmatprep.subr.mxu1 %v652_v49  ;;  %v5206_v49 = vld [vmem:[#allocation8 + $0x1b8] sm:$0xff] }
  0x93   :  { %874 = vmatprep.subr.mxu0 %v658_v46  ;;  %800 = vmatpush2.msra.mxu1 %v651_v51  ;;  %v5198_v46 = vld [vmem:[#allocation8 + $0x1d0] sm:$0xff]  ;;  %v5210_v51 = vld [vmem:[#allocation8 + $0x1a0] sm:$0xff] }
  0x94   :  { %875 = vmatpush2.msra.mxu0 %v657_v48  ;;  %964 = vmatprep.subr.mxu1 %v5171_v53  ;;  %v5204_v48 = vld [vmem:[#allocation8 + $0x1a8] sm:$0xff] }
  0x95   :  { %876 = vmatprep.subr.mxu0 %v654_v50 }
  0x96   :  { %877 = vmatpush2.msra.mxu0 %v653_v52  ;;  %v5212_v52 = vld [vmem:[#allocation8 + $0x1b0] sm:$0xff] }
  0x97   :  { %1035 = vmatprep.subr.mxu0 %v5173_v54 }
  0xff   :  { %v179_v55 = vpop.f32.mrf.mxu0 }
 0x101   :  { %v181_v56 = vpop.f32.mrf.mxu0 }
 0x103   :  { %v185_v57 = vpop.f32.mrf.mxu0 }
 0x105   :  { %v187_v58 = vpop.f32.mrf.mxu0 }
 0x106   :  { %v454_v1 = vpop.f32.mrf.mxu1 }
 0x107   :  { %v262_v59 = vpop.f32.mrf.mxu0 }
 0x108   :  { %v263_v4 = vadd.f32 %v262_v59, %v179_v55  ;;  %v456_v6 = vpop.f32.mrf.mxu1  ;;  %v5216_v55 = vld [vmem:[#allocation8 + $0x188] sm:$0xff] }
 0x109   :  { %v264_v60 = vpop.f32.mrf.mxu0  ;;  %v5226_v59 = vld [vmem:[#allocation8 + $0x168] sm:$0xff] }
 0x10a   :  { %v265_v7 = vadd.f32 %v264_v60, %v181_v56  ;;  %v460_v16 = vpop.f32.mrf.mxu1  ;;  %v5218_v56 = vld [vmem:[#allocation8 + $0x198] sm:$0xff] }
 0x10b   :  { %v268_v61 = vpop.f32.mrf.mxu0  ;;  %v5228_v60 = vld [vmem:[#allocation8 + $0x178] sm:$0xff] }
 0x10c   :  { %v269_v14 = vadd.f32 %v268_v61, %v185_v57  ;;  %v462_v26 = vpop.f32.mrf.mxu1  ;;  %v5220_v57 = vld [vmem:[#allocation8 + $0x180] sm:$0xff] }
 0x10d   :  { %v270_v63 = vpop.f32.mrf.mxu0  ;;  %v5232_v61 = vld [vmem:[#allocation8 + $0x160] sm:$0xff] }
 0x10e   :  { %v271_v17 = vadd.f32 %v270_v63, %v187_v58  ;;  %v5222_v58 = vld [vmem:[#allocation8 + $0x190] sm:$0xff]  ;;  %v5238_v63 = vld [vmem:[#allocation8 + $0x148] sm:$0xff] }
 0x10f   :  { %v356_v2 = vpop.f32.mrf.mxu0 }
 0x110   :  { %v367_v8 = vadd.f32 %v356_v2, %v263_v4  ;;  %v5244_v2 = vld [vmem:[#allocation8 + $0x140] sm:$0xff]  ;;  %v5246_v4 = vld [vmem:[#allocation8 + $0x150] sm:$0xff] }
 0x111   :  { %v358_v5 = vpop.f32.mrf.mxu0 }
 0x112   :  { %v368_v11 = vadd.f32 %v358_v5, %v265_v7  ;;  %v465_v18 = vadd.f32 %v454_v1, %v367_v8  ;;  %v5240_v1 = vld [vmem:[#allocation8 + $0x158] sm:$0xff]  ;;  %v5250_v5 = vld [vmem:[#allocation8 + $0x128] sm:$0xff]  ;;  %v5256_v7 = vld [vmem:[#allocation8 + $0x120] sm:$0xff] }
 0x113   :  { %v362_v9 = vpop.f32.mrf.mxu0  ;;  %v5258_v8 = vld [vmem:[#allocation8 + $0x130] sm:$0xff] }
 0x114   :  { %v369_v19 = vadd.f32 %v362_v9, %v269_v14  ;;  %v466_v22 = vadd.f32 %v456_v6, %v368_v11  ;;  %v5252_v6 = vld [vmem:[#allocation8 + $0x138] sm:$0xff]  ;;  %v5262_v9 = vld [vmem:[#allocation8 + $0x108] sm:$0xff]  ;;  %v5270_v14 = vld [vmem:[#allocation8 + $0x110] sm:$0xff] }
 0x115   :  { %v364_v15 = vpop.f32.mrf.mxu0  ;;  %v5264_v11 = vld [vmem:[#allocation8 + $0x118] sm:$0xff] }
 0x116   :  { %v370_v23 = vadd.f32 %v364_v15, %v271_v17  ;;  %v467_v29 = vadd.f32 %v460_v16, %v369_v19  ;;  %v5274_v15 = vld [vmem:[#allocation8 + $0xe8] sm:$0xff]  ;;  %v5276_v16 = vld [vmem:[#allocation8 + $0xf8] sm:$0xff]  ;;  %v5280_v17 = vld [vmem:[#allocation8 + $0xe0] sm:$0xff] }
 0x117   :  { %v552_v20 = vpop.f32.mrf.mxu0  ;;  %v5286_v19 = vld [vmem:[#allocation8 + $0xc8] sm:$0xff] }
 0x118   :  { %v563_v24 = vadd.f32 %v552_v20, %v465_v18  ;;  %v468_v32 = vadd.f32 %v462_v26, %v370_v23  ;;  %v5282_v18 = vld [vmem:[#allocation8 + $0xf0] sm:$0xff]  ;;  %v5288_v20 = vld [vmem:[#allocation8 + $0xd8] sm:$0xff]  ;;  %v5298_v23 = vld [vmem:[#allocation8 + $0xa8] sm:$0xff] }
 0x119   :  { %v554_v27 = vpop.f32.mrf.mxu0  ;;  %v5306_v26 = vld [vmem:[#allocation8 + $0xb0] sm:$0xff] }
 0x11a   :  { %v564_v28 = vadd.f32 %v554_v27, %v466_v22  ;;  %v579_v30 = vadd.f32 %v572_v21, %v563_v24  ;;  %v5294_v22 = vld [vmem:[#allocation8 + $0xd0] sm:$0xff]  ;;  %v5300_v24 = vld [vmem:[#allocation8 + $0xb8] sm:$0xff]  ;;  %v5310_v27 = vld [vmem:[#allocation8 + $0x88] sm:$0xff] }
 0x11b   :  { %v558_v31 = vpop.f32.mrf.mxu0  ;;  %6860 = vst [vmem:[#allocation19_spill] sm:$0xff] %v5310_v27 }
 0x11c   :  { %v580_v33 = vadd.f32 %v576_v25, %v564_v28  ;;  %v565_v34 = vadd.f32 %v558_v31, %v467_v29  ;;  %v583_v38 = vmax.f32 %v579_v30, 0.0  ;;  %v5312_v28 = vld [vmem:[#allocation8 + $0x98] sm:$0xff]  ;;  %v5316_v29 = vld [vmem:[#allocation8 + $0x80] sm:$0xff]  ;;  %v5318_v30 = vld [vmem:[#allocation8 + $0x90] sm:$0xff] }
 0x11d   :  { %v560_v35 = vpop.f32.mrf.mxu0  ;;  %6861 = vst [vmem:[#allocation20_spill] sm:$0xff] %v5312_v28  ;;  %6862 = vst [vmem:[#allocation21_spill] sm:$0xff] %v5316_v29  ;;  %v5322_v31 = vld [vmem:[#allocation8 + $0x68] sm:$0xff] }
 0x11e   :  { %v584_v36 = vmax.f32 %v580_v33, 0.0  ;;  %v566_v37 = vadd.f32 %v560_v35, %v468_v32  ;;  %v581_v44 = vadd.f32 %v572_v21, %v565_v34  ;;  %v5292_v21 = vld [vmem:[#allocation8 + $0xc0] sm:$0xff]  ;;  %6863 = vst [vmem:[#allocation22_spill] sm:$0xff] %v5318_v30  ;;  %6864 = vst [vmem:[#allocation23_spill] sm:$0xff] %v5322_v31  ;;  %v5324_v32 = vld [vmem:[#allocation8 + $0x78] sm:$0xff] }
 0x11f   :  { %6865 = vst [vmem:[#allocation24_spill] sm:$0xff] %v5324_v32  ;;  %v5328_v33 = vld [vmem:[#allocation8 + $0x60] sm:$0xff]  ;;  %v5330_v34 = vld [vmem:[#allocation8 + $0x70] sm:$0xff]  ;;  %v5334_v35 = vld [vmem:[#allocation8 + $0x48] sm:$0xff] }
 0x120   :  { %v582_v41 = vadd.f32 %v576_v25, %v566_v37  ;;  %801 = vmatprep.mubr.f32.mxu1 %v584_v36  ;;  %878 = vmatprep.mubr.f32.mxu0 %v584_v36  ;;  %v585_v50 = vmax.f32 %v581_v44, 0.0  ;;  %v5304_v25 = vld [vmem:[#allocation8 + $0xa0] sm:$0xff]  ;;  %6866 = vst [vmem:[#allocation25_spill] sm:$0xff] %v5328_v33  ;;  %6867 = vst [vmem:[#allocation26_spill] sm:$0xff] %v5330_v34  ;;  %v5336_v36 = vld [vmem:[#allocation8 + $0x58] sm:$0xff] }
 0x121   :  { %802 = vmatmul.mubr.f32.vlgmr.msra.gmra.mxu1 %v583_v38  ;;  %879 = vmatmul.mubr.f32.vlgmr.msra.gmra.mxu0 %v583_v38  ;;  %6868 = vst [vmem:[#allocation27_spill] sm:$0xff] %v5334_v35  ;;  %6869 = vst [vmem:[#allocation28_spill] sm:$0xff] %v5336_v36  ;;  %v5340_v37 = vld [vmem:[#allocation8 + $0x40] sm:$0xff]  ;;  %v5342_v38 = vld [vmem:[#allocation8 + $0x50] sm:$0xff] }
 0x122   :  { %v586_v47 = vmax.f32 %v582_v41, 0.0  ;;  %965 = vmatpush1.msra.mxu1 %v5188_v39  ;;  %1036 = vmatpush1.msra.mxu0 %v5190_v40  ;;  %6870 = vst [vmem:[#allocation29_spill] sm:$0xff] %v5340_v37  ;;  %6871 = vst [vmem:[#allocation30_spill] sm:$0xff] %v5342_v38  ;;  %v5346_v41 = vld [vmem:[#allocation8 + $0x28] sm:$0xff]  ;;  %v5348_v44 = vld [vmem:[#allocation8 + $0x38] sm:$0xff] }
 0x123   :  { %966 = vmatprep.subr.mxu1 %v5192_v42  ;;  %1037 = vmatprep.subr.mxu0 %v5194_v43  ;;  %6872 = vst [vmem:[#allocation31_spill] sm:$0xff] %v5346_v41  ;;  %6873 = vst [vmem:[#allocation32_spill] sm:$0xff] %v5348_v44 }
 0x124   :  { %967 = vmatpush1.msra.mxu1 %v5196_v45  ;;  %1038 = vmatpush1.msra.mxu0 %v5198_v46 }
 0x125   :  { %807 = vmatprep.mubr.f32.mxu1 %v586_v47  ;;  %884 = vmatprep.mubr.f32.mxu0 %v586_v47  ;;  %v5352_v47 = vld [vmem:[#allocation8 + $0x20] sm:$0xff] }
 0x126   :  { %968 = vmatprep.subr.mxu1 %v5204_v48  ;;  %1039 = vmatprep.subr.mxu0 %v5206_v49  ;;  %6874 = vst [vmem:[#allocation33_spill] sm:$0xff] %v5352_v47 }
 0x127   :  { %808 = vmatmul.mubr.f32.gmra.mxu1 %v585_v50  ;;  %885 = vmatmul.mubr.f32.gmra.mxu0 %v585_v50  ;;  %v5354_v50 = vld [vmem:[#allocation8 + $0x30] sm:$0xff] }
 0x128   :  { %969 = vmatpush1.msra.mxu1 %v5210_v51  ;;  %1040 = vmatpush1.msra.mxu0 %v5212_v52  ;;  %6875 = vst [vmem:[#allocation34_spill] sm:$0xff] %v5354_v50 }
 0x129   :  { %970 = vmatprep.subr.mxu1 %v5216_v55  ;;  %1041 = vmatprep.subr.mxu0 %v5218_v56 }
 0x12a   :  { %971 = vmatpush1.msra.mxu1 %v5220_v57  ;;  %1042 = vmatpush1.msra.mxu0 %v5222_v58 }
 0x12b   :  { %972 = vmatprep.subr.mxu1 %v5226_v59  ;;  %1043 = vmatprep.subr.mxu0 %v5228_v60 }
 0x12c   :  { %973 = vmatpush1.msra.mxu1 %v5232_v61  ;;  %1044 = vmatpush1.msra.mxu0 %v5234_v62 }
 0x12d   :  { %974 = vmatprep.subr.mxu1 %v5238_v63  ;;  %1045 = vmatprep.subr.mxu0 %v5240_v1 }
 0x12e   :  { %975 = vmatpush1.msra.mxu1 %v5244_v2  ;;  %1046 = vmatpush1.msra.mxu0 %v5246_v4 }
 0x12f   :  { %976 = vmatprep.subr.mxu1 %v5250_v5  ;;  %1047 = vmatprep.subr.mxu0 %v5252_v6 }
 0x130   :  { %977 = vmatpush1.msra.mxu1 %v5256_v7  ;;  %1048 = vmatpush1.msra.mxu0 %v5258_v8 }
 0x131   :  { %978 = vmatprep.subr.mxu1 %v5262_v9  ;;  %1049 = vmatprep.subr.mxu0 %v5264_v11 }
 0x132   :  { %979 = vmatpush1.msra.mxu1 %v5268_v12  ;;  %1050 = vmatpush1.msra.mxu0 %v5270_v14 }
 0x133   :  { %980 = vmatprep.subr.mxu1 %v5274_v15  ;;  %1051 = vmatprep.subr.mxu0 %v5276_v16 }
 0x134   :  { %981 = vmatpush1.msra.mxu1 %v5280_v17  ;;  %1052 = vmatpush1.msra.mxu0 %v5282_v18 }
 0x135   :  { %982 = vmatprep.subr.mxu1 %v5286_v19  ;;  %1053 = vmatprep.subr.mxu0 %v5288_v20 }
 0x136   :  { %983 = vmatpush1.msra.mxu1 %v5292_v21  ;;  %1054 = vmatpush1.msra.mxu0 %v5294_v22 }
 0x137   :  { %984 = vmatprep.subr.mxu1 %v5298_v23  ;;  %1055 = vmatprep.subr.mxu0 %v5300_v24 }
 0x138   :  { %985 = vmatpush1.msra.mxu1 %v5304_v25  ;;  %1056 = vmatpush1.msra.mxu0 %v5306_v26 }
 0x139   :  { %986 = vmatprep.subr.mxu1 %v5310_v27  ;;  %1057 = vmatprep.subr.mxu0 %v5312_v28 }
 0x13a   :  { %987 = vmatpush1.msra.mxu1 %v5316_v29  ;;  %1058 = vmatpush1.msra.mxu0 %v5318_v30 }
 0x13b   :  { %988 = vmatprep.subr.mxu1 %v5322_v31  ;;  %1059 = vmatprep.subr.mxu0 %v5324_v32 }
 0x13c   :  { %989 = vmatpush1.msra.mxu1 %v5328_v33  ;;  %1060 = vmatpush1.msra.mxu0 %v5330_v34 }
 0x13d   :  { %990 = vmatprep.subr.mxu1 %v5334_v35  ;;  %1061 = vmatprep.subr.mxu0 %v5336_v36 }
 0x13e   :  { %991 = vmatpush1.msra.mxu1 %v5340_v37  ;;  %1062 = vmatpush1.msra.mxu0 %v5342_v38  ;;  %v6880_v38 = vmov 0.0  }
 0x13f   :  { %992 = vmatprep.subr.mxu1 %v5346_v41  ;;  %1063 = vmatprep.subr.mxu0 %v5348_v44 }
 0x140   :  { %993 = vmatpush1.msra.mxu1 %v5352_v47  ;;  %1064 = vmatpush1.msra.mxu0 %v5354_v50 }
 0x141   :  { %994 = vmatprep.subr.mxu1 %v5358_v13  ;;  %1065 = vmatprep.subr.mxu0 %v5360_v10 }
 0x142   :  { %995 = vmatpush1.msra.mxu1 %v5364_v0  ;;  %1028 = vmatprep.mubr.f32.mxu1 %v6880_v38 }
 0x143   :  { %1066 = vmatpush1.msra.mxu0 %v5368_v3  ;;  %1099 = vmatprep.mubr.f32.mxu0 %v6880_v38 }
 0x144   :  { %1029 = vmatmul.mubr.f32.vlgmr.msra.gmra.mxu1 %v6880_v38  ;;  %1100 = vmatmul.mubr.f32.vlgmr.msra.gmra.mxu0 %v6880_v38 }
 0x145   :  { %1169 = vmatprep.subr.mxu1 %v5171_v53  ;;  %1240 = vmatprep.subr.mxu0 %v5173_v54 }
 0x146   :  { %1170 = vmatpush1.msra.mxu1 %v5188_v39  ;;  %1241 = vmatpush1.msra.mxu0 %v5190_v40 }
 0x147   :  { %1171 = vmatprep.subr.mxu1 %v5192_v42  ;;  %1242 = vmatprep.subr.mxu0 %v5194_v43 }
 0x148   :  { %1172 = vmatpush1.msra.mxu1 %v5196_v45  ;;  %1243 = vmatpush1.msra.mxu0 %v5198_v46 }
 0x149   :  { %1173 = vmatprep.subr.mxu1 %v5204_v48  ;;  %1244 = vmatprep.subr.mxu0 %v5206_v49 }
 0x14a   :  { %1174 = vmatpush1.msra.mxu1 %v5210_v51  ;;  %1245 = vmatpush1.msra.mxu0 %v5212_v52 }
 0x14b   :  { %1175 = vmatprep.subr.mxu1 %v5216_v55  ;;  %1246 = vmatprep.subr.mxu0 %v5218_v56 }
 0x14c   :  { %1176 = vmatpush1.msra.mxu1 %v5220_v57  ;;  %1247 = vmatpush1.msra.mxu0 %v5222_v58 }
 0x14d   :  { %1177 = vmatprep.subr.mxu1 %v5226_v59  ;;  %1248 = vmatprep.subr.mxu0 %v5228_v60 }
 0x14e   :  { %1178 = vmatpush1.msra.mxu1 %v5232_v61  ;;  %1249 = vmatpush1.msra.mxu0 %v5234_v62 }
 0x14f   :  { %1179 = vmatprep.subr.mxu1 %v5238_v63  ;;  %1250 = vmatprep.subr.mxu0 %v5240_v1 }
 0x150   :  { %1180 = vmatpush1.msra.mxu1 %v5244_v2  ;;  %1251 = vmatpush1.msra.mxu0 %v5246_v4 }
 0x151   :  { %1181 = vmatprep.subr.mxu1 %v5250_v5  ;;  %1252 = vmatprep.subr.mxu0 %v5252_v6 }
 0x152   :  { %1182 = vmatpush1.msra.mxu1 %v5256_v7  ;;  %1253 = vmatpush1.msra.mxu0 %v5258_v8 }
 0x153   :  { %1183 = vmatprep.subr.mxu1 %v5262_v9  ;;  %1254 = vmatprep.subr.mxu0 %v5264_v11 }
 0x154   :  { %1184 = vmatpush1.msra.mxu1 %v5268_v12  ;;  %1255 = vmatpush1.msra.mxu0 %v5270_v14 }
 0x155   :  { %1185 = vmatprep.subr.mxu1 %v5274_v15  ;;  %1256 = vmatprep.subr.mxu0 %v5276_v16 }
 0x156   :  { %1186 = vmatpush1.msra.mxu1 %v5280_v17  ;;  %1257 = vmatpush1.msra.mxu0 %v5282_v18 }
 0x157   :  { %1187 = vmatprep.subr.mxu1 %v5286_v19  ;;  %1258 = vmatprep.subr.mxu0 %v5288_v20 }
 0x158   :  { %1188 = vmatpush1.msra.mxu1 %v5292_v21  ;;  %1259 = vmatpush1.msra.mxu0 %v5294_v22 }
 0x159   :  { %1189 = vmatprep.subr.mxu1 %v5298_v23  ;;  %1260 = vmatprep.subr.mxu0 %v5300_v24 }
 0x15a   :  { %1190 = vmatpush1.msra.mxu1 %v5304_v25  ;;  %1261 = vmatpush1.msra.mxu0 %v5306_v26 }
 0x15b   :  { %1191 = vmatprep.subr.mxu1 %v5310_v27  ;;  %1262 = vmatprep.subr.mxu0 %v5312_v28  ;;  %v6881_v27 = vld [vmem:[#allocation30_spill] sm:$0xff] }
 0x15c   :  { %1192 = vmatpush1.msra.mxu1 %v5316_v29  ;;  %1263 = vmatpush1.msra.mxu0 %v5318_v30 }
 0x15d   :  { %1193 = vmatprep.subr.mxu1 %v5322_v31  ;;  %1264 = vmatprep.subr.mxu0 %v5324_v32 }
 0x15e   :  { %1194 = vmatpush1.msra.mxu1 %v5328_v33  ;;  %1265 = vmatpush1.msra.mxu0 %v5330_v34 }
 0x15f   :  { %1195 = vmatprep.subr.mxu1 %v5334_v35  ;;  %1266 = vmatprep.subr.mxu0 %v5336_v36 }
 0x160   :  { %1196 = vmatpush1.msra.mxu1 %v5340_v37  ;;  %1267 = vmatpush1.msra.mxu0 %v6881_v27 }
 0x161   :  { %1197 = vmatprep.subr.mxu1 %v5346_v41  ;;  %1268 = vmatprep.subr.mxu0 %v5348_v44  ;;  %v6882_v44 = vld [vmem:[#allocation18_spill] sm:$0xff] }
 0x162   :  { %1198 = vmatpush1.msra.mxu1 %v5352_v47  ;;  %1269 = vmatpush1.msra.mxu0 %v5354_v50  ;;  %v727_v47 = vsub.s32 2, %v6882_v44 }
 0x163   :  { %1199 = vmatprep.subr.mxu1 %v5358_v13  ;;  %1270 = vmatprep.subr.mxu0 %v5360_v10  ;;  %v715_v13 = vld [vmem:[%s6707_s4] sm:$0xf]  ;;  %v731_v10 = vsub.s32 3, %v6882_v44 }
 0x164   :  { %1200 = vmatpush1.msra.mxu1 %v5364_v0  ;;  %1233 = vmatprep.mubr.f32.mxu1 %v6880_v38  ;;  %v6883_v0 = vsub.s32 0, %v6882_v44  ;;  %v728_v41 = vrot.slane %v715_v13, %v727_v47 }
 0x165   :  { %1271 = vmatpush1.msra.mxu0 %v5368_v3  ;;  %1304 = vmatprep.mubr.f32.mxu0 %v6880_v38  ;;  %v6884_v3 = vsub.s32 1, %v6882_v44  ;;  %v732_v38 = vrot.slane %v715_v13, %v731_v10 }
 0x166   :  { %1374 = vmatprep.subr.mxu1 %v5171_v53  ;;  %1445 = vmatprep.subr.mxu0 %v5173_v54  ;;  %v720_v50 = vrot.slane %v715_v13, %v6883_v0 }
 0x167   :  { %v724_v27 = vrot.slane %v715_v13, %v6884_v3 }
 0x1e1   :  { %v803_v37 = vpop.f32.mrf.mxu1  ;;  %v880_v53 = vpop.f32.mrf.mxu0 }
 0x1e2   :  { %v804_v36 = vadd.f32 %v803_v37, %v720_v50  ;;  %v881_v54 = vadd.f32 %v880_v53, %v728_v41  ;;  %v5055_v53 = vmov 1966171168  }
 0x1e3   :  { %v805_v35 = vpop.f32.mrf.mxu1  ;;  %v882_v34 = vpop.f32.mrf.mxu0  ;;  %v1113_v13 = vunpack.c.l.s4 %v5055_v53 }
 0x1e4   :  { %891 = vst [vmem:[#allocation2] sm:$0xff] %v804_v36  ;;  %893 = vst [vmem:[#allocation2 + $0x10] sm:$0xff] %v881_v54  ;;  %v806_v33 = vadd.f32 %v805_v35, %v724_v27  ;;  %v883_v32 = vadd.f32 %v882_v34, %v732_v38 }
 0x1e5   :  { %v1114_v36 = vunpack.c.0.s8 %v1113_v13 }
 0x1e6   :  { %892 = vst [vmem:[#allocation2 + $0x8] sm:$0xff] %v806_v33  ;;  %894 = vst [vmem:[#allocation2 + $0x18] sm:$0xff] %v883_v32 }
 0x1e7   :  { %v809_v31 = vpop.f32.mrf.mxu1  ;;  %v886_v30 = vpop.f32.mrf.mxu0  ;;  %v5456_v33 = vsub.s32 %v1114_v36, %v6882_v44 }
 0x1e8   :  { %v810_v0 = vadd.f32 %v809_v31, %v720_v50  ;;  %v887_v47 = vadd.f32 %v886_v30, %v728_v41 }
 0x1e9   :  { %v811_v29 = vpop.f32.mrf.mxu1  ;;  %v888_v28 = vpop.f32.mrf.mxu0 }
 0x1ea   :  { %895 = vst [vmem:[#allocation2 + $0x20] sm:$0xff] %v810_v0  ;;  %897 = vst [vmem:[#allocation2 + $0x30] sm:$0xff] %v887_v47  ;;  %v812_v3 = vadd.f32 %v811_v29, %v724_v27  ;;  %v889_v10 = vadd.f32 %v888_v28, %v732_v38 }
 0x1ec   :  { %896 = vst [vmem:[#allocation2 + $0x28] sm:$0xff] %v812_v3  ;;  %898 = vst [vmem:[#allocation2 + $0x38] sm:$0xff] %v889_v10 }
 0x1ed   :  { %v899_v29 = vld [vmem:[#allocation2] ss:$8 sm:$0xf] }
 0x204   :  { %v1030_v54 = vpop.f32.mrf.mxu1  ;;  %v1101_v35 = vpop.f32.mrf.mxu0 }
 0x206   :  { %v1032_v32 = vpop.f32.mrf.mxu1  ;;  %v1103_v34 = vpop.f32.mrf.mxu0 }
 0x207   :  { %v1110_v31 = vcombine.low %v1030_v54, %v1032_v32  ;;  %v1111_v30 = vcombine.low %v1101_v35, %v1103_v34 }
 0x209   :  { %v1118_v37 = vrot.slane %v1110_v31, %v5456_v33  ;;  %v1125_v41 = vrot.slane %v1111_v30, %v5456_v33 }
 0x20b   :  { %v1126_v27 = vcombine.low %v1118_v37, %v1125_v41 }
 0x20d   :  { %v1133_v28 = vrot.slane %v1126_v27, %v5456_v33 }
 0x20f   :  { %v1135_v38 = vadd.f32 %v1133_v28, %v899_v29 }
 0x211   :  { %v4370_v50 = vmul.f32 -1.442695, %v1135_v38  ;;  %v1143_v0 = vrot.slane %v1135_v38, 1  ;;  %v1154_v44 = vrot.slane %v1135_v38, 3  ;;  %v1151_v53 = vrot.slane %v1135_v38, 2 }
 0x213   :  { %4484 = vpow2.f32 %v4370_v50  ;;  %v4371_v47 = vmul.f32 -1.442695, %v1143_v0  ;;  %v4372_v3 = vmul.f32 -1.442695, %v1154_v44  ;;  %v6885_v50 = vld [vmem:[#allocation19_spill] sm:$0xff]  ;;  %v6886_v0 = vld [vmem:[#allocation20_spill] sm:$0xff] }
 0x214   :  { %v6888_v44 = vld [vmem:[#allocation22_spill] sm:$0xff] }
 0x215   :  { %4486 = vpow2.f32 %v4371_v47  ;;  %v6887_v47 = vld [vmem:[#allocation21_spill] sm:$0xff] }
 0x216   :  { %4488 = vpow2.f32 %v4372_v3  ;;  %v6889_v3 = vld [vmem:[#allocation23_spill] sm:$0xff] }
 0x220   :  { %v4485_v10 = vpop.eup %4484 }
 0x221   :  { %v1139_v13 = vadd.f32 1.0, %v4485_v10  ;;  %v6890_v10 = vld [vmem:[#allocation24_spill] sm:$0xff] }
 0x222   :  { %v4487_v36 = vpop.eup %4486 }
 0x223   :  { %4490 = vrcp.f32 %v1139_v13  ;;  %v1148_v54 = vadd.f32 1.0, %v4487_v36  ;;  %v4489_v35 = vpop.eup %4488  ;;  %v6892_v13 = vld [vmem:[#allocation26_spill] sm:$0xff]  ;;  %v6893_v36 = vld [vmem:[#allocation27_spill] sm:$0xff] }
 0x224   :  { %4492 = vtanh.f32 %v1151_v53  ;;  %v1159_v30 = vadd.f32 1.0, %v4489_v35  ;;  %v6891_v53 = vld [vmem:[#allocation25_spill] sm:$0xff] }
 0x225   :  { %4494 = vrcp.f32 %v1148_v54  ;;  %v6894_v54 = vld [vmem:[#allocation28_spill] sm:$0xff]  ;;  %v6895_v35 = vld [vmem:[#allocation29_spill] sm:$0xff] }
 0x226   :  { %4496 = vrcp.f32 %v1159_v30  ;;  %v6899_v30 = vld [vmem:[#allocation33_spill] sm:$0xff] }
 0x230   :  { %v4491_v32 = vpop.eup %4490 }
 0x231   :  { %v4493_v34 = vpop.eup %4492 }
 0x232   :  { %v4495_v31 = vpop.eup %4494  ;;  %v1163_v41 = vmul.f32 %v4493_v34, %v4491_v32  ;;  %v6896_v32 = vld [vmem:[#allocation30_spill] sm:$0xff]  ;;  %v6897_v34 = vld [vmem:[#allocation31_spill] sm:$0xff] }
 0x233   :  { %v1162_v37 = vmul.f32 0.0, %v4495_v31  ;;  %v4497_v28 = vpop.eup %4496  ;;  %v6898_v31 = vld [vmem:[#allocation32_spill] sm:$0xff] }
 0x235   :  { %v5461_v27 = vadd.f32 %v1163_v41, %v1162_v37  ;;  %v6900_v37 = vld [vmem:[#allocation34_spill] sm:$0xff]  ;;  %v6901_v41 = vld [vmem:[#allocation35_spill] sm:$0xff] }
 0x237   :  { %4498 = vtanh.f32 %v5461_v27 }
 0x244   :  { %v4499_v29 = vpop.eup %4498 }
 0x245   :  { %v1166_v38 = vmul.f32 %v4499_v29, %v4497_v28  ;;  %v6902_v28 = vld [vmem:[#allocation36_spill] sm:$0xff]  ;;  %v6903_v29 = vld [vmem:[#allocation37_spill] sm:$0xff] }
 0x247   :  { %1234 = vmatmul.mubr.f32.vlgmr.msra.gmra.mxu1 %v1166_v38  ;;  %1305 = vmatmul.mubr.f32.vlgmr.msra.gmra.mxu0 %v1166_v38  ;;  %v6904_v38 = vmov 0.0  }
 0x248   :  { %1375 = vmatpush1.msra.mxu1 %v5188_v39  ;;  %1446 = vmatpush1.msra.mxu0 %v5190_v40 }
 0x249   :  { %1376 = vmatprep.subr.mxu1 %v5192_v42  ;;  %1447 = vmatprep.subr.mxu0 %v5194_v43 }
 0x24a   :  { %1377 = vmatpush1.msra.mxu1 %v5196_v45  ;;  %1448 = vmatpush1.msra.mxu0 %v5198_v46 }
 0x24b   :  { %1378 = vmatprep.subr.mxu1 %v5204_v48  ;;  %1449 = vmatprep.subr.mxu0 %v5206_v49 }
 0x24c   :  { %1379 = vmatpush1.msra.mxu1 %v5210_v51  ;;  %1450 = vmatpush1.msra.mxu0 %v5212_v52 }
 0x24d   :  { %1380 = vmatprep.subr.mxu1 %v5216_v55  ;;  %1451 = vmatprep.subr.mxu0 %v5218_v56 }
 0x24e   :  { %1381 = vmatpush1.msra.mxu1 %v5220_v57  ;;  %1452 = vmatpush1.msra.mxu0 %v5222_v58 }
 0x24f   :  { %1382 = vmatprep.subr.mxu1 %v5226_v59  ;;  %1453 = vmatprep.subr.mxu0 %v5228_v60 }
 0x250   :  { %1383 = vmatpush1.msra.mxu1 %v5232_v61  ;;  %1454 = vmatpush1.msra.mxu0 %v5234_v62 }
 0x251   :  { %1384 = vmatprep.subr.mxu1 %v5238_v63  ;;  %1455 = vmatprep.subr.mxu0 %v5240_v1 }
 0x252   :  { %1385 = vmatpush1.msra.mxu1 %v5244_v2  ;;  %1456 = vmatpush1.msra.mxu0 %v5246_v4 }
 0x253   :  { %1386 = vmatprep.subr.mxu1 %v5250_v5  ;;  %1457 = vmatprep.subr.mxu0 %v5252_v6 }
 0x254   :  { %1387 = vmatpush1.msra.mxu1 %v5256_v7  ;;  %1458 = vmatpush1.msra.mxu0 %v5258_v8 }
 0x255   :  { %1388 = vmatprep.subr.mxu1 %v5262_v9  ;;  %1459 = vmatprep.subr.mxu0 %v5264_v11 }
 0x256   :  { %1389 = vmatpush1.msra.mxu1 %v5268_v12  ;;  %1460 = vmatpush1.msra.mxu0 %v5270_v14 }
 0x257   :  { %1390 = vmatprep.subr.mxu1 %v5274_v15  ;;  %1461 = vmatprep.subr.mxu0 %v5276_v16 }
 0x258   :  { %1391 = vmatpush1.msra.mxu1 %v5280_v17  ;;  %1462 = vmatpush1.msra.mxu0 %v5282_v18 }
 0x259   :  { %1392 = vmatprep.subr.mxu1 %v5286_v19  ;;  %1463 = vmatprep.subr.mxu0 %v5288_v20 }
 0x25a   :  { %1393 = vmatpush1.msra.mxu1 %v5292_v21  ;;  %1464 = vmatpush1.msra.mxu0 %v5294_v22 }
 0x25b   :  { %1394 = vmatprep.subr.mxu1 %v5298_v23  ;;  %1465 = vmatprep.subr.mxu0 %v5300_v24 }
 0x25c   :  { %1395 = vmatpush1.msra.mxu1 %v5304_v25  ;;  %1466 = vmatpush1.msra.mxu0 %v5306_v26 }
 0x25d   :  { %1396 = vmatprep.subr.mxu1 %v6885_v50  ;;  %1467 = vmatprep.subr.mxu0 %v6886_v0 }
 0x25e   :  { %1397 = vmatpush1.msra.mxu1 %v6887_v47  ;;  %1468 = vmatpush1.msra.mxu0 %v6888_v44 }
 0x25f   :  { %1398 = vmatprep.subr.mxu1 %v6889_v3  ;;  %1469 = vmatprep.subr.mxu0 %v6890_v10 }
 0x260   :  { %1399 = vmatpush1.msra.mxu1 %v6891_v53  ;;  %1470 = vmatpush1.msra.mxu0 %v6892_v13 }
 0x261   :  { %1400 = vmatprep.subr.mxu1 %v6893_v36  ;;  %1471 = vmatprep.subr.mxu0 %v6894_v54  ;;  %v6905_v54 = vld [vmem:[#allocation38_spill] sm:$0xff] }
 0x262   :  { %1401 = vmatpush1.msra.mxu1 %v6895_v35  ;;  %1472 = vmatpush1.msra.mxu0 %v6896_v32  ;;  %v6906_v32 = vld [vmem:[#allocation16_spill] sm:$0xff] }
 0x263   :  { %1402 = vmatprep.subr.mxu1 %v6897_v34  ;;  %1473 = vmatprep.subr.mxu0 %v6898_v31  ;;  %v6907_v34 = vld [vmem:[#allocation17_spill] sm:$0xff] }
 0x264   :  { %1403 = vmatpush1.msra.mxu1 %v6899_v30  ;;  %1474 = vmatpush1.msra.mxu0 %v6900_v37 }
 0x265   :  { %1404 = vmatprep.subr.mxu1 %v6901_v41  ;;  %1475 = vmatprep.subr.mxu0 %v6902_v28 }
 0x266   :  { %1405 = vmatpush1.msra.mxu1 %v6903_v29  ;;  %1438 = vmatprep.mubr.f32.mxu1 %v6904_v38 }
 0x267   :  { %1476 = vmatpush1.msra.mxu0 %v6905_v54  ;;  %1509 = vmatprep.mubr.f32.mxu0 %v6904_v38  ;;  %v1168_v54 = vld [vmem:[#allocation2 + $0x1] ss:$8 sm:$0xf] }
 0x268   :  { %1579 = vmatprep.subr.mxu1 %v6906_v32  ;;  %1650 = vmatprep.subr.mxu0 %v6907_v34 }
 0x307   :  { %v1235_v31 = vpop.f32.mrf.mxu1  ;;  %v1306_v30 = vpop.f32.mrf.mxu0 }
 0x309   :  { %v1237_v35 = vpop.f32.mrf.mxu1  ;;  %v1308_v37 = vpop.f32.mrf.mxu0 }
 0x30a   :  { %v1315_v36 = vcombine.low %v1235_v31, %v1237_v35  ;;  %v1316_v41 = vcombine.low %v1306_v30, %v1308_v37 }
 0x30c   :  { %v1323_v28 = vrot.slane %v1315_v36, %v5456_v33  ;;  %v1330_v29 = vrot.slane %v1316_v41, %v5456_v33 }
 0x30e   :  { %v1331_v13 = vcombine.low %v1323_v28, %v1330_v29  ;;  %v6911_v28 = vld [vmem:[#allocation23_spill] sm:$0xff]  ;;  %v6912_v29 = vld [vmem:[#allocation24_spill] sm:$0xff] }
 0x310   :  { %v1338_v53 = vrot.slane %v1331_v13, %v5456_v33 }
 0x312   :  { %v1340_v10 = vadd.f32 %v1338_v53, %v1168_v54 }
 0x314   :  { %v4373_v38 = vmul.f32 -1.442695, %v1340_v10  ;;  %v1348_v3 = vrot.slane %v1340_v10, 1  ;;  %v1359_v34 = vrot.slane %v1340_v10, 3  ;;  %v1356_v0 = vrot.slane %v1340_v10, 2 }
 0x316   :  { %4500 = vpow2.f32 %v4373_v38  ;;  %v4374_v32 = vmul.f32 -1.442695, %v1348_v3  ;;  %v4375_v44 = vmul.f32 -1.442695, %v1359_v34  ;;  %v6910_v34 = vld [vmem:[#allocation22_spill] sm:$0xff]  ;;  %v6913_v38 = vld [vmem:[#allocation25_spill] sm:$0xff] }
 0x318   :  { %4502 = vpow2.f32 %v4374_v32 }
 0x319   :  { %4504 = vpow2.f32 %v4375_v44 }
 0x323   :  { %v4501_v47 = vpop.eup %4500 }
 0x324   :  { %v1344_v35 = vadd.f32 1.0, %v4501_v47 }
 0x325   :  { %v4503_v31 = vpop.eup %4502 }
 0x326   :  { %4506 = vrcp.f32 %v1344_v35  ;;  %v1353_v36 = vadd.f32 1.0, %v4503_v31  ;;  %v4505_v30 = vpop.eup %4504  ;;  %v6914_v35 = vld [vmem:[#allocation26_spill] sm:$0xff]  ;;  %v6915_v31 = vld [vmem:[#allocation27_spill] sm:$0xff] }
 0x327   :  { %4508 = vtanh.f32 %v1356_v0  ;;  %v1364_v54 = vadd.f32 1.0, %v4505_v30  ;;  %v6909_v0 = vld [vmem:[#allocation21_spill] sm:$0xff] }
 0x328   :  { %4510 = vrcp.f32 %v1353_v36  ;;  %v6916_v36 = vld [vmem:[#allocation28_spill] sm:$0xff]  ;;  %v6917_v30 = vld [vmem:[#allocation29_spill] sm:$0xff] }
 0x329   :  { %4512 = vrcp.f32 %v1364_v54  ;;  %v6921_v54 = vld [vmem:[#allocation33_spill] sm:$0xff] }
 0x333   :  { %v4507_v13 = vpop.eup %4506 }
 0x334   :  { %v4509_v37 = vpop.eup %4508 }
 0x335   :  { %v4511_v53 = vpop.eup %4510  ;;  %v1368_v3 = vmul.f32 %v4509_v37, %v4507_v13  ;;  %v6918_v13 = vld [vmem:[#allocation30_spill] sm:$0xff]  ;;  %v6919_v37 = vld [vmem:[#allocation31_spill] sm:$0xff] }
 0x336   :  { %v1367_v41 = vmul.f32 %v4511_v53, %v5461_v27  ;;  %v4513_v47 = vpop.eup %4512  ;;  %v6908_v27 = vld [vmem:[#allocation20_spill] sm:$0xff] }
 0x337   :  { %v6920_v53 = vld [vmem:[#allocation32_spill] sm:$0xff] }
 0x338   :  { %v5534_v32 = vadd.f32 %v1368_v3, %v1367_v41  ;;  %v6922_v41 = vld [vmem:[#allocation34_spill] sm:$0xff]  ;;  %v6923_v3 = vld [vmem:[#allocation35_spill] sm:$0xff] }
 0x33a   :  { %4514 = vtanh.f32 %v5534_v32 }
 0x347   :  { %v4515_v10 = vpop.eup %4514 }
 0x348   :  { %v1371_v44 = vmul.f32 %v4515_v10, %v4513_v47  ;;  %v6924_v47 = vld [vmem:[#allocation36_spill] sm:$0xff]  ;;  %v6925_v10 = vld [vmem:[#allocation37_spill] sm:$0xff] }
 0x34a   :  { %1439 = vmatmul.mubr.f32.vlgmr.msra.gmra.mxu1 %v1371_v44  ;;  %1510 = vmatmul.mubr.f32.vlgmr.msra.gmra.mxu0 %v1371_v44  ;;  %v6926_v44 = vmov 0.0  }
 0x34b   :  { %1580 = vmatpush1.msra.mxu1 %v5188_v39  ;;  %1651 = vmatpush1.msra.mxu0 %v5190_v40 }
 0x34c   :  { %1581 = vmatprep.subr.mxu1 %v5192_v42  ;;  %1652 = vmatprep.subr.mxu0 %v5194_v43 }
 0x34d   :  { %1582 = vmatpush1.msra.mxu1 %v5196_v45  ;;  %1653 = vmatpush1.msra.mxu0 %v5198_v46 }
 0x34e   :  { %1583 = vmatprep.subr.mxu1 %v5204_v48  ;;  %1654 = vmatprep.subr.mxu0 %v5206_v49 }
 0x34f   :  { %1584 = vmatpush1.msra.mxu1 %v5210_v51  ;;  %1655 = vmatpush1.msra.mxu0 %v5212_v52 }
 0x350   :  { %1585 = vmatprep.subr.mxu1 %v5216_v55  ;;  %1656 = vmatprep.subr.mxu0 %v5218_v56 }
 0x351   :  { %1586 = vmatpush1.msra.mxu1 %v5220_v57  ;;  %1657 = vmatpush1.msra.mxu0 %v5222_v58 }
 0x352   :  { %1587 = vmatprep.subr.mxu1 %v5226_v59  ;;  %1658 = vmatprep.subr.mxu0 %v5228_v60 }
 0x353   :  { %1588 = vmatpush1.msra.mxu1 %v5232_v61  ;;  %1659 = vmatpush1.msra.mxu0 %v5234_v62 }
 0x354   :  { %1589 = vmatprep.subr.mxu1 %v5238_v63  ;;  %1660 = vmatprep.subr.mxu0 %v5240_v1 }
 0x355   :  { %1590 = vmatpush1.msra.mxu1 %v5244_v2  ;;  %1661 = vmatpush1.msra.mxu0 %v5246_v4 }
 0x356   :  { %1591 = vmatprep.subr.mxu1 %v5250_v5  ;;  %1662 = vmatprep.subr.mxu0 %v5252_v6 }
 0x357   :  { %1592 = vmatpush1.msra.mxu1 %v5256_v7  ;;  %1663 = vmatpush1.msra.mxu0 %v5258_v8 }
 0x358   :  { %1593 = vmatprep.subr.mxu1 %v5262_v9  ;;  %1664 = vmatprep.subr.mxu0 %v5264_v11 }
 0x359   :  { %1594 = vmatpush1.msra.mxu1 %v5268_v12  ;;  %1665 = vmatpush1.msra.mxu0 %v5270_v14 }
 0x35a   :  { %1595 = vmatprep.subr.mxu1 %v5274_v15  ;;  %1666 = vmatprep.subr.mxu0 %v5276_v16 }
 0x35b   :  { %1596 = vmatpush1.msra.mxu1 %v5280_v17  ;;  %1667 = vmatpush1.msra.mxu0 %v5282_v18 }
 0x35c   :  { %1597 = vmatprep.subr.mxu1 %v5286_v19  ;;  %1668 = vmatprep.subr.mxu0 %v5288_v20 }
 0x35d   :  { %1598 = vmatpush1.msra.mxu1 %v5292_v21  ;;  %1669 = vmatpush1.msra.mxu0 %v5294_v22 }
 0x35e   :  { %1599 = vmatprep.subr.mxu1 %v5298_v23  ;;  %1670 = vmatprep.subr.mxu0 %v5300_v24 }
 0x35f   :  { %1600 = vmatpush1.msra.mxu1 %v5304_v25  ;;  %1671 = vmatpush1.msra.mxu0 %v5306_v26 }
 0x360   :  { %1601 = vmatprep.subr.mxu1 %v6885_v50  ;;  %1672 = vmatprep.subr.mxu0 %v6908_v27 }
 0x361   :  { %1602 = vmatpush1.msra.mxu1 %v6909_v0  ;;  %1673 = vmatpush1.msra.mxu0 %v6910_v34 }
 0x362   :  { %1603 = vmatprep.subr.mxu1 %v6911_v28  ;;  %1674 = vmatprep.subr.mxu0 %v6912_v29 }
 0x363   :  { %1604 = vmatpush1.msra.mxu1 %v6913_v38  ;;  %1675 = vmatpush1.msra.mxu0 %v6914_v35 }
 0x364   :  { %1605 = vmatprep.subr.mxu1 %v6915_v31  ;;  %1676 = vmatprep.subr.mxu0 %v6916_v36  ;;  %v6927_v36 = vld [vmem:[#allocation38_spill] sm:$0xff] }
 0x365   :  { %1606 = vmatpush1.msra.mxu1 %v6917_v30  ;;  %1677 = vmatpush1.msra.mxu0 %v6918_v13  ;;  %v6928_v13 = vld [vmem:[#allocation16_spill] sm:$0xff] }
 0x366   :  { %1607 = vmatprep.subr.mxu1 %v6919_v37  ;;  %1678 = vmatprep.subr.mxu0 %v6920_v53  ;;  %v6929_v37 = vld [vmem:[#allocation17_spill] sm:$0xff] }
 0x367   :  { %1608 = vmatpush1.msra.mxu1 %v6921_v54  ;;  %1679 = vmatpush1.msra.mxu0 %v6922_v41 }
 0x368   :  { %1609 = vmatprep.subr.mxu1 %v6923_v3  ;;  %1680 = vmatprep.subr.mxu0 %v6924_v47 }
 0x369   :  { %1610 = vmatpush1.msra.mxu1 %v6925_v10  ;;  %1643 = vmatprep.mubr.f32.mxu1 %v6926_v44 }
 0x36a   :  { %1681 = vmatpush1.msra.mxu0 %v6927_v36  ;;  %1714 = vmatprep.mubr.f32.mxu0 %v6926_v44  ;;  %v1373_v36 = vld [vmem:[#allocation2 + $0x2] ss:$8 sm:$0xf] }
 0x36b   :  { %1784 = vmatprep.subr.mxu1 %v6928_v13  ;;  %1855 = vmatprep.subr.mxu0 %v6929_v37 }
 0x40a   :  { %v1440_v53 = vpop.f32.mrf.mxu1  ;;  %v1511_v54 = vpop.f32.mrf.mxu0 }
 0x40c   :  { %v1442_v30 = vpop.f32.mrf.mxu1  ;;  %v1513_v41 = vpop.f32.mrf.mxu0 }
 0x40d   :  { %v1520_v31 = vcombine.low %v1440_v53, %v1442_v30  ;;  %v1521_v3 = vcombine.low %v1511_v54, %v1513_v41 }
 0x40f   :  { %v1528_v47 = vrot.slane %v1520_v31, %v5456_v33  ;;  %v1535_v10 = vrot.slane %v1521_v3, %v5456_v33 }
 0x411   :  { %v1536_v35 = vcombine.low %v1528_v47, %v1535_v10 }
 0x413   :  { %v1543_v38 = vrot.slane %v1536_v35, %v5456_v33 }
 0x415   :  { %v1545_v29 = vadd.f32 %v1543_v38, %v1373_v36 }
 0x417   :  { %v4376_v44 = vmul.f32 -1.442695, %v1545_v29  ;;  %v1553_v28 = vrot.slane %v1545_v29, 1  ;;  %v1564_v37 = vrot.slane %v1545_v29, 3  ;;  %v1561_v27 = vrot.slane %v1545_v29, 2 }
 0x419   :  { %4516 = vpow2.f32 %v4376_v44  ;;  %v4377_v13 = vmul.f32 -1.442695, %v1553_v28  ;;  %v4378_v34 = vmul.f32 -1.442695, %v1564_v37 }
 0x41b   :  { %4518 = vpow2.f32 %v4377_v13 }
 0x41c   :  { %4520 = vpow2.f32 %v4378_v34 }
 0x426   :  { %v4517_v0 = vpop.eup %4516 }
 0x427   :  { %v1549_v30 = vadd.f32 1.0, %v4517_v0 }
 0x428   :  { %v4519_v53 = vpop.eup %4518 }
 0x429   :  { %4522 = vrcp.f32 %v1549_v30  ;;  %v1558_v31 = vadd.f32 1.0, %v4519_v53  ;;  %v4521_v54 = vpop.eup %4520 }
 0x42a   :  { %4524 = vtanh.f32 %v1561_v27  ;;  %v1569_v36 = vadd.f32 1.0, %v4521_v54 }
 0x42b   :  { %4526 = vrcp.f32 %v1558_v31 }
 0x42c   :  { %4528 = vrcp.f32 %v1569_v36  ;;  %v5690_v36 = vld [vmem:[#allocation8 + $0x1f0] sm:$0xff] }
 0x436   :  { %v4523_v35 = vpop.eup %4522 }
 0x437   :  { %v4525_v41 = vpop.eup %4524 }
 0x438   :  { %v4527_v38 = vpop.eup %4526  ;;  %v1573_v28 = vmul.f32 %v4525_v41, %v4523_v35 }
 0x439   :  { %v1572_v3 = vmul.f32 %v4527_v38, %v5534_v32  ;;  %v4529_v0 = vpop.eup %4528  ;;  %v5687_v38 = vld [vmem:[#allocation8 + $0x1e0] sm:$0xff] }
 0x43b   :  { %v5607_v47 = vadd.f32 %v1573_v28, %v1572_v3  ;;  %v5693_v3 = vld [vmem:[#allocation8 + $0x1c8] sm:$0xff]  ;;  %v5696_v28 = vld [vmem:[#allocation8 + $0x1d8] sm:$0xff] }
 0x43d   :  { %4530 = vtanh.f32 %v5607_v47 }
 0x44a   :  { %v4531_v29 = vpop.eup %4530 }
 0x44b   :  { %v1576_v34 = vmul.f32 %v4531_v29, %v4529_v0  ;;  %v5702_v0 = vld [vmem:[#allocation8 + $0x1d0] sm:$0xff]  ;;  %v5705_v29 = vld [vmem:[#allocation8 + $0x1a8] sm:$0xff] }
 0x44d   :  { %1644 = vmatmul.mubr.f32.vlgmr.msra.gmra.mxu1 %v1576_v34  ;;  %1715 = vmatmul.mubr.f32.vlgmr.msra.gmra.mxu0 %v1576_v34  ;;  %v5708_v34 = vld [vmem:[#allocation8 + $0x1b8] sm:$0xff] }
 0x44e   :  { %1785 = vmatpush1.msra.mxu1 %v5188_v39  ;;  %1856 = vmatpush1.msra.mxu0 %v5190_v40  ;;  %v6930_v39 = vld [vmem:[#allocation20_spill] sm:$0xff]  ;;  %v6931_v40 = vld [vmem:[#allocation21_spill] sm:$0xff] }
 0x44f   :  { %1786 = vmatprep.subr.mxu1 %v5192_v42  ;;  %1857 = vmatprep.subr.mxu0 %v5194_v43  ;;  %v6932_v42 = vld [vmem:[#allocation22_spill] sm:$0xff]  ;;  %v6933_v43 = vld [vmem:[#allocation23_spill] sm:$0xff] }
 0x450   :  { %1787 = vmatpush1.msra.mxu1 %v5196_v45  ;;  %1858 = vmatpush1.msra.mxu0 %v5198_v46  ;;  %v6934_v45 = vld [vmem:[#allocation24_spill] sm:$0xff]  ;;  %v6935_v46 = vld [vmem:[#allocation25_spill] sm:$0xff] }
 0x451   :  { %1788 = vmatprep.subr.mxu1 %v5204_v48  ;;  %1859 = vmatprep.subr.mxu0 %v5206_v49  ;;  %v6936_v48 = vld [vmem:[#allocation26_spill] sm:$0xff]  ;;  %v6937_v49 = vld [vmem:[#allocation27_spill] sm:$0xff] }
 0x452   :  { %1789 = vmatpush1.msra.mxu1 %v5210_v51  ;;  %1860 = vmatpush1.msra.mxu0 %v5212_v52  ;;  %v6938_v51 = vld [vmem:[#allocation28_spill] sm:$0xff]  ;;  %v6939_v52 = vld [vmem:[#allocation29_spill] sm:$0xff] }
 0x453   :  { %1790 = vmatprep.subr.mxu1 %v5216_v55  ;;  %1861 = vmatprep.subr.mxu0 %v5218_v56  ;;  %v6940_v55 = vld [vmem:[#allocation30_spill] sm:$0xff]  ;;  %v6941_v56 = vld [vmem:[#allocation31_spill] sm:$0xff] }
 0x454   :  { %1791 = vmatpush1.msra.mxu1 %v5220_v57  ;;  %1862 = vmatpush1.msra.mxu0 %v5222_v58  ;;  %v6942_v57 = vld [vmem:[#allocation32_spill] sm:$0xff]  ;;  %v6943_v58 = vld [vmem:[#allocation33_spill] sm:$0xff] }
 0x455   :  { %1792 = vmatprep.subr.mxu1 %v5226_v59  ;;  %1863 = vmatprep.subr.mxu0 %v5228_v60  ;;  %v6944_v59 = vld [vmem:[#allocation34_spill] sm:$0xff]  ;;  %v6945_v60 = vld [vmem:[#allocation35_spill] sm:$0xff] }
 0x456   :  { %1793 = vmatpush1.msra.mxu1 %v5232_v61  ;;  %1864 = vmatpush1.msra.mxu0 %v5234_v62  ;;  %v6946_v61 = vld [vmem:[#allocation36_spill] sm:$0xff]  ;;  %v6947_v62 = vld [vmem:[#allocation37_spill] sm:$0xff] }
 0x457   :  { %1794 = vmatprep.subr.mxu1 %v5238_v63  ;;  %1865 = vmatprep.subr.mxu0 %v5240_v1  ;;  %v6948_v63 = vmov 0.0   ;;  %v6949_v1 = vld [vmem:[#allocation38_spill] sm:$0xff] }
 0x458   :  { %1795 = vmatpush1.msra.mxu1 %v5244_v2  ;;  %1866 = vmatpush1.msra.mxu0 %v5246_v4  ;;  %v5674_v2 = vld [vmem:[#allocation8 + $0x1e8] sm:$0xff]  ;;  %v5677_v4 = vld [vmem:[#allocation8 + $0x1f8] sm:$0xff] }
 0x459   :  { %1796 = vmatprep.subr.mxu1 %v5250_v5  ;;  %1867 = vmatprep.subr.mxu0 %v5252_v6  ;;  %6950 = vst [vmem:[#allocation18_spill] sm:$0xff] %v5674_v2  ;;  %6951 = vst [vmem:[#allocation19_spill] sm:$0xff] %v5677_v4 }
 0x45a   :  { %1797 = vmatpush1.msra.mxu1 %v5256_v7  ;;  %1868 = vmatpush1.msra.mxu0 %v5258_v8 }
 0x45b   :  { %1798 = vmatprep.subr.mxu1 %v5262_v9  ;;  %1869 = vmatprep.subr.mxu0 %v5264_v11 }
 0x45c   :  { %1799 = vmatpush1.msra.mxu1 %v5268_v12  ;;  %1870 = vmatpush1.msra.mxu0 %v5270_v14 }
 0x45d   :  { %1800 = vmatprep.subr.mxu1 %v5274_v15  ;;  %1871 = vmatprep.subr.mxu0 %v5276_v16 }
 0x45e   :  { %1801 = vmatpush1.msra.mxu1 %v5280_v17  ;;  %1872 = vmatpush1.msra.mxu0 %v5282_v18  ;;  %v1578_v17 = vld [vmem:[#allocation2 + $0x3] ss:$8 sm:$0xf] }
 0x45f   :  { %1802 = vmatprep.subr.mxu1 %v5286_v19  ;;  %1873 = vmatprep.subr.mxu0 %v5288_v20 }
 0x460   :  { %1803 = vmatpush1.msra.mxu1 %v5292_v21  ;;  %1874 = vmatpush1.msra.mxu0 %v5294_v22 }
 0x461   :  { %1804 = vmatprep.subr.mxu1 %v5298_v23  ;;  %1875 = vmatprep.subr.mxu0 %v5300_v24 }
 0x462   :  { %1805 = vmatpush1.msra.mxu1 %v5304_v25  ;;  %1876 = vmatpush1.msra.mxu0 %v5306_v26 }
 0x463   :  { %1806 = vmatprep.subr.mxu1 %v6885_v50  ;;  %1877 = vmatprep.subr.mxu0 %v6930_v39  ;;  %v5711_v39 = vld [vmem:[#allocation8 + $0x1a0] sm:$0xff] }
 0x464   :  { %1807 = vmatpush1.msra.mxu1 %v6931_v40  ;;  %1878 = vmatpush1.msra.mxu0 %v6932_v42  ;;  %v5714_v40 = vld [vmem:[#allocation8 + $0x1b0] sm:$0xff]  ;;  %v5717_v42 = vld [vmem:[#allocation8 + $0x188] sm:$0xff] }
 0x465   :  { %1808 = vmatprep.subr.mxu1 %v6933_v43  ;;  %1879 = vmatprep.subr.mxu0 %v6934_v45  ;;  %v5720_v43 = vld [vmem:[#allocation8 + $0x198] sm:$0xff]  ;;  %v5723_v45 = vld [vmem:[#allocation8 + $0x180] sm:$0xff] }
 0x466   :  { %1809 = vmatpush1.msra.mxu1 %v6935_v46  ;;  %1880 = vmatpush1.msra.mxu0 %v6936_v48  ;;  %v5726_v46 = vld [vmem:[#allocation8 + $0x190] sm:$0xff]  ;;  %v5729_v48 = vld [vmem:[#allocation8 + $0x168] sm:$0xff] }
 0x467   :  { %1810 = vmatprep.subr.mxu1 %v6937_v49  ;;  %1881 = vmatprep.subr.mxu0 %v6938_v51  ;;  %v5732_v49 = vld [vmem:[#allocation8 + $0x178] sm:$0xff]  ;;  %v5735_v51 = vld [vmem:[#allocation8 + $0x160] sm:$0xff] }
 0x468   :  { %1811 = vmatpush1.msra.mxu1 %v6939_v52  ;;  %1882 = vmatpush1.msra.mxu0 %v6940_v55  ;;  %v5738_v52 = vld [vmem:[#allocation8 + $0x170] sm:$0xff]  ;;  %v5741_v55 = vld [vmem:[#allocation8 + $0x148] sm:$0xff] }
 0x469   :  { %1812 = vmatprep.subr.mxu1 %v6941_v56  ;;  %1883 = vmatprep.subr.mxu0 %v6942_v57  ;;  %v5744_v56 = vld [vmem:[#allocation8 + $0x158] sm:$0xff]  ;;  %v5747_v57 = vld [vmem:[#allocation8 + $0x140] sm:$0xff] }
 0x46a   :  { %1813 = vmatpush1.msra.mxu1 %v6943_v58  ;;  %1884 = vmatpush1.msra.mxu0 %v6944_v59  ;;  %v5750_v58 = vld [vmem:[#allocation8 + $0x150] sm:$0xff]  ;;  %v5753_v59 = vld [vmem:[#allocation8 + $0x128] sm:$0xff] }
 0x46b   :  { %1814 = vmatprep.subr.mxu1 %v6945_v60  ;;  %1885 = vmatprep.subr.mxu0 %v6946_v61  ;;  %v5756_v60 = vld [vmem:[#allocation8 + $0x138] sm:$0xff]  ;;  %v5759_v61 = vld [vmem:[#allocation8 + $0x120] sm:$0xff] }
 0x46c   :  { %1815 = vmatpush1.msra.mxu1 %v6947_v62  ;;  %1848 = vmatprep.mubr.f32.mxu1 %v6948_v63  ;;  %v5762_v62 = vld [vmem:[#allocation8 + $0x130] sm:$0xff] }
 0x46d   :  { %1886 = vmatpush1.msra.mxu0 %v6949_v1  ;;  %1919 = vmatprep.mubr.f32.mxu0 %v6948_v63  ;;  %v5765_v1 = vld [vmem:[#allocation8 + $0x108] sm:$0xff] }
 0x46e   :  { %1989 = vmatprep.subr.mxu1 %v5674_v2  ;;  %2060 = vmatprep.subr.mxu0 %v5677_v4 }
 0x50d   :  { %v1645_v5 = vpop.f32.mrf.mxu1  ;;  %v1716_v6 = vpop.f32.mrf.mxu0 }
 0x50f   :  { %v1647_v7 = vpop.f32.mrf.mxu1  ;;  %v1718_v8 = vpop.f32.mrf.mxu0 }
 0x510   :  { %v1725_v9 = vcombine.low %v1645_v5, %v1647_v7  ;;  %v1726_v11 = vcombine.low %v1716_v6, %v1718_v8  ;;  %v5768_v5 = vld [vmem:[#allocation8 + $0x118] sm:$0xff]  ;;  %v5771_v6 = vld [vmem:[#allocation8 + $0x100] sm:$0xff]  ;;  %v5774_v7 = vld [vmem:[#allocation8 + $0x110] sm:$0xff] }
 0x511   :  { %v5777_v8 = vld [vmem:[#allocation8 + $0xe8] sm:$0xff] }
 0x512   :  { %v1733_v12 = vrot.slane %v1725_v9, %v5456_v33  ;;  %v1740_v14 = vrot.slane %v1726_v11, %v5456_v33  ;;  %v5780_v9 = vld [vmem:[#allocation8 + $0xf8] sm:$0xff]  ;;  %v5783_v11 = vld [vmem:[#allocation8 + $0xe0] sm:$0xff] }
 0x514   :  { %v1741_v15 = vcombine.low %v1733_v12, %v1740_v14  ;;  %v5786_v12 = vld [vmem:[#allocation8 + $0xf0] sm:$0xff]  ;;  %v5789_v14 = vld [vmem:[#allocation8 + $0xc8] sm:$0xff] }
 0x516   :  { %v1748_v16 = vrot.slane %v1741_v15, %v5456_v33  ;;  %v5792_v15 = vld [vmem:[#allocation8 + $0xd8] sm:$0xff] }
 0x518   :  { %v1750_v18 = vadd.f32 %v1748_v16, %v1578_v17  ;;  %v5795_v16 = vld [vmem:[#allocation8 + $0xc0] sm:$0xff]  ;;  %v5798_v17 = vld [vmem:[#allocation8 + $0xd0] sm:$0xff] }
 0x51a   :  { %v4379_v19 = vmul.f32 -1.442695, %v1750_v18  ;;  %v1758_v20 = vrot.slane %v1750_v18, 1  ;;  %v1769_v22 = vrot.slane %v1750_v18, 3  ;;  %v1766_v25 = vrot.slane %v1750_v18, 2  ;;  %v5801_v18 = vld [vmem:[#allocation8 + $0xa8] sm:$0xff] }
 0x51c   :  { %4532 = vpow2.f32 %v4379_v19  ;;  %v4380_v21 = vmul.f32 -1.442695, %v1758_v20  ;;  %v4381_v23 = vmul.f32 -1.442695, %v1769_v22  ;;  %v5804_v19 = vld [vmem:[#allocation8 + $0xb8] sm:$0xff]  ;;  %v5807_v20 = vld [vmem:[#allocation8 + $0xa0] sm:$0xff] }
 0x51d   :  { %v5813_v22 = vld [vmem:[#allocation8 + $0x88] sm:$0xff] }
 0x51e   :  { %4534 = vpow2.f32 %v4380_v21  ;;  %v5810_v21 = vld [vmem:[#allocation8 + $0xb0] sm:$0xff] }
 0x51f   :  { %4536 = vpow2.f32 %v4381_v23  ;;  %v5816_v23 = vld [vmem:[#allocation8 + $0x98] sm:$0xff] }
 0x520   :  { %6952 = vst [vmem:[#allocation16_spill] sm:$0xff] %v5816_v23 }
 0x529   :  { %v4533_v24 = vpop.eup %4532 }
 0x52a   :  { %v1754_v26 = vadd.f32 1.0, %v4533_v24  ;;  %v5819_v24 = vld [vmem:[#allocation8 + $0x80] sm:$0xff] }
 0x52b   :  { %v4535_v50 = vpop.eup %4534  ;;  %6953 = vst [vmem:[#allocation17_spill] sm:$0xff] %v5819_v24 }
 0x52c   :  { %4538 = vrcp.f32 %v1754_v26  ;;  %v1763_v32 = vadd.f32 1.0, %v4535_v50  ;;  %v4537_v27 = vpop.eup %4536  ;;  %v5825_v26 = vld [vmem:[#allocation8 + $0x68] sm:$0xff]  ;;  %v5828_v50 = vld [vmem:[#allocation8 + $0x78] sm:$0xff] }
 0x52d   :  { %4540 = vtanh.f32 %v1766_v25  ;;  %v1774_v37 = vadd.f32 1.0, %v4537_v27  ;;  %v5822_v25 = vld [vmem:[#allocation8 + $0x90] sm:$0xff]  ;;  %6955 = vst [vmem:[#allocation21_spill] sm:$0xff] %v5825_v26  ;;  %6956 = vst [vmem:[#allocation22_spill] sm:$0xff] %v5828_v50 }
 0x52e   :  { %4542 = vrcp.f32 %v1763_v32  ;;  %6954 = vst [vmem:[#allocation20_spill] sm:$0xff] %v5822_v25  ;;  %v5831_v32 = vld [vmem:[#allocation8 + $0x60] sm:$0xff]  ;;  %v5834_v27 = vld [vmem:[#allocation8 + $0x70] sm:$0xff] }
 0x52f   :  { %4544 = vrcp.f32 %v1774_v37  ;;  %6957 = vst [vmem:[#allocation23_spill] sm:$0xff] %v5831_v32  ;;  %6958 = vst [vmem:[#allocation24_spill] sm:$0xff] %v5834_v27  ;;  %v5846_v37 = vld [vmem:[#allocation8 + $0x50] sm:$0xff] }
 0x530   :  { %6962 = vst [vmem:[#allocation28_spill] sm:$0xff] %v5846_v37 }
 0x539   :  { %v4539_v10 = vpop.eup %4538 }
 0x53a   :  { %v4541_v44 = vpop.eup %4540 }
 0x53b   :  { %v4543_v13 = vpop.eup %4542  ;;  %v1778_v53 = vmul.f32 %v4541_v44, %v4539_v10  ;;  %v5837_v10 = vld [vmem:[#allocation8 + $0x48] sm:$0xff]  ;;  %v5840_v44 = vld [vmem:[#allocation8 + $0x58] sm:$0xff] }
 0x53c   :  { %v1777_v30 = vmul.f32 %v4543_v13, %v5607_v47  ;;  %v4545_v54 = vpop.eup %4544  ;;  %v5699_v47 = vld [vmem:[#allocation8 + $0x1c0] sm:$0xff]  ;;  %6959 = vst [vmem:[#allocation25_spill] sm:$0xff] %v5837_v10  ;;  %6960 = vst [vmem:[#allocation26_spill] sm:$0xff] %v5840_v44 }
 0x53d   :  { %v5843_v13 = vld [vmem:[#allocation8 + $0x40] sm:$0xff] }
 0x53e   :  { %v5684_v31 = vadd.f32 %v1778_v53, %v1777_v30  ;;  %6961 = vst [vmem:[#allocation27_spill] sm:$0xff] %v5843_v13  ;;  %v5849_v30 = vld [vmem:[#allocation8 + $0x28] sm:$0xff]  ;;  %v5852_v53 = vld [vmem:[#allocation8 + $0x38] sm:$0xff] }
 0x53f   :  { %6963 = vst [vmem:[#allocation29_spill] sm:$0xff] %v5849_v30  ;;  %6964 = vst [vmem:[#allocation30_spill] sm:$0xff] %v5852_v53 }
 0x540   :  { %4546 = vtanh.f32 %v5684_v31 }
 0x54d   :  { %v4547_v35 = vpop.eup %4546 }
 0x54e   :  { %v1781_v41 = vmul.f32 %v4547_v35, %v4545_v54  ;;  %v5855_v54 = vld [vmem:[#allocation8 + $0x20] sm:$0xff]  ;;  %v5858_v35 = vld [vmem:[#allocation8 + $0x30] sm:$0xff] }
 0x54f   :  { %6965 = vst [vmem:[#allocation31_spill] sm:$0xff] %v5855_v54  ;;  %6966 = vst [vmem:[#allocation32_spill] sm:$0xff] %v5858_v35 }
 0x550   :  { %1849 = vmatmul.mubr.f32.vlgmr.msra.gmra.mxu1 %v1781_v41  ;;  %1920 = vmatmul.mubr.f32.vlgmr.msra.gmra.mxu0 %v1781_v41  ;;  %v5861_v41 = vld [vmem:[#allocation8 + $0x8] sm:$0xff] }
 0x551   :  { %1990 = vmatpush1.msra.mxu1 %v5687_v38  ;;  %2061 = vmatpush1.msra.mxu0 %v5690_v36  ;;  %6967 = vst [vmem:[#allocation33_spill] sm:$0xff] %v5861_v41 }
 0x552   :  { %1991 = vmatprep.subr.mxu1 %v5693_v3  ;;  %2062 = vmatprep.subr.mxu0 %v5696_v28 }
 0x553   :  { %1992 = vmatpush1.msra.mxu1 %v5699_v47  ;;  %2063 = vmatpush1.msra.mxu0 %v5702_v0 }
 0x554   :  { %1993 = vmatprep.subr.mxu1 %v5705_v29  ;;  %2064 = vmatprep.subr.mxu0 %v5708_v34 }
 0x555   :  { %1994 = vmatpush1.msra.mxu1 %v5711_v39  ;;  %2065 = vmatpush1.msra.mxu0 %v5714_v40 }
 0x556   :  { %1995 = vmatprep.subr.mxu1 %v5717_v42  ;;  %2066 = vmatprep.subr.mxu0 %v5720_v43 }
 0x557   :  { %1996 = vmatpush1.msra.mxu1 %v5723_v45  ;;  %2067 = vmatpush1.msra.mxu0 %v5726_v46 }
 0x558   :  { %1997 = vmatprep.subr.mxu1 %v5729_v48  ;;  %2068 = vmatprep.subr.mxu0 %v5732_v49 }
 0x559   :  { %1998 = vmatpush1.msra.mxu1 %v5735_v51  ;;  %2069 = vmatpush1.msra.mxu0 %v5738_v52 }
 0x55a   :  { %1999 = vmatprep.subr.mxu1 %v5741_v55  ;;  %2070 = vmatprep.subr.mxu0 %v5744_v56 }
 0x55b   :  { %2000 = vmatpush1.msra.mxu1 %v5747_v57  ;;  %2071 = vmatpush1.msra.mxu0 %v5750_v58 }
 0x55c   :  { %2001 = vmatprep.subr.mxu1 %v5753_v59  ;;  %2072 = vmatprep.subr.mxu0 %v5756_v60 }
 0x55d   :  { %2002 = vmatpush1.msra.mxu1 %v5759_v61  ;;  %2073 = vmatpush1.msra.mxu0 %v5762_v62 }
 0x55e   :  { %2003 = vmatprep.subr.mxu1 %v5765_v1  ;;  %2074 = vmatprep.subr.mxu0 %v5768_v5 }
 0x55f   :  { %2004 = vmatpush1.msra.mxu1 %v5771_v6  ;;  %2075 = vmatpush1.msra.mxu0 %v5774_v7 }
 0x560   :  { %2005 = vmatprep.subr.mxu1 %v5777_v8  ;;  %2076 = vmatprep.subr.mxu0 %v5780_v9 }
 0x561   :  { %2006 = vmatpush1.msra.mxu1 %v5783_v11  ;;  %2077 = vmatpush1.msra.mxu0 %v5786_v12 }
 0x562   :  { %2007 = vmatprep.subr.mxu1 %v5789_v14  ;;  %2078 = vmatprep.subr.mxu0 %v5792_v15 }
 0x563   :  { %2008 = vmatpush1.msra.mxu1 %v5795_v16  ;;  %2079 = vmatpush1.msra.mxu0 %v5798_v17 }
 0x564   :  { %2009 = vmatprep.subr.mxu1 %v5801_v18  ;;  %2080 = vmatprep.subr.mxu0 %v5804_v19 }
 0x565   :  { %2010 = vmatpush1.msra.mxu1 %v5807_v20  ;;  %2081 = vmatpush1.msra.mxu0 %v5810_v21 }
 0x566   :  { %2011 = vmatprep.subr.mxu1 %v5813_v22  ;;  %2082 = vmatprep.subr.mxu0 %v5816_v23 }
 0x567   :  { %2012 = vmatpush1.msra.mxu1 %v5819_v24  ;;  %2083 = vmatpush1.msra.mxu0 %v5822_v25 }
 0x568   :  { %2013 = vmatprep.subr.mxu1 %v5825_v26  ;;  %2084 = vmatprep.subr.mxu0 %v5828_v50 }
 0x569   :  { %2014 = vmatpush1.msra.mxu1 %v5831_v32  ;;  %2085 = vmatpush1.msra.mxu0 %v5834_v27 }
 0x56a   :  { %2015 = vmatprep.subr.mxu1 %v5837_v10  ;;  %2086 = vmatprep.subr.mxu0 %v5840_v44 }
 0x56b   :  { %2016 = vmatpush1.msra.mxu1 %v5843_v13  ;;  %2087 = vmatpush1.msra.mxu0 %v5846_v37  ;;  %v5864_v37 = vld [vmem:[#allocation8 + $0x18] sm:$0xff] }
 0x56c   :  { %2017 = vmatprep.subr.mxu1 %v5849_v30  ;;  %2088 = vmatprep.subr.mxu0 %v5852_v53  ;;  %6968 = vst [vmem:[#allocation34_spill] sm:$0xff] %v5864_v37  ;;  %v5867_v30 = vld [vmem:[#allocation8] sm:$0xff]  ;;  %v5871_v53 = vld [vmem:[#allocation8 + $0x10] sm:$0xff] }
 0x56d   :  { %2018 = vmatpush1.msra.mxu1 %v5855_v54  ;;  %2089 = vmatpush1.msra.mxu0 %v5858_v35  ;;  %6969 = vst [vmem:[#allocation35_spill] sm:$0xff] %v5867_v30  ;;  %6970 = vst [vmem:[#allocation36_spill] sm:$0xff] %v5871_v53 }
 0x56e   :  { %2019 = vmatprep.subr.mxu1 %v5861_v41  ;;  %2090 = vmatprep.subr.mxu0 %v5864_v37 }
 0x56f   :  { %2020 = vmatpush1.msra.mxu1 %v5867_v30  ;;  %2053 = vmatprep.mubr.f32.mxu1 %v6948_v63 }
 0x570   :  { %2091 = vmatpush1.msra.mxu0 %v5871_v53  ;;  %2124 = vmatprep.mubr.f32.mxu0 %v6948_v63  ;;  %v1783_v53 = vld [vmem:[#allocation2 + $0x4] ss:$8 sm:$0xf] }
 0x571   :  { %2194 = vmatprep.subr.mxu1 %v5674_v2  ;;  %2265 = vmatprep.subr.mxu0 %v5677_v4 }
 0x610   :  { %v1850_v41 = vpop.f32.mrf.mxu1  ;;  %v1921_v35 = vpop.f32.mrf.mxu0 }
 0x612   :  { %v1852_v54 = vpop.f32.mrf.mxu1  ;;  %v1923_v37 = vpop.f32.mrf.mxu0 }
 0x613   :  { %v1930_v13 = vcombine.low %v1850_v41, %v1852_v54  ;;  %v1931_v44 = vcombine.low %v1921_v35, %v1923_v37  ;;  %v6975_v35 = vld [vmem:[#allocation22_spill] sm:$0xff]  ;;  %v6976_v41 = vld [vmem:[#allocation23_spill] sm:$0xff] }
 0x615   :  { %v1938_v30 = vrot.slane %v1930_v13, %v5456_v33  ;;  %v1945_v10 = vrot.slane %v1931_v44, %v5456_v33 }
 0x617   :  { %v1946_v27 = vcombine.low %v1938_v30, %v1945_v10 }
 0x619   :  { %v1953_v32 = vrot.slane %v1946_v27, %v5456_v33 }
 0x61b   :  { %v1955_v50 = vadd.f32 %v1953_v32, %v1783_v53  ;;  %v6974_v53 = vld [vmem:[#allocation21_spill] sm:$0xff] }
 0x61d   :  { %v4382_v63 = vmul.f32 -1.442695, %v1955_v50  ;;  %v1963_v26 = vrot.slane %v1955_v50, 1  ;;  %v1974_v4 = vrot.slane %v1955_v50, 3  ;;  %v1971_v23 = vrot.slane %v1955_v50, 2  ;;  %v6973_v50 = vld [vmem:[#allocation20_spill] sm:$0xff] }
 0x61f   :  { %4548 = vpow2.f32 %v4382_v63  ;;  %v4383_v2 = vmul.f32 -1.442695, %v1963_v26  ;;  %v4384_v25 = vmul.f32 -1.442695, %v1974_v4 }
 0x621   :  { %4550 = vpow2.f32 %v4383_v2 }
 0x622   :  { %4552 = vpow2.f32 %v4384_v25 }
 0x62c   :  { %v4549_v24 = vpop.eup %4548 }
 0x62d   :  { %v1959_v54 = vadd.f32 1.0, %v4549_v24 }
 0x62e   :  { %v4551_v37 = vpop.eup %4550 }
 0x62f   :  { %4554 = vrcp.f32 %v1959_v54  ;;  %v1968_v13 = vadd.f32 1.0, %v4551_v37  ;;  %v4553_v10 = vpop.eup %4552  ;;  %v6977_v54 = vld [vmem:[#allocation24_spill] sm:$0xff]  ;;  %v6978_v37 = vld [vmem:[#allocation25_spill] sm:$0xff] }
 0x630   :  { %4556 = vtanh.f32 %v1971_v23  ;;  %v1979_v30 = vadd.f32 1.0, %v4553_v10  ;;  %v6972_v23 = vld [vmem:[#allocation17_spill] sm:$0xff]  ;;  %v6980_v10 = vld [vmem:[#allocation27_spill] sm:$0xff] }
 0x631   :  { %4558 = vrcp.f32 %v1968_v13  ;;  %v6979_v13 = vld [vmem:[#allocation26_spill] sm:$0xff] }
 0x632   :  { %4560 = vrcp.f32 %v1979_v30  ;;  %v6984_v30 = vld [vmem:[#allocation31_spill] sm:$0xff] }
 0x63c   :  { %v4555_v27 = vpop.eup %4554 }
 0x63d   :  { %v4557_v44 = vpop.eup %4556 }
 0x63e   :  { %v4559_v32 = vpop.eup %4558  ;;  %v1983_v26 = vmul.f32 %v4557_v44, %v4555_v27  ;;  %v6981_v27 = vld [vmem:[#allocation28_spill] sm:$0xff]  ;;  %v6982_v44 = vld [vmem:[#allocation29_spill] sm:$0xff] }
 0x63f   :  { %v1982_v63 = vmul.f32 %v4559_v32, %v5684_v31  ;;  %v4561_v4 = vpop.eup %4560  ;;  %v6971_v31 = vld [vmem:[#allocation16_spill] sm:$0xff]  ;;  %v6983_v32 = vld [vmem:[#allocation30_spill] sm:$0xff] }
 0x641   :  { %v5881_v2 = vadd.f32 %v1983_v26, %v1982_v63  ;;  %v6985_v63 = vld [vmem:[#allocation32_spill] sm:$0xff]  ;;  %v6986_v26 = vld [vmem:[#allocation33_spill] sm:$0xff] }
 0x643   :  { %4562 = vtanh.f32 %v5881_v2 }
 0x650   :  { %v4563_v24 = vpop.eup %4562 }
 0x651   :  { %v1986_v25 = vmul.f32 %v4563_v24, %v4561_v4  ;;  %v6987_v4 = vld [vmem:[#allocation34_spill] sm:$0xff]  ;;  %v6988_v24 = vld [vmem:[#allocation35_spill] sm:$0xff] }
 0x653   :  { %2054 = vmatmul.mubr.f32.vlgmr.msra.gmra.mxu1 %v1986_v25  ;;  %2125 = vmatmul.mubr.f32.vlgmr.msra.gmra.mxu0 %v1986_v25  ;;  %v6989_v25 = vmov 0.0  }
 0x654   :  { %2195 = vmatpush1.msra.mxu1 %v5687_v38  ;;  %2266 = vmatpush1.msra.mxu0 %v5690_v36 }
 0x655   :  { %2196 = vmatprep.subr.mxu1 %v5693_v3  ;;  %2267 = vmatprep.subr.mxu0 %v5696_v28 }
 0x656   :  { %2197 = vmatpush1.msra.mxu1 %v5699_v47  ;;  %2268 = vmatpush1.msra.mxu0 %v5702_v0 }
 0x657   :  { %2198 = vmatprep.subr.mxu1 %v5705_v29  ;;  %2269 = vmatprep.subr.mxu0 %v5708_v34 }
 0x658   :  { %2199 = vmatpush1.msra.mxu1 %v5711_v39  ;;  %2270 = vmatpush1.msra.mxu0 %v5714_v40 }
 0x659   :  { %2200 = vmatprep.subr.mxu1 %v5717_v42  ;;  %2271 = vmatprep.subr.mxu0 %v5720_v43 }
 0x65a   :  { %2201 = vmatpush1.msra.mxu1 %v5723_v45  ;;  %2272 = vmatpush1.msra.mxu0 %v5726_v46 }
 0x65b   :  { %2202 = vmatprep.subr.mxu1 %v5729_v48  ;;  %2273 = vmatprep.subr.mxu0 %v5732_v49 }
 0x65c   :  { %2203 = vmatpush1.msra.mxu1 %v5735_v51  ;;  %2274 = vmatpush1.msra.mxu0 %v5738_v52 }
 0x65d   :  { %2204 = vmatprep.subr.mxu1 %v5741_v55  ;;  %2275 = vmatprep.subr.mxu0 %v5744_v56 }
 0x65e   :  { %2205 = vmatpush1.msra.mxu1 %v5747_v57  ;;  %2276 = vmatpush1.msra.mxu0 %v5750_v58 }
 0x65f   :  { %2206 = vmatprep.subr.mxu1 %v5753_v59  ;;  %2277 = vmatprep.subr.mxu0 %v5756_v60 }
 0x660   :  { %2207 = vmatpush1.msra.mxu1 %v5759_v61  ;;  %2278 = vmatpush1.msra.mxu0 %v5762_v62 }
 0x661   :  { %2208 = vmatprep.subr.mxu1 %v5765_v1  ;;  %2279 = vmatprep.subr.mxu0 %v5768_v5 }
 0x662   :  { %2209 = vmatpush1.msra.mxu1 %v5771_v6  ;;  %2280 = vmatpush1.msra.mxu0 %v5774_v7 }
 0x663   :  { %2210 = vmatprep.subr.mxu1 %v5777_v8  ;;  %2281 = vmatprep.subr.mxu0 %v5780_v9 }
 0x664   :  { %2211 = vmatpush1.msra.mxu1 %v5783_v11  ;;  %2282 = vmatpush1.msra.mxu0 %v5786_v12 }
 0x665   :  { %2212 = vmatprep.subr.mxu1 %v5789_v14  ;;  %2283 = vmatprep.subr.mxu0 %v5792_v15 }
 0x666   :  { %2213 = vmatpush1.msra.mxu1 %v5795_v16  ;;  %2284 = vmatpush1.msra.mxu0 %v5798_v17 }
 0x667   :  { %2214 = vmatprep.subr.mxu1 %v5801_v18  ;;  %2285 = vmatprep.subr.mxu0 %v5804_v19 }
 0x668   :  { %2215 = vmatpush1.msra.mxu1 %v5807_v20  ;;  %2286 = vmatpush1.msra.mxu0 %v5810_v21 }
 0x669   :  { %2216 = vmatprep.subr.mxu1 %v5813_v22  ;;  %2287 = vmatprep.subr.mxu0 %v6971_v31 }
 0x66a   :  { %2217 = vmatpush1.msra.mxu1 %v6972_v23  ;;  %2288 = vmatpush1.msra.mxu0 %v6973_v50 }
 0x66b   :  { %2218 = vmatprep.subr.mxu1 %v6974_v53  ;;  %2289 = vmatprep.subr.mxu0 %v6975_v35 }
 0x66c   :  { %2219 = vmatpush1.msra.mxu1 %v6976_v41  ;;  %2290 = vmatpush1.msra.mxu0 %v6977_v54 }
 0x66d   :  { %2220 = vmatprep.subr.mxu1 %v6978_v37  ;;  %2291 = vmatprep.subr.mxu0 %v6979_v13  ;;  %v6990_v13 = vld [vmem:[#allocation36_spill] sm:$0xff] }
 0x66e   :  { %2221 = vmatpush1.msra.mxu1 %v6980_v10  ;;  %2292 = vmatpush1.msra.mxu0 %v6981_v27  ;;  %v6991_v27 = vld [vmem:[#allocation18_spill] sm:$0xff] }
 0x66f   :  { %2222 = vmatprep.subr.mxu1 %v6982_v44  ;;  %2293 = vmatprep.subr.mxu0 %v6983_v32  ;;  %v6992_v44 = vld [vmem:[#allocation19_spill] sm:$0xff] }
 0x670   :  { %2223 = vmatpush1.msra.mxu1 %v6984_v30  ;;  %2294 = vmatpush1.msra.mxu0 %v6985_v63 }
 0x671   :  { %2224 = vmatprep.subr.mxu1 %v6986_v26  ;;  %2295 = vmatprep.subr.mxu0 %v6987_v4 }
 0x672   :  { %2225 = vmatpush1.msra.mxu1 %v6988_v24  ;;  %2258 = vmatprep.mubr.f32.mxu1 %v6989_v25 }
 0x673   :  { %2296 = vmatpush1.msra.mxu0 %v6990_v13  ;;  %2329 = vmatprep.mubr.f32.mxu0 %v6989_v25  ;;  %v1988_v13 = vld [vmem:[#allocation2 + $0x5] ss:$8 sm:$0xf] }
 0x674   :  { %2399 = vmatprep.subr.mxu1 %v6991_v27  ;;  %2470 = vmatprep.subr.mxu0 %v6992_v44 }
 0x713   :  { %v2055_v32 = vpop.f32.mrf.mxu1  ;;  %v2126_v30 = vpop.f32.mrf.mxu0 }
 0x715   :  { %v2057_v10 = vpop.f32.mrf.mxu1  ;;  %v2128_v63 = vpop.f32.mrf.mxu0 }
 0x716   :  { %v2135_v37 = vcombine.low %v2055_v32, %v2057_v10  ;;  %v2136_v26 = vcombine.low %v2126_v30, %v2128_v63 }
 0x718   :  { %v2143_v4 = vrot.slane %v2135_v37, %v5456_v33  ;;  %v2150_v24 = vrot.slane %v2136_v26, %v5456_v33 }
 0x71a   :  { %v2151_v54 = vcombine.low %v2143_v4, %v2150_v24  ;;  %v6996_v4 = vld [vmem:[#allocation21_spill] sm:$0xff]  ;;  %v6997_v24 = vld [vmem:[#allocation22_spill] sm:$0xff] }
 0x71c   :  { %v2158_v41 = vrot.slane %v2151_v54, %v5456_v33 }
 0x71e   :  { %v2160_v35 = vadd.f32 %v2158_v41, %v1988_v13 }
 0x720   :  { %v4385_v25 = vmul.f32 -1.442695, %v2160_v35  ;;  %v2168_v53 = vrot.slane %v2160_v35, 1  ;;  %v2179_v44 = vrot.slane %v2160_v35, 3  ;;  %v2176_v31 = vrot.slane %v2160_v35, 2 }
 0x722   :  { %4564 = vpow2.f32 %v4385_v25  ;;  %v4386_v27 = vmul.f32 -1.442695, %v2168_v53  ;;  %v4387_v50 = vmul.f32 -1.442695, %v2179_v44  ;;  %v6995_v44 = vld [vmem:[#allocation20_spill] sm:$0xff]  ;;  %v6998_v25 = vld [vmem:[#allocation23_spill] sm:$0xff] }
 0x724   :  { %4566 = vpow2.f32 %v4386_v27 }
 0x725   :  { %4568 = vpow2.f32 %v4387_v50 }
 0x72f   :  { %v4565_v23 = vpop.eup %4564 }
 0x730   :  { %v2164_v10 = vadd.f32 1.0, %v4565_v23 }
 0x731   :  { %v4567_v32 = vpop.eup %4566 }
 0x732   :  { %4570 = vrcp.f32 %v2164_v10  ;;  %v2173_v37 = vadd.f32 1.0, %v4567_v32  ;;  %v4569_v30 = vpop.eup %4568  ;;  %v6999_v10 = vld [vmem:[#allocation24_spill] sm:$0xff]  ;;  %v7000_v32 = vld [vmem:[#allocation25_spill] sm:$0xff] }
 0x733   :  { %4572 = vtanh.f32 %v2176_v31  ;;  %v2184_v13 = vadd.f32 1.0, %v4569_v30  ;;  %v6994_v31 = vld [vmem:[#allocation17_spill] sm:$0xff]  ;;  %v7002_v30 = vld [vmem:[#allocation27_spill] sm:$0xff] }
 0x734   :  { %4574 = vrcp.f32 %v2173_v37  ;;  %v7001_v37 = vld [vmem:[#allocation26_spill] sm:$0xff] }
 0x735   :  { %4576 = vrcp.f32 %v2184_v13  ;;  %v7006_v13 = vld [vmem:[#allocation31_spill] sm:$0xff] }
 0x73f   :  { %v4571_v54 = vpop.eup %4570 }
 0x740   :  { %v4573_v63 = vpop.eup %4572 }
 0x741   :  { %v4575_v41 = vpop.eup %4574  ;;  %v2188_v53 = vmul.f32 %v4573_v63, %v4571_v54  ;;  %v7003_v54 = vld [vmem:[#allocation28_spill] sm:$0xff]  ;;  %v7004_v63 = vld [vmem:[#allocation29_spill] sm:$0xff] }
 0x742   :  { %v2187_v26 = vmul.f32 %v4575_v41, %v5881_v2  ;;  %v4577_v23 = vpop.eup %4576  ;;  %v6993_v2 = vld [vmem:[#allocation16_spill] sm:$0xff]  ;;  %v7005_v41 = vld [vmem:[#allocation30_spill] sm:$0xff] }
 0x744   :  { %v5954_v27 = vadd.f32 %v2188_v53, %v2187_v26  ;;  %v7007_v26 = vld [vmem:[#allocation32_spill] sm:$0xff]  ;;  %v7008_v53 = vld [vmem:[#allocation33_spill] sm:$0xff] }
 0x746   :  { %4578 = vtanh.f32 %v5954_v27 }
 0x753   :  { %v4579_v35 = vpop.eup %4578 }
 0x754   :  { %v2191_v50 = vmul.f32 %v4579_v35, %v4577_v23  ;;  %v7009_v23 = vld [vmem:[#allocation34_spill] sm:$0xff]  ;;  %v7010_v35 = vld [vmem:[#allocation35_spill] sm:$0xff] }
 0x756   :  { %2259 = vmatmul.mubr.f32.vlgmr.msra.gmra.mxu1 %v2191_v50  ;;  %2330 = vmatmul.mubr.f32.vlgmr.msra.gmra.mxu0 %v2191_v50  ;;  %v7011_v50 = vmov 0.0  }
 0x757   :  { %2400 = vmatpush1.msra.mxu1 %v5687_v38  ;;  %2471 = vmatpush1.msra.mxu0 %v5690_v36 }
 0x758   :  { %2401 = vmatprep.subr.mxu1 %v5693_v3  ;;  %2472 = vmatprep.subr.mxu0 %v5696_v28 }
 0x759   :  { %2402 = vmatpush1.msra.mxu1 %v5699_v47  ;;  %2473 = vmatpush1.msra.mxu0 %v5702_v0 }
 0x75a   :  { %2403 = vmatprep.subr.mxu1 %v5705_v29  ;;  %2474 = vmatprep.subr.mxu0 %v5708_v34 }
 0x75b   :  { %2404 = vmatpush1.msra.mxu1 %v5711_v39  ;;  %2475 = vmatpush1.msra.mxu0 %v5714_v40 }
 0x75c   :  { %2405 = vmatprep.subr.mxu1 %v5717_v42  ;;  %2476 = vmatprep.subr.mxu0 %v5720_v43 }
 0x75d   :  { %2406 = vmatpush1.msra.mxu1 %v5723_v45  ;;  %2477 = vmatpush1.msra.mxu0 %v5726_v46 }
 0x75e   :  { %2407 = vmatprep.subr.mxu1 %v5729_v48  ;;  %2478 = vmatprep.subr.mxu0 %v5732_v49 }
 0x75f   :  { %2408 = vmatpush1.msra.mxu1 %v5735_v51  ;;  %2479 = vmatpush1.msra.mxu0 %v5738_v52 }
 0x760   :  { %2409 = vmatprep.subr.mxu1 %v5741_v55  ;;  %2480 = vmatprep.subr.mxu0 %v5744_v56 }
 0x761   :  { %2410 = vmatpush1.msra.mxu1 %v5747_v57  ;;  %2481 = vmatpush1.msra.mxu0 %v5750_v58 }
 0x762   :  { %2411 = vmatprep.subr.mxu1 %v5753_v59  ;;  %2482 = vmatprep.subr.mxu0 %v5756_v60 }
 0x763   :  { %2412 = vmatpush1.msra.mxu1 %v5759_v61  ;;  %2483 = vmatpush1.msra.mxu0 %v5762_v62 }
 0x764   :  { %2413 = vmatprep.subr.mxu1 %v5765_v1  ;;  %2484 = vmatprep.subr.mxu0 %v5768_v5 }
 0x765   :  { %2414 = vmatpush1.msra.mxu1 %v5771_v6  ;;  %2485 = vmatpush1.msra.mxu0 %v5774_v7 }
 0x766   :  { %2415 = vmatprep.subr.mxu1 %v5777_v8  ;;  %2486 = vmatprep.subr.mxu0 %v5780_v9 }
 0x767   :  { %2416 = vmatpush1.msra.mxu1 %v5783_v11  ;;  %2487 = vmatpush1.msra.mxu0 %v5786_v12 }
 0x768   :  { %2417 = vmatprep.subr.mxu1 %v5789_v14  ;;  %2488 = vmatprep.subr.mxu0 %v5792_v15 }
 0x769   :  { %2418 = vmatpush1.msra.mxu1 %v5795_v16  ;;  %2489 = vmatpush1.msra.mxu0 %v5798_v17 }
 0x76a   :  { %2419 = vmatprep.subr.mxu1 %v5801_v18  ;;  %2490 = vmatprep.subr.mxu0 %v5804_v19 }
 0x76b   :  { %2420 = vmatpush1.msra.mxu1 %v5807_v20  ;;  %2491 = vmatpush1.msra.mxu0 %v5810_v21 }
 0x76c   :  { %2421 = vmatprep.subr.mxu1 %v5813_v22  ;;  %2492 = vmatprep.subr.mxu0 %v6993_v2 }
 0x76d   :  { %2422 = vmatpush1.msra.mxu1 %v6994_v31  ;;  %2493 = vmatpush1.msra.mxu0 %v6995_v44 }
 0x76e   :  { %2423 = vmatprep.subr.mxu1 %v6996_v4  ;;  %2494 = vmatprep.subr.mxu0 %v6997_v24 }
 0x76f   :  { %2424 = vmatpush1.msra.mxu1 %v6998_v25  ;;  %2495 = vmatpush1.msra.mxu0 %v6999_v10 }
 0x770   :  { %2425 = vmatprep.subr.mxu1 %v7000_v32  ;;  %2496 = vmatprep.subr.mxu0 %v7001_v37  ;;  %v7012_v37 = vld [vmem:[#allocation36_spill] sm:$0xff] }
 0x771   :  { %2426 = vmatpush1.msra.mxu1 %v7002_v30  ;;  %2497 = vmatpush1.msra.mxu0 %v7003_v54  ;;  %v7013_v54 = vld [vmem:[#allocation18_spill] sm:$0xff] }
 0x772   :  { %2427 = vmatprep.subr.mxu1 %v7004_v63  ;;  %2498 = vmatprep.subr.mxu0 %v7005_v41  ;;  %v7014_v63 = vld [vmem:[#allocation19_spill] sm:$0xff] }
 0x773   :  { %2428 = vmatpush1.msra.mxu1 %v7006_v13  ;;  %2499 = vmatpush1.msra.mxu0 %v7007_v26 }
 0x774   :  { %2429 = vmatprep.subr.mxu1 %v7008_v53  ;;  %2500 = vmatprep.subr.mxu0 %v7009_v23 }
 0x775   :  { %2430 = vmatpush1.msra.mxu1 %v7010_v35  ;;  %2463 = vmatprep.mubr.f32.mxu1 %v7011_v50 }
 0x776   :  { %2501 = vmatpush1.msra.mxu0 %v7012_v37  ;;  %2534 = vmatprep.mubr.f32.mxu0 %v7011_v50  ;;  %v2193_v37 = vld [vmem:[#allocation2 + $0x6] ss:$8 sm:$0xf] }
 0x777   :  { %2604 = vmatprep.subr.mxu1 %v7013_v54  ;;  %2675 = vmatprep.subr.mxu0 %v7014_v63 }
 0x816   :  { %v2260_v41 = vpop.f32.mrf.mxu1  ;;  %v2331_v13 = vpop.f32.mrf.mxu0 }
 0x818   :  { %v2262_v30 = vpop.f32.mrf.mxu1  ;;  %v2333_v26 = vpop.f32.mrf.mxu0 }
 0x819   :  { %v2340_v32 = vcombine.low %v2260_v41, %v2262_v30  ;;  %v2341_v53 = vcombine.low %v2331_v13, %v2333_v26 }
 0x81b   :  { %v2348_v23 = vrot.slane %v2340_v32, %v5456_v33  ;;  %v2355_v35 = vrot.slane %v2341_v53, %v5456_v33 }
 0x81d   :  { %v2356_v10 = vcombine.low %v2348_v23, %v2355_v35  ;;  %v7018_v23 = vld [vmem:[#allocation21_spill] sm:$0xff]  ;;  %v7019_v35 = vld [vmem:[#allocation22_spill] sm:$0xff] }
 0x81f   :  { %v2363_v25 = vrot.slane %v2356_v10, %v5456_v33 }
 0x821   :  { %v2365_v24 = vadd.f32 %v2363_v25, %v2193_v37 }
 0x823   :  { %v4388_v50 = vmul.f32 -1.442695, %v2365_v24  ;;  %v2373_v4 = vrot.slane %v2365_v24, 1  ;;  %v2384_v63 = vrot.slane %v2365_v24, 3  ;;  %v2381_v2 = vrot.slane %v2365_v24, 2 }
 0x825   :  { %4580 = vpow2.f32 %v4388_v50  ;;  %v4389_v54 = vmul.f32 -1.442695, %v2373_v4  ;;  %v4390_v44 = vmul.f32 -1.442695, %v2384_v63  ;;  %v7017_v63 = vld [vmem:[#allocation20_spill] sm:$0xff]  ;;  %v7020_v50 = vld [vmem:[#allocation23_spill] sm:$0xff] }
 0x827   :  { %4582 = vpow2.f32 %v4389_v54 }
 0x828   :  { %4584 = vpow2.f32 %v4390_v44 }
 0x832   :  { %v4581_v31 = vpop.eup %4580 }
 0x833   :  { %v2369_v30 = vadd.f32 1.0, %v4581_v31 }
 0x834   :  { %v4583_v41 = vpop.eup %4582 }
 0x835   :  { %4586 = vrcp.f32 %v2369_v30  ;;  %v2378_v32 = vadd.f32 1.0, %v4583_v41  ;;  %v4585_v13 = vpop.eup %4584  ;;  %v7021_v30 = vld [vmem:[#allocation24_spill] sm:$0xff]  ;;  %v7022_v41 = vld [vmem:[#allocation25_spill] sm:$0xff] }
 0x836   :  { %4588 = vtanh.f32 %v2381_v2  ;;  %v2389_v37 = vadd.f32 1.0, %v4585_v13  ;;  %v7016_v2 = vld [vmem:[#allocation17_spill] sm:$0xff]  ;;  %v7024_v13 = vld [vmem:[#allocation27_spill] sm:$0xff] }
 0x837   :  { %4590 = vrcp.f32 %v2378_v32  ;;  %v7023_v32 = vld [vmem:[#allocation26_spill] sm:$0xff] }
 0x838   :  { %4592 = vrcp.f32 %v2389_v37  ;;  %v7028_v37 = vld [vmem:[#allocation31_spill] sm:$0xff] }
 0x842   :  { %v4587_v10 = vpop.eup %4586 }
 0x843   :  { %v4589_v26 = vpop.eup %4588 }
 0x844   :  { %v4591_v25 = vpop.eup %4590  ;;  %v2393_v4 = vmul.f32 %v4589_v26, %v4587_v10  ;;  %v7025_v10 = vld [vmem:[#allocation28_spill] sm:$0xff]  ;;  %v7026_v26 = vld [vmem:[#allocation29_spill] sm:$0xff] }
 0x845   :  { %v2392_v53 = vmul.f32 %v4591_v25, %v5954_v27  ;;  %v4593_v31 = vpop.eup %4592  ;;  %v7015_v27 = vld [vmem:[#allocation16_spill] sm:$0xff]  ;;  %v7027_v25 = vld [vmem:[#allocation30_spill] sm:$0xff] }
 0x847   :  { %v6027_v54 = vadd.f32 %v2393_v4, %v2392_v53  ;;  %v7029_v53 = vld [vmem:[#allocation32_spill] sm:$0xff]  ;;  %v7030_v4 = vld [vmem:[#allocation33_spill] sm:$0xff] }
 0x849   :  { %4594 = vtanh.f32 %v6027_v54 }
 0x856   :  { %v4595_v24 = vpop.eup %4594 }
 0x857   :  { %v2396_v44 = vmul.f32 %v4595_v24, %v4593_v31  ;;  %v7031_v31 = vld [vmem:[#allocation34_spill] sm:$0xff]  ;;  %v7032_v24 = vld [vmem:[#allocation35_spill] sm:$0xff] }
 0x859   :  { %2464 = vmatmul.mubr.f32.vlgmr.msra.gmra.mxu1 %v2396_v44  ;;  %2535 = vmatmul.mubr.f32.vlgmr.msra.gmra.mxu0 %v2396_v44  ;;  %v7033_v44 = vmov 0.0  }
 0x85a   :  { %2605 = vmatpush1.msra.mxu1 %v5687_v38  ;;  %2676 = vmatpush1.msra.mxu0 %v5690_v36 }
 0x85b   :  { %2606 = vmatprep.subr.mxu1 %v5693_v3  ;;  %2677 = vmatprep.subr.mxu0 %v5696_v28 }
 0x85c   :  { %2607 = vmatpush1.msra.mxu1 %v5699_v47  ;;  %2678 = vmatpush1.msra.mxu0 %v5702_v0 }
 0x85d   :  { %2608 = vmatprep.subr.mxu1 %v5705_v29  ;;  %2679 = vmatprep.subr.mxu0 %v5708_v34 }
 0x85e   :  { %2609 = vmatpush1.msra.mxu1 %v5711_v39  ;;  %2680 = vmatpush1.msra.mxu0 %v5714_v40 }
 0x85f   :  { %2610 = vmatprep.subr.mxu1 %v5717_v42  ;;  %2681 = vmatprep.subr.mxu0 %v5720_v43 }
 0x860   :  { %2611 = vmatpush1.msra.mxu1 %v5723_v45  ;;  %2682 = vmatpush1.msra.mxu0 %v5726_v46 }
 0x861   :  { %2612 = vmatprep.subr.mxu1 %v5729_v48  ;;  %2683 = vmatprep.subr.mxu0 %v5732_v49 }
 0x862   :  { %2613 = vmatpush1.msra.mxu1 %v5735_v51  ;;  %2684 = vmatpush1.msra.mxu0 %v5738_v52 }
 0x863   :  { %2614 = vmatprep.subr.mxu1 %v5741_v55  ;;  %2685 = vmatprep.subr.mxu0 %v5744_v56 }
 0x864   :  { %2615 = vmatpush1.msra.mxu1 %v5747_v57  ;;  %2686 = vmatpush1.msra.mxu0 %v5750_v58 }
 0x865   :  { %2616 = vmatprep.subr.mxu1 %v5753_v59  ;;  %2687 = vmatprep.subr.mxu0 %v5756_v60 }
 0x866   :  { %2617 = vmatpush1.msra.mxu1 %v5759_v61  ;;  %2688 = vmatpush1.msra.mxu0 %v5762_v62 }
 0x867   :  { %2618 = vmatprep.subr.mxu1 %v5765_v1  ;;  %2689 = vmatprep.subr.mxu0 %v5768_v5 }
 0x868   :  { %2619 = vmatpush1.msra.mxu1 %v5771_v6  ;;  %2690 = vmatpush1.msra.mxu0 %v5774_v7 }
 0x869   :  { %2620 = vmatprep.subr.mxu1 %v5777_v8  ;;  %2691 = vmatprep.subr.mxu0 %v5780_v9 }
 0x86a   :  { %2621 = vmatpush1.msra.mxu1 %v5783_v11  ;;  %2692 = vmatpush1.msra.mxu0 %v5786_v12 }
 0x86b   :  { %2622 = vmatprep.subr.mxu1 %v5789_v14  ;;  %2693 = vmatprep.subr.mxu0 %v5792_v15 }
 0x86c   :  { %2623 = vmatpush1.msra.mxu1 %v5795_v16  ;;  %2694 = vmatpush1.msra.mxu0 %v5798_v17 }
 0x86d   :  { %2624 = vmatprep.subr.mxu1 %v5801_v18  ;;  %2695 = vmatprep.subr.mxu0 %v5804_v19 }
 0x86e   :  { %2625 = vmatpush1.msra.mxu1 %v5807_v20  ;;  %2696 = vmatpush1.msra.mxu0 %v5810_v21 }
 0x86f   :  { %2626 = vmatprep.subr.mxu1 %v5813_v22  ;;  %2697 = vmatprep.subr.mxu0 %v7015_v27 }
 0x870   :  { %2627 = vmatpush1.msra.mxu1 %v7016_v2  ;;  %2698 = vmatpush1.msra.mxu0 %v7017_v63 }
 0x871   :  { %2628 = vmatprep.subr.mxu1 %v7018_v23  ;;  %2699 = vmatprep.subr.mxu0 %v7019_v35 }
 0x872   :  { %2629 = vmatpush1.msra.mxu1 %v7020_v50  ;;  %2700 = vmatpush1.msra.mxu0 %v7021_v30 }
 0x873   :  { %2630 = vmatprep.subr.mxu1 %v7022_v41  ;;  %2701 = vmatprep.subr.mxu0 %v7023_v32  ;;  %v7034_v32 = vld [vmem:[#allocation36_spill] sm:$0xff] }
 0x874   :  { %2631 = vmatpush1.msra.mxu1 %v7024_v13  ;;  %2702 = vmatpush1.msra.mxu0 %v7025_v10  ;;  %v7035_v10 = vld [vmem:[#allocation18_spill] sm:$0xff] }
 0x875   :  { %2632 = vmatprep.subr.mxu1 %v7026_v26  ;;  %2703 = vmatprep.subr.mxu0 %v7027_v25  ;;  %v7036_v26 = vld [vmem:[#allocation19_spill] sm:$0xff] }
 0x876   :  { %2633 = vmatpush1.msra.mxu1 %v7028_v37  ;;  %2704 = vmatpush1.msra.mxu0 %v7029_v53 }
 0x877   :  { %2634 = vmatprep.subr.mxu1 %v7030_v4  ;;  %2705 = vmatprep.subr.mxu0 %v7031_v31 }
 0x878   :  { %2635 = vmatpush1.msra.mxu1 %v7032_v24  ;;  %2668 = vmatprep.mubr.f32.mxu1 %v7033_v44 }
 0x879   :  { %2706 = vmatpush1.msra.mxu0 %v7034_v32  ;;  %2739 = vmatprep.mubr.f32.mxu0 %v7033_v44  ;;  %v2398_v32 = vld [vmem:[#allocation2 + $0x7] ss:$8 sm:$0xf] }
 0x87a   :  { %2809 = vmatprep.subr.mxu1 %v7035_v10  ;;  %2880 = vmatprep.subr.mxu0 %v7036_v26 }
 0x919   :  { %v2465_v25 = vpop.f32.mrf.mxu1  ;;  %v2536_v37 = vpop.f32.mrf.mxu0 }
 0x91b   :  { %v2467_v13 = vpop.f32.mrf.mxu1  ;;  %v2538_v53 = vpop.f32.mrf.mxu0 }
 0x91c   :  { %v2545_v41 = vcombine.low %v2465_v25, %v2467_v13  ;;  %v2546_v4 = vcombine.low %v2536_v37, %v2538_v53 }
 0x91e   :  { %v2553_v31 = vrot.slane %v2545_v41, %v5456_v33  ;;  %v2560_v24 = vrot.slane %v2546_v4, %v5456_v33 }
 0x920   :  { %v2561_v30 = vcombine.low %v2553_v31, %v2560_v24 }
 0x922   :  { %v2568_v50 = vrot.slane %v2561_v30, %v5456_v33 }
 0x924   :  { %v2570_v35 = vadd.f32 %v2568_v50, %v2398_v32 }
 0x926   :  { %v4391_v44 = vmul.f32 -1.442695, %v2570_v35  ;;  %v2578_v23 = vrot.slane %v2570_v35, 1  ;;  %v2589_v26 = vrot.slane %v2570_v35, 3  ;;  %v2586_v27 = vrot.slane %v2570_v35, 2 }
 0x928   :  { %4596 = vpow2.f32 %v4391_v44  ;;  %v4392_v10 = vmul.f32 -1.442695, %v2578_v23  ;;  %v4393_v63 = vmul.f32 -1.442695, %v2589_v26 }
 0x92a   :  { %4598 = vpow2.f32 %v4392_v10 }
 0x92b   :  { %4600 = vpow2.f32 %v4393_v63 }
 0x935   :  { %v4597_v2 = vpop.eup %4596 }
 0x936   :  { %v2574_v13 = vadd.f32 1.0, %v4597_v2 }
 0x937   :  { %v4599_v25 = vpop.eup %4598 }
 0x938   :  { %4602 = vrcp.f32 %v2574_v13  ;;  %v2583_v41 = vadd.f32 1.0, %v4599_v25  ;;  %v4601_v37 = vpop.eup %4600 }
 0x939   :  { %4604 = vtanh.f32 %v2586_v27  ;;  %v2594_v32 = vadd.f32 1.0, %v4601_v37 }
 0x93a   :  { %4606 = vrcp.f32 %v2583_v41 }
 0x93b   :  { %4608 = vrcp.f32 %v2594_v32  ;;  %v6183_v32 = vld [vmem:[#allocation8 + $0x1f0] sm:$0xff] }
 0x945   :  { %v4603_v30 = vpop.eup %4602 }
 0x946   :  { %v4605_v53 = vpop.eup %4604 }
 0x947   :  { %v4607_v50 = vpop.eup %4606  ;;  %v2598_v23 = vmul.f32 %v4605_v53, %v4603_v30 }
 0x948   :  { %v2597_v4 = vmul.f32 %v4607_v50, %v6027_v54  ;;  %v4609_v2 = vpop.eup %4608  ;;  %v6180_v50 = vld [vmem:[#allocation8 + $0x1e0] sm:$0xff] }
 0x94a   :  { %v6100_v31 = vadd.f32 %v2598_v23, %v2597_v4  ;;  %v6186_v4 = vld [vmem:[#allocation8 + $0x1c8] sm:$0xff]  ;;  %v6189_v23 = vld [vmem:[#allocation8 + $0x1d8] sm:$0xff] }
 0x94c   :  { %4610 = vtanh.f32 %v6100_v31 }
 0x959   :  { %v4611_v35 = vpop.eup %4610 }
 0x95a   :  { %v2601_v63 = vmul.f32 %v4611_v35, %v4609_v2  ;;  %v6195_v2 = vld [vmem:[#allocation8 + $0x1d0] sm:$0xff]  ;;  %v6198_v35 = vld [vmem:[#allocation8 + $0x1a8] sm:$0xff] }
 0x95c   :  { %2669 = vmatmul.mubr.f32.vlgmr.msra.gmra.mxu1 %v2601_v63  ;;  %2740 = vmatmul.mubr.f32.vlgmr.msra.gmra.mxu0 %v2601_v63  ;;  %v6201_v63 = vld [vmem:[#allocation8 + $0x1b8] sm:$0xff] }
 0x95d   :  { %2810 = vmatpush1.msra.mxu1 %v5687_v38  ;;  %2881 = vmatpush1.msra.mxu0 %v5690_v36  ;;  %v7037_v38 = vld [vmem:[#allocation16_spill] sm:$0xff]  ;;  %v7038_v36 = vld [vmem:[#allocation17_spill] sm:$0xff] }
 0x95e   :  { %2811 = vmatprep.subr.mxu1 %v5693_v3  ;;  %2882 = vmatprep.subr.mxu0 %v5696_v28  ;;  %v7039_v3 = vld [vmem:[#allocation20_spill] sm:$0xff]  ;;  %v7040_v28 = vld [vmem:[#allocation21_spill] sm:$0xff] }
 0x95f   :  { %2812 = vmatpush1.msra.mxu1 %v5699_v47  ;;  %2883 = vmatpush1.msra.mxu0 %v5702_v0  ;;  %v7041_v47 = vld [vmem:[#allocation22_spill] sm:$0xff]  ;;  %v7042_v0 = vld [vmem:[#allocation23_spill] sm:$0xff] }
 0x960   :  { %2813 = vmatprep.subr.mxu1 %v5705_v29  ;;  %2884 = vmatprep.subr.mxu0 %v5708_v34  ;;  %v7043_v29 = vld [vmem:[#allocation24_spill] sm:$0xff]  ;;  %v7044_v34 = vld [vmem:[#allocation25_spill] sm:$0xff] }
 0x961   :  { %2814 = vmatpush1.msra.mxu1 %v5711_v39  ;;  %2885 = vmatpush1.msra.mxu0 %v5714_v40  ;;  %v7045_v39 = vld [vmem:[#allocation26_spill] sm:$0xff]  ;;  %v7046_v40 = vld [vmem:[#allocation27_spill] sm:$0xff] }
 0x962   :  { %2815 = vmatprep.subr.mxu1 %v5717_v42  ;;  %2886 = vmatprep.subr.mxu0 %v5720_v43  ;;  %v7047_v42 = vld [vmem:[#allocation28_spill] sm:$0xff]  ;;  %v7048_v43 = vld [vmem:[#allocation29_spill] sm:$0xff] }
 0x963   :  { %2816 = vmatpush1.msra.mxu1 %v5723_v45  ;;  %2887 = vmatpush1.msra.mxu0 %v5726_v46  ;;  %v7049_v45 = vld [vmem:[#allocation30_spill] sm:$0xff]  ;;  %v7050_v46 = vld [vmem:[#allocation31_spill] sm:$0xff] }
 0x964   :  { %2817 = vmatprep.subr.mxu1 %v5729_v48  ;;  %2888 = vmatprep.subr.mxu0 %v5732_v49  ;;  %v7051_v48 = vld [vmem:[#allocation32_spill] sm:$0xff]  ;;  %v7052_v49 = vld [vmem:[#allocation33_spill] sm:$0xff] }
 0x965   :  { %2818 = vmatpush1.msra.mxu1 %v5735_v51  ;;  %2889 = vmatpush1.msra.mxu0 %v5738_v52  ;;  %v7053_v51 = vld [vmem:[#allocation34_spill] sm:$0xff]  ;;  %v7054_v52 = vld [vmem:[#allocation35_spill] sm:$0xff] }
 0x966   :  { %2819 = vmatprep.subr.mxu1 %v5741_v55  ;;  %2890 = vmatprep.subr.mxu0 %v5744_v56  ;;  %v7055_v55 = vmov 0.0   ;;  %v7056_v56 = vld [vmem:[#allocation36_spill] sm:$0xff] }
 0x967   :  { %2820 = vmatpush1.msra.mxu1 %v5747_v57  ;;  %2891 = vmatpush1.msra.mxu0 %v5750_v58  ;;  %v6167_v57 = vld [vmem:[#allocation8 + $0x1e8] sm:$0xff]  ;;  %v6170_v58 = vld [vmem:[#allocation8 + $0x1f8] sm:$0xff] }
 0x968   :  { %2821 = vmatprep.subr.mxu1 %v5753_v59  ;;  %2892 = vmatprep.subr.mxu0 %v5756_v60  ;;  %7057 = vst [vmem:[#allocation37_spill] sm:$0xff] %v6167_v57  ;;  %7058 = vst [vmem:[#allocation38_spill] sm:$0xff] %v6170_v58 }
 0x969   :  { %2822 = vmatpush1.msra.mxu1 %v5759_v61  ;;  %2893 = vmatpush1.msra.mxu0 %v5762_v62 }
 0x96a   :  { %2823 = vmatprep.subr.mxu1 %v5765_v1  ;;  %2894 = vmatprep.subr.mxu0 %v5768_v5 }
 0x96b   :  { %2824 = vmatpush1.msra.mxu1 %v5771_v6  ;;  %2895 = vmatpush1.msra.mxu0 %v5774_v7 }
 0x96c   :  { %2825 = vmatprep.subr.mxu1 %v5777_v8  ;;  %2896 = vmatprep.subr.mxu0 %v5780_v9 }
 0x96d   :  { %2826 = vmatpush1.msra.mxu1 %v5783_v11  ;;  %2897 = vmatpush1.msra.mxu0 %v5786_v12  ;;  %v2603_v11 = vld [vmem:[#allocation2 + $0x20] ss:$8 sm:$0xf] }
 0x96e   :  { %2827 = vmatprep.subr.mxu1 %v5789_v14  ;;  %2898 = vmatprep.subr.mxu0 %v5792_v15 }
 0x96f   :  { %2828 = vmatpush1.msra.mxu1 %v5795_v16  ;;  %2899 = vmatpush1.msra.mxu0 %v5798_v17 }
 0x970   :  { %2829 = vmatprep.subr.mxu1 %v5801_v18  ;;  %2900 = vmatprep.subr.mxu0 %v5804_v19 }
 0x971   :  { %2830 = vmatpush1.msra.mxu1 %v5807_v20  ;;  %2901 = vmatpush1.msra.mxu0 %v5810_v21 }
 0x972   :  { %2831 = vmatprep.subr.mxu1 %v5813_v22  ;;  %2902 = vmatprep.subr.mxu0 %v7037_v38  ;;  %v6204_v38 = vld [vmem:[#allocation8 + $0x1a0] sm:$0xff] }
 0x973   :  { %2832 = vmatpush1.msra.mxu1 %v7038_v36  ;;  %2903 = vmatpush1.msra.mxu0 %v7039_v3  ;;  %v6207_v36 = vld [vmem:[#allocation8 + $0x1b0] sm:$0xff]  ;;  %v6210_v3 = vld [vmem:[#allocation8 + $0x188] sm:$0xff] }
 0x974   :  { %2833 = vmatprep.subr.mxu1 %v7040_v28  ;;  %2904 = vmatprep.subr.mxu0 %v7041_v47  ;;  %v6213_v28 = vld [vmem:[#allocation8 + $0x198] sm:$0xff]  ;;  %v6216_v47 = vld [vmem:[#allocation8 + $0x180] sm:$0xff] }
 0x975   :  { %2834 = vmatpush1.msra.mxu1 %v7042_v0  ;;  %2905 = vmatpush1.msra.mxu0 %v7043_v29  ;;  %v6219_v0 = vld [vmem:[#allocation8 + $0x190] sm:$0xff]  ;;  %v6222_v29 = vld [vmem:[#allocation8 + $0x168] sm:$0xff] }
 0x976   :  { %2835 = vmatprep.subr.mxu1 %v7044_v34  ;;  %2906 = vmatprep.subr.mxu0 %v7045_v39  ;;  %v6225_v34 = vld [vmem:[#allocation8 + $0x178] sm:$0xff]  ;;  %v6228_v39 = vld [vmem:[#allocation8 + $0x160] sm:$0xff] }
 0x977   :  { %2836 = vmatpush1.msra.mxu1 %v7046_v40  ;;  %2907 = vmatpush1.msra.mxu0 %v7047_v42  ;;  %v6231_v40 = vld [vmem:[#allocation8 + $0x170] sm:$0xff]  ;;  %v6234_v42 = vld [vmem:[#allocation8 + $0x148] sm:$0xff] }
 0x978   :  { %2837 = vmatprep.subr.mxu1 %v7048_v43  ;;  %2908 = vmatprep.subr.mxu0 %v7049_v45  ;;  %v6237_v43 = vld [vmem:[#allocation8 + $0x158] sm:$0xff]  ;;  %v6240_v45 = vld [vmem:[#allocation8 + $0x140] sm:$0xff] }
 0x979   :  { %2838 = vmatpush1.msra.mxu1 %v7050_v46  ;;  %2909 = vmatpush1.msra.mxu0 %v7051_v48  ;;  %v6243_v46 = vld [vmem:[#allocation8 + $0x150] sm:$0xff]  ;;  %v6246_v48 = vld [vmem:[#allocation8 + $0x128] sm:$0xff] }
 0x97a   :  { %2839 = vmatprep.subr.mxu1 %v7052_v49  ;;  %2910 = vmatprep.subr.mxu0 %v7053_v51  ;;  %v6249_v49 = vld [vmem:[#allocation8 + $0x138] sm:$0xff]  ;;  %v6252_v51 = vld [vmem:[#allocation8 + $0x120] sm:$0xff] }
 0x97b   :  { %2840 = vmatpush1.msra.mxu1 %v7054_v52  ;;  %2873 = vmatprep.mubr.f32.mxu1 %v7055_v55  ;;  %v6255_v52 = vld [vmem:[#allocation8 + $0x130] sm:$0xff] }
 0x97c   :  { %2911 = vmatpush1.msra.mxu0 %v7056_v56  ;;  %2944 = vmatprep.mubr.f32.mxu0 %v7055_v55  ;;  %v6258_v56 = vld [vmem:[#allocation8 + $0x108] sm:$0xff] }
 0x97d   :  { %3014 = vmatprep.subr.mxu1 %v6167_v57  ;;  %3085 = vmatprep.subr.mxu0 %v6170_v58 }
 0xa1c   :  { %v2670_v59 = vpop.f32.mrf.mxu1  ;;  %v2741_v60 = vpop.f32.mrf.mxu0 }
 0xa1e   :  { %v2672_v61 = vpop.f32.mrf.mxu1  ;;  %v2743_v62 = vpop.f32.mrf.mxu0 }
 0xa1f   :  { %v2750_v1 = vcombine.low %v2670_v59, %v2672_v61  ;;  %v2751_v5 = vcombine.low %v2741_v60, %v2743_v62  ;;  %v6261_v59 = vld [vmem:[#allocation8 + $0x118] sm:$0xff]  ;;  %v6264_v60 = vld [vmem:[#allocation8 + $0x100] sm:$0xff]  ;;  %v6267_v61 = vld [vmem:[#allocation8 + $0x110] sm:$0xff] }
 0xa20   :  { %v6270_v62 = vld [vmem:[#allocation8 + $0xe8] sm:$0xff] }
 0xa21   :  { %v2758_v6 = vrot.slane %v2750_v1, %v5456_v33  ;;  %v2765_v7 = vrot.slane %v2751_v5, %v5456_v33  ;;  %v6273_v1 = vld [vmem:[#allocation8 + $0xf8] sm:$0xff]  ;;  %v6276_v5 = vld [vmem:[#allocation8 + $0xe0] sm:$0xff] }
 0xa23   :  { %v2766_v8 = vcombine.low %v2758_v6, %v2765_v7  ;;  %v6279_v6 = vld [vmem:[#allocation8 + $0xf0] sm:$0xff]  ;;  %v6282_v7 = vld [vmem:[#allocation8 + $0xc8] sm:$0xff] }
 0xa25   :  { %v2773_v9 = vrot.slane %v2766_v8, %v5456_v33  ;;  %v6285_v8 = vld [vmem:[#allocation8 + $0xd8] sm:$0xff] }
 0xa27   :  { %v2775_v12 = vadd.f32 %v2773_v9, %v2603_v11  ;;  %v6288_v9 = vld [vmem:[#allocation8 + $0xc0] sm:$0xff]  ;;  %v6291_v11 = vld [vmem:[#allocation8 + $0xd0] sm:$0xff] }
 0xa29   :  { %v4394_v14 = vmul.f32 -1.442695, %v2775_v12  ;;  %v2783_v15 = vrot.slane %v2775_v12, 1  ;;  %v2794_v17 = vrot.slane %v2775_v12, 3  ;;  %v2791_v20 = vrot.slane %v2775_v12, 2  ;;  %v6294_v12 = vld [vmem:[#allocation8 + $0xa8] sm:$0xff] }
 0xa2b   :  { %4612 = vpow2.f32 %v4394_v14  ;;  %v4395_v16 = vmul.f32 -1.442695, %v2783_v15  ;;  %v4396_v18 = vmul.f32 -1.442695, %v2794_v17  ;;  %v6297_v14 = vld [vmem:[#allocation8 + $0xb8] sm:$0xff]  ;;  %v6300_v15 = vld [vmem:[#allocation8 + $0xa0] sm:$0xff] }
 0xa2c   :  { %v6306_v17 = vld [vmem:[#allocation8 + $0x88] sm:$0xff] }
 0xa2d   :  { %4614 = vpow2.f32 %v4395_v16  ;;  %v6303_v16 = vld [vmem:[#allocation8 + $0xb0] sm:$0xff] }
 0xa2e   :  { %4616 = vpow2.f32 %v4396_v18  ;;  %v6309_v18 = vld [vmem:[#allocation8 + $0x98] sm:$0xff] }
 0xa2f   :  { %7059 = vst [vmem:[#allocation18_spill] sm:$0xff] %v6309_v18 }
 0xa38   :  { %v4613_v19 = vpop.eup %4612 }
 0xa39   :  { %v2779_v21 = vadd.f32 1.0, %v4613_v19  ;;  %v6312_v19 = vld [vmem:[#allocation8 + $0x80] sm:$0xff] }
 0xa3a   :  { %v4615_v22 = vpop.eup %4614  ;;  %7060 = vst [vmem:[#allocation19_spill] sm:$0xff] %v6312_v19 }
 0xa3b   :  { %4618 = vrcp.f32 %v2779_v21  ;;  %v2788_v54 = vadd.f32 1.0, %v4615_v22  ;;  %v4617_v27 = vpop.eup %4616  ;;  %v6318_v21 = vld [vmem:[#allocation8 + $0x68] sm:$0xff]  ;;  %v6321_v22 = vld [vmem:[#allocation8 + $0x78] sm:$0xff] }
 0xa3c   :  { %4620 = vtanh.f32 %v2791_v20  ;;  %v2799_v26 = vadd.f32 1.0, %v4617_v27  ;;  %v6315_v20 = vld [vmem:[#allocation8 + $0x90] sm:$0xff]  ;;  %7062 = vst [vmem:[#allocation17_spill] sm:$0xff] %v6318_v21  ;;  %7063 = vst [vmem:[#allocation20_spill] sm:$0xff] %v6321_v22 }
 0xa3d   :  { %4622 = vrcp.f32 %v2788_v54  ;;  %7061 = vst [vmem:[#allocation16_spill] sm:$0xff] %v6315_v20  ;;  %v6324_v54 = vld [vmem:[#allocation8 + $0x60] sm:$0xff]  ;;  %v6327_v27 = vld [vmem:[#allocation8 + $0x70] sm:$0xff] }
 0xa3e   :  { %4624 = vrcp.f32 %v2799_v26  ;;  %7064 = vst [vmem:[#allocation21_spill] sm:$0xff] %v6324_v54  ;;  %7065 = vst [vmem:[#allocation22_spill] sm:$0xff] %v6327_v27  ;;  %v6339_v26 = vld [vmem:[#allocation8 + $0x50] sm:$0xff] }
 0xa3f   :  { %7069 = vst [vmem:[#allocation26_spill] sm:$0xff] %v6339_v26 }
 0xa48   :  { %v4619_v24 = vpop.eup %4618 }
 0xa49   :  { %v4621_v44 = vpop.eup %4620 }
 0xa4a   :  { %v4623_v10 = vpop.eup %4622  ;;  %v2803_v25 = vmul.f32 %v4621_v44, %v4619_v24  ;;  %v6330_v24 = vld [vmem:[#allocation8 + $0x48] sm:$0xff]  ;;  %v6333_v44 = vld [vmem:[#allocation8 + $0x58] sm:$0xff] }
 0xa4b   :  { %v2802_v13 = vmul.f32 %v4623_v10, %v6100_v31  ;;  %v4625_v37 = vpop.eup %4624  ;;  %v6192_v31 = vld [vmem:[#allocation8 + $0x1c0] sm:$0xff]  ;;  %7066 = vst [vmem:[#allocation23_spill] sm:$0xff] %v6330_v24  ;;  %7067 = vst [vmem:[#allocation24_spill] sm:$0xff] %v6333_v44 }
 0xa4c   :  { %v6336_v10 = vld [vmem:[#allocation8 + $0x40] sm:$0xff] }
 0xa4d   :  { %v6177_v41 = vadd.f32 %v2803_v25, %v2802_v13  ;;  %7068 = vst [vmem:[#allocation25_spill] sm:$0xff] %v6336_v10  ;;  %v6342_v13 = vld [vmem:[#allocation8 + $0x28] sm:$0xff]  ;;  %v6345_v25 = vld [vmem:[#allocation8 + $0x38] sm:$0xff] }
 0xa4e   :  { %7070 = vst [vmem:[#allocation27_spill] sm:$0xff] %v6342_v13  ;;  %7071 = vst [vmem:[#allocation28_spill] sm:$0xff] %v6345_v25 }
 0xa4f   :  { %4626 = vtanh.f32 %v6177_v41 }
 0xa5c   :  { %v4627_v30 = vpop.eup %4626 }
 0xa5d   :  { %v2806_v53 = vmul.f32 %v4627_v30, %v4625_v37  ;;  %v6348_v37 = vld [vmem:[#allocation8 + $0x20] sm:$0xff]  ;;  %v6351_v30 = vld [vmem:[#allocation8 + $0x30] sm:$0xff] }
 0xa5e   :  { %7072 = vst [vmem:[#allocation29_spill] sm:$0xff] %v6348_v37  ;;  %7073 = vst [vmem:[#allocation30_spill] sm:$0xff] %v6351_v30 }
 0xa5f   :  { %2874 = vmatmul.mubr.f32.vlgmr.msra.gmra.mxu1 %v2806_v53  ;;  %2945 = vmatmul.mubr.f32.vlgmr.msra.gmra.mxu0 %v2806_v53  ;;  %v6354_v53 = vld [vmem:[#allocation8 + $0x8] sm:$0xff] }
 0xa60   :  { %3015 = vmatpush1.msra.mxu1 %v6180_v50  ;;  %3086 = vmatpush1.msra.mxu0 %v6183_v32  ;;  %7074 = vst [vmem:[#allocation31_spill] sm:$0xff] %v6354_v53 }
 0xa61   :  { %3016 = vmatprep.subr.mxu1 %v6186_v4  ;;  %3087 = vmatprep.subr.mxu0 %v6189_v23 }
 0xa62   :  { %3017 = vmatpush1.msra.mxu1 %v6192_v31  ;;  %3088 = vmatpush1.msra.mxu0 %v6195_v2 }
 0xa63   :  { %3018 = vmatprep.subr.mxu1 %v6198_v35  ;;  %3089 = vmatprep.subr.mxu0 %v6201_v63 }
 0xa64   :  { %3019 = vmatpush1.msra.mxu1 %v6204_v38  ;;  %3090 = vmatpush1.msra.mxu0 %v6207_v36 }
 0xa65   :  { %3020 = vmatprep.subr.mxu1 %v6210_v3  ;;  %3091 = vmatprep.subr.mxu0 %v6213_v28 }
 0xa66   :  { %3021 = vmatpush1.msra.mxu1 %v6216_v47  ;;  %3092 = vmatpush1.msra.mxu0 %v6219_v0 }
 0xa67   :  { %3022 = vmatprep.subr.mxu1 %v6222_v29  ;;  %3093 = vmatprep.subr.mxu0 %v6225_v34 }
 0xa68   :  { %3023 = vmatpush1.msra.mxu1 %v6228_v39  ;;  %3094 = vmatpush1.msra.mxu0 %v6231_v40 }
 0xa69   :  { %3024 = vmatprep.subr.mxu1 %v6234_v42  ;;  %3095 = vmatprep.subr.mxu0 %v6237_v43 }
 0xa6a   :  { %3025 = vmatpush1.msra.mxu1 %v6240_v45  ;;  %3096 = vmatpush1.msra.mxu0 %v6243_v46 }
 0xa6b   :  { %3026 = vmatprep.subr.mxu1 %v6246_v48  ;;  %3097 = vmatprep.subr.mxu0 %v6249_v49 }
 0xa6c   :  { %3027 = vmatpush1.msra.mxu1 %v6252_v51  ;;  %3098 = vmatpush1.msra.mxu0 %v6255_v52 }
 0xa6d   :  { %3028 = vmatprep.subr.mxu1 %v6258_v56  ;;  %3099 = vmatprep.subr.mxu0 %v6261_v59 }
 0xa6e   :  { %3029 = vmatpush1.msra.mxu1 %v6264_v60  ;;  %3100 = vmatpush1.msra.mxu0 %v6267_v61 }
 0xa6f   :  { %3030 = vmatprep.subr.mxu1 %v6270_v62  ;;  %3101 = vmatprep.subr.mxu0 %v6273_v1 }
 0xa70   :  { %3031 = vmatpush1.msra.mxu1 %v6276_v5  ;;  %3102 = vmatpush1.msra.mxu0 %v6279_v6 }
 0xa71   :  { %3032 = vmatprep.subr.mxu1 %v6282_v7  ;;  %3103 = vmatprep.subr.mxu0 %v6285_v8 }
 0xa72   :  { %3033 = vmatpush1.msra.mxu1 %v6288_v9  ;;  %3104 = vmatpush1.msra.mxu0 %v6291_v11 }
 0xa73   :  { %3034 = vmatprep.subr.mxu1 %v6294_v12  ;;  %3105 = vmatprep.subr.mxu0 %v6297_v14 }
 0xa74   :  { %3035 = vmatpush1.msra.mxu1 %v6300_v15  ;;  %3106 = vmatpush1.msra.mxu0 %v6303_v16 }
 0xa75   :  { %3036 = vmatprep.subr.mxu1 %v6306_v17  ;;  %3107 = vmatprep.subr.mxu0 %v6309_v18 }
 0xa76   :  { %3037 = vmatpush1.msra.mxu1 %v6312_v19  ;;  %3108 = vmatpush1.msra.mxu0 %v6315_v20 }
 0xa77   :  { %3038 = vmatprep.subr.mxu1 %v6318_v21  ;;  %3109 = vmatprep.subr.mxu0 %v6321_v22 }
 0xa78   :  { %3039 = vmatpush1.msra.mxu1 %v6324_v54  ;;  %3110 = vmatpush1.msra.mxu0 %v6327_v27 }
 0xa79   :  { %3040 = vmatprep.subr.mxu1 %v6330_v24  ;;  %3111 = vmatprep.subr.mxu0 %v6333_v44 }
 0xa7a   :  { %3041 = vmatpush1.msra.mxu1 %v6336_v10  ;;  %3112 = vmatpush1.msra.mxu0 %v6339_v26  ;;  %v6357_v26 = vld [vmem:[#allocation8 + $0x18] sm:$0xff] }
 0xa7b   :  { %3042 = vmatprep.subr.mxu1 %v6342_v13  ;;  %3113 = vmatprep.subr.mxu0 %v6345_v25  ;;  %7075 = vst [vmem:[#allocation32_spill] sm:$0xff] %v6357_v26  ;;  %v6360_v13 = vld [vmem:[#allocation8] sm:$0xff]  ;;  %v6364_v25 = vld [vmem:[#allocation8 + $0x10] sm:$0xff] }
 0xa7c   :  { %3043 = vmatpush1.msra.mxu1 %v6348_v37  ;;  %3114 = vmatpush1.msra.mxu0 %v6351_v30  ;;  %7076 = vst [vmem:[#allocation33_spill] sm:$0xff] %v6360_v13  ;;  %7077 = vst [vmem:[#allocation34_spill] sm:$0xff] %v6364_v25 }
 0xa7d   :  { %3044 = vmatprep.subr.mxu1 %v6354_v53  ;;  %3115 = vmatprep.subr.mxu0 %v6357_v26 }
 0xa7e   :  { %3045 = vmatpush1.msra.mxu1 %v6360_v13  ;;  %3078 = vmatprep.mubr.f32.mxu1 %v7055_v55 }
 0xa7f   :  { %3116 = vmatpush1.msra.mxu0 %v6364_v25  ;;  %3149 = vmatprep.mubr.f32.mxu0 %v7055_v55  ;;  %v2808_v25 = vld [vmem:[#allocation2 + $0x21] ss:$8 sm:$0xf] }
 0xa80   :  { %3219 = vmatprep.subr.mxu1 %v6167_v57  ;;  %3290 = vmatprep.subr.mxu0 %v6170_v58 }
 0xb1f   :  { %v2875_v53 = vpop.f32.mrf.mxu1  ;;  %v2946_v30 = vpop.f32.mrf.mxu0 }
 0xb21   :  { %v2877_v37 = vpop.f32.mrf.mxu1  ;;  %v2948_v26 = vpop.f32.mrf.mxu0 }
 0xb22   :  { %v2955_v10 = vcombine.low %v2875_v53, %v2877_v37  ;;  %v2956_v44 = vcombine.low %v2946_v30, %v2948_v26  ;;  %v7082_v30 = vld [vmem:[#allocation20_spill] sm:$0xff]  ;;  %v7083_v53 = vld [vmem:[#allocation21_spill] sm:$0xff] }
 0xb24   :  { %v2963_v13 = vrot.slane %v2955_v10, %v5456_v33  ;;  %v2970_v24 = vrot.slane %v2956_v44, %v5456_v33 }
 0xb26   :  { %v2971_v27 = vcombine.low %v2963_v13, %v2970_v24 }
 0xb28   :  { %v2978_v54 = vrot.slane %v2971_v27, %v5456_v33 }
 0xb2a   :  { %v2980_v22 = vadd.f32 %v2978_v54, %v2808_v25  ;;  %v7081_v25 = vld [vmem:[#allocation17_spill] sm:$0xff] }
 0xb2c   :  { %v4397_v55 = vmul.f32 -1.442695, %v2980_v22  ;;  %v2988_v21 = vrot.slane %v2980_v22, 1  ;;  %v2999_v58 = vrot.slane %v2980_v22, 3  ;;  %v2996_v18 = vrot.slane %v2980_v22, 2  ;;  %v7080_v22 = vld [vmem:[#allocation16_spill] sm:$0xff] }
 0xb2e   :  { %4628 = vpow2.f32 %v4397_v55  ;;  %v4398_v57 = vmul.f32 -1.442695, %v2988_v21  ;;  %v4399_v20 = vmul.f32 -1.442695, %v2999_v58 }
 0xb30   :  { %4630 = vpow2.f32 %v4398_v57 }
 0xb31   :  { %4632 = vpow2.f32 %v4399_v20 }
 0xb3b   :  { %v4629_v19 = vpop.eup %4628 }
 0xb3c   :  { %v2984_v37 = vadd.f32 1.0, %v4629_v19 }
 0xb3d   :  { %v4631_v26 = vpop.eup %4630 }
 0xb3e   :  { %4634 = vrcp.f32 %v2984_v37  ;;  %v2993_v10 = vadd.f32 1.0, %v4631_v26  ;;  %v4633_v24 = vpop.eup %4632  ;;  %v7084_v37 = vld [vmem:[#allocation22_spill] sm:$0xff]  ;;  %v7085_v26 = vld [vmem:[#allocation23_spill] sm:$0xff] }
 0xb3f   :  { %4636 = vtanh.f32 %v2996_v18  ;;  %v3004_v13 = vadd.f32 1.0, %v4633_v24  ;;  %v7079_v18 = vld [vmem:[#allocation19_spill] sm:$0xff]  ;;  %v7087_v24 = vld [vmem:[#allocation25_spill] sm:$0xff] }
 0xb40   :  { %4638 = vrcp.f32 %v2993_v10  ;;  %v7086_v10 = vld [vmem:[#allocation24_spill] sm:$0xff] }
 0xb41   :  { %4640 = vrcp.f32 %v3004_v13  ;;  %v7091_v13 = vld [vmem:[#allocation29_spill] sm:$0xff] }
 0xb4b   :  { %v4635_v27 = vpop.eup %4634 }
 0xb4c   :  { %v4637_v44 = vpop.eup %4636 }
 0xb4d   :  { %v4639_v54 = vpop.eup %4638  ;;  %v3008_v21 = vmul.f32 %v4637_v44, %v4635_v27  ;;  %v7088_v27 = vld [vmem:[#allocation26_spill] sm:$0xff]  ;;  %v7089_v44 = vld [vmem:[#allocation27_spill] sm:$0xff] }
 0xb4e   :  { %v3007_v55 = vmul.f32 %v4639_v54, %v6177_v41  ;;  %v4641_v58 = vpop.eup %4640  ;;  %v7078_v41 = vld [vmem:[#allocation18_spill] sm:$0xff]  ;;  %v7090_v54 = vld [vmem:[#allocation28_spill] sm:$0xff] }
 0xb50   :  { %v6374_v57 = vadd.f32 %v3008_v21, %v3007_v55  ;;  %v7092_v55 = vld [vmem:[#allocation30_spill] sm:$0xff]  ;;  %v7093_v21 = vld [vmem:[#allocation31_spill] sm:$0xff] }
 0xb52   :  { %4642 = vtanh.f32 %v6374_v57 }
 0xb5f   :  { %v4643_v19 = vpop.eup %4642 }
 0xb60   :  { %v3011_v20 = vmul.f32 %v4643_v19, %v4641_v58  ;;  %v7094_v58 = vld [vmem:[#allocation32_spill] sm:$0xff]  ;;  %v7095_v19 = vld [vmem:[#allocation33_spill] sm:$0xff] }
 0xb62   :  { %3079 = vmatmul.mubr.f32.vlgmr.msra.gmra.mxu1 %v3011_v20  ;;  %3150 = vmatmul.mubr.f32.vlgmr.msra.gmra.mxu0 %v3011_v20  ;;  %v7096_v20 = vmov 0.0  }
 0xb63   :  { %3220 = vmatpush1.msra.mxu1 %v6180_v50  ;;  %3291 = vmatpush1.msra.mxu0 %v6183_v32 }
 0xb64   :  { %3221 = vmatprep.subr.mxu1 %v6186_v4  ;;  %3292 = vmatprep.subr.mxu0 %v6189_v23 }
 0xb65   :  { %3222 = vmatpush1.msra.mxu1 %v6192_v31  ;;  %3293 = vmatpush1.msra.mxu0 %v6195_v2 }
 0xb66   :  { %3223 = vmatprep.subr.mxu1 %v6198_v35  ;;  %3294 = vmatprep.subr.mxu0 %v6201_v63 }
 0xb67   :  { %3224 = vmatpush1.msra.mxu1 %v6204_v38  ;;  %3295 = vmatpush1.msra.mxu0 %v6207_v36 }
 0xb68   :  { %3225 = vmatprep.subr.mxu1 %v6210_v3  ;;  %3296 = vmatprep.subr.mxu0 %v6213_v28 }
 0xb69   :  { %3226 = vmatpush1.msra.mxu1 %v6216_v47  ;;  %3297 = vmatpush1.msra.mxu0 %v6219_v0 }
 0xb6a   :  { %3227 = vmatprep.subr.mxu1 %v6222_v29  ;;  %3298 = vmatprep.subr.mxu0 %v6225_v34 }
 0xb6b   :  { %3228 = vmatpush1.msra.mxu1 %v6228_v39  ;;  %3299 = vmatpush1.msra.mxu0 %v6231_v40 }
 0xb6c   :  { %3229 = vmatprep.subr.mxu1 %v6234_v42  ;;  %3300 = vmatprep.subr.mxu0 %v6237_v43 }
 0xb6d   :  { %3230 = vmatpush1.msra.mxu1 %v6240_v45  ;;  %3301 = vmatpush1.msra.mxu0 %v6243_v46 }
 0xb6e   :  { %3231 = vmatprep.subr.mxu1 %v6246_v48  ;;  %3302 = vmatprep.subr.mxu0 %v6249_v49 }
 0xb6f   :  { %3232 = vmatpush1.msra.mxu1 %v6252_v51  ;;  %3303 = vmatpush1.msra.mxu0 %v6255_v52 }
 0xb70   :  { %3233 = vmatprep.subr.mxu1 %v6258_v56  ;;  %3304 = vmatprep.subr.mxu0 %v6261_v59 }
 0xb71   :  { %3234 = vmatpush1.msra.mxu1 %v6264_v60  ;;  %3305 = vmatpush1.msra.mxu0 %v6267_v61 }
 0xb72   :  { %3235 = vmatprep.subr.mxu1 %v6270_v62  ;;  %3306 = vmatprep.subr.mxu0 %v6273_v1 }
 0xb73   :  { %3236 = vmatpush1.msra.mxu1 %v6276_v5  ;;  %3307 = vmatpush1.msra.mxu0 %v6279_v6 }
 0xb74   :  { %3237 = vmatprep.subr.mxu1 %v6282_v7  ;;  %3308 = vmatprep.subr.mxu0 %v6285_v8 }
 0xb75   :  { %3238 = vmatpush1.msra.mxu1 %v6288_v9  ;;  %3309 = vmatpush1.msra.mxu0 %v6291_v11 }
 0xb76   :  { %3239 = vmatprep.subr.mxu1 %v6294_v12  ;;  %3310 = vmatprep.subr.mxu0 %v6297_v14 }
 0xb77   :  { %3240 = vmatpush1.msra.mxu1 %v6300_v15  ;;  %3311 = vmatpush1.msra.mxu0 %v6303_v16 }
 0xb78   :  { %3241 = vmatprep.subr.mxu1 %v6306_v17  ;;  %3312 = vmatprep.subr.mxu0 %v7078_v41 }
 0xb79   :  { %3242 = vmatpush1.msra.mxu1 %v7079_v18  ;;  %3313 = vmatpush1.msra.mxu0 %v7080_v22 }
 0xb7a   :  { %3243 = vmatprep.subr.mxu1 %v7081_v25  ;;  %3314 = vmatprep.subr.mxu0 %v7082_v30 }
 0xb7b   :  { %3244 = vmatpush1.msra.mxu1 %v7083_v53  ;;  %3315 = vmatpush1.msra.mxu0 %v7084_v37 }
 0xb7c   :  { %3245 = vmatprep.subr.mxu1 %v7085_v26  ;;  %3316 = vmatprep.subr.mxu0 %v7086_v10  ;;  %v7097_v10 = vld [vmem:[#allocation34_spill] sm:$0xff] }
 0xb7d   :  { %3246 = vmatpush1.msra.mxu1 %v7087_v24  ;;  %3317 = vmatpush1.msra.mxu0 %v7088_v27  ;;  %v7098_v27 = vld [vmem:[#allocation37_spill] sm:$0xff] }
 0xb7e   :  { %3247 = vmatprep.subr.mxu1 %v7089_v44  ;;  %3318 = vmatprep.subr.mxu0 %v7090_v54  ;;  %v7099_v44 = vld [vmem:[#allocation38_spill] sm:$0xff] }
 0xb7f   :  { %3248 = vmatpush1.msra.mxu1 %v7091_v13  ;;  %3319 = vmatpush1.msra.mxu0 %v7092_v55 }
 0xb80   :  { %3249 = vmatprep.subr.mxu1 %v7093_v21  ;;  %3320 = vmatprep.subr.mxu0 %v7094_v58 }
 0xb81   :  { %3250 = vmatpush1.msra.mxu1 %v7095_v19  ;;  %3283 = vmatprep.mubr.f32.mxu1 %v7096_v20 }
 0xb82   :  { %3321 = vmatpush1.msra.mxu0 %v7097_v10  ;;  %3354 = vmatprep.mubr.f32.mxu0 %v7096_v20  ;;  %v3013_v10 = vld [vmem:[#allocation2 + $0x22] ss:$8 sm:$0xf] }
 0xb83   :  { %3424 = vmatprep.subr.mxu1 %v7098_v27  ;;  %3495 = vmatprep.subr.mxu0 %v7099_v44 }
 0xc22   :  { %v3080_v54 = vpop.f32.mrf.mxu1  ;;  %v3151_v13 = vpop.f32.mrf.mxu0 }
 0xc24   :  { %v3082_v24 = vpop.f32.mrf.mxu1  ;;  %v3153_v55 = vpop.f32.mrf.mxu0 }
 0xc25   :  { %v3160_v26 = vcombine.low %v3080_v54, %v3082_v24  ;;  %v3161_v21 = vcombine.low %v3151_v13, %v3153_v55 }
 0xc27   :  { %v3168_v58 = vrot.slane %v3160_v26, %v5456_v33  ;;  %v3175_v19 = vrot.slane %v3161_v21, %v5456_v33 }
 0xc29   :  { %v3176_v37 = vcombine.low %v3168_v58, %v3175_v19  ;;  %v7103_v58 = vld [vmem:[#allocation17_spill] sm:$0xff]  ;;  %v7104_v19 = vld [vmem:[#allocation20_spill] sm:$0xff] }
 0xc2b   :  { %v3183_v53 = vrot.slane %v3176_v37, %v5456_v33 }
 0xc2d   :  { %v3185_v30 = vadd.f32 %v3183_v53, %v3013_v10 }
 0xc2f   :  { %v4400_v20 = vmul.f32 -1.442695, %v3185_v30  ;;  %v3193_v25 = vrot.slane %v3185_v30, 1  ;;  %v3204_v44 = vrot.slane %v3185_v30, 3  ;;  %v3201_v41 = vrot.slane %v3185_v30, 2 }
 0xc31   :  { %4644 = vpow2.f32 %v4400_v20  ;;  %v4401_v27 = vmul.f32 -1.442695, %v3193_v25  ;;  %v4402_v22 = vmul.f32 -1.442695, %v3204_v44  ;;  %v7102_v44 = vld [vmem:[#allocation16_spill] sm:$0xff]  ;;  %v7105_v20 = vld [vmem:[#allocation21_spill] sm:$0xff] }
 0xc33   :  { %4646 = vpow2.f32 %v4401_v27 }
 0xc34   :  { %4648 = vpow2.f32 %v4402_v22 }
 0xc3e   :  { %v4645_v18 = vpop.eup %4644 }
 0xc3f   :  { %v3189_v24 = vadd.f32 1.0, %v4645_v18 }
 0xc40   :  { %v4647_v54 = vpop.eup %4646 }
 0xc41   :  { %4650 = vrcp.f32 %v3189_v24  ;;  %v3198_v26 = vadd.f32 1.0, %v4647_v54  ;;  %v4649_v13 = vpop.eup %4648  ;;  %v7106_v24 = vld [vmem:[#allocation22_spill] sm:$0xff]  ;;  %v7107_v54 = vld [vmem:[#allocation23_spill] sm:$0xff] }
 0xc42   :  { %4652 = vtanh.f32 %v3201_v41  ;;  %v3209_v10 = vadd.f32 1.0, %v4649_v13  ;;  %v7101_v41 = vld [vmem:[#allocation19_spill] sm:$0xff]  ;;  %v7109_v13 = vld [vmem:[#allocation25_spill] sm:$0xff] }
 0xc43   :  { %4654 = vrcp.f32 %v3198_v26  ;;  %v7108_v26 = vld [vmem:[#allocation24_spill] sm:$0xff] }
 0xc44   :  { %4656 = vrcp.f32 %v3209_v10  ;;  %v7113_v10 = vld [vmem:[#allocation29_spill] sm:$0xff] }
 0xc4e   :  { %v4651_v37 = vpop.eup %4650 }
 0xc4f   :  { %v4653_v55 = vpop.eup %4652 }
 0xc50   :  { %v4655_v53 = vpop.eup %4654  ;;  %v3213_v25 = vmul.f32 %v4653_v55, %v4651_v37  ;;  %v7110_v37 = vld [vmem:[#allocation26_spill] sm:$0xff]  ;;  %v7111_v55 = vld [vmem:[#allocation27_spill] sm:$0xff] }
 0xc51   :  { %v3212_v21 = vmul.f32 %v4655_v53, %v6374_v57  ;;  %v4657_v18 = vpop.eup %4656  ;;  %v7100_v57 = vld [vmem:[#allocation18_spill] sm:$0xff]  ;;  %v7112_v53 = vld [vmem:[#allocation28_spill] sm:$0xff] }
 0xc53   :  { %v6447_v27 = vadd.f32 %v3213_v25, %v3212_v21  ;;  %v7114_v21 = vld [vmem:[#allocation30_spill] sm:$0xff]  ;;  %v7115_v25 = vld [vmem:[#allocation31_spill] sm:$0xff] }
 0xc55   :  { %4658 = vtanh.f32 %v6447_v27 }
 0xc62   :  { %v4659_v30 = vpop.eup %4658 }
 0xc63   :  { %v3216_v22 = vmul.f32 %v4659_v30, %v4657_v18  ;;  %v7116_v18 = vld [vmem:[#allocation32_spill] sm:$0xff]  ;;  %v7117_v30 = vld [vmem:[#allocation33_spill] sm:$0xff] }
 0xc65   :  { %3284 = vmatmul.mubr.f32.vlgmr.msra.gmra.mxu1 %v3216_v22  ;;  %3355 = vmatmul.mubr.f32.vlgmr.msra.gmra.mxu0 %v3216_v22  ;;  %v7118_v22 = vmov 0.0  }
 0xc66   :  { %3425 = vmatpush1.msra.mxu1 %v6180_v50  ;;  %3496 = vmatpush1.msra.mxu0 %v6183_v32 }
 0xc67   :  { %3426 = vmatprep.subr.mxu1 %v6186_v4  ;;  %3497 = vmatprep.subr.mxu0 %v6189_v23 }
 0xc68   :  { %3427 = vmatpush1.msra.mxu1 %v6192_v31  ;;  %3498 = vmatpush1.msra.mxu0 %v6195_v2 }
 0xc69   :  { %3428 = vmatprep.subr.mxu1 %v6198_v35  ;;  %3499 = vmatprep.subr.mxu0 %v6201_v63 }
 0xc6a   :  { %3429 = vmatpush1.msra.mxu1 %v6204_v38  ;;  %3500 = vmatpush1.msra.mxu0 %v6207_v36 }
 0xc6b   :  { %3430 = vmatprep.subr.mxu1 %v6210_v3  ;;  %3501 = vmatprep.subr.mxu0 %v6213_v28 }
 0xc6c   :  { %3431 = vmatpush1.msra.mxu1 %v6216_v47  ;;  %3502 = vmatpush1.msra.mxu0 %v6219_v0 }
 0xc6d   :  { %3432 = vmatprep.subr.mxu1 %v6222_v29  ;;  %3503 = vmatprep.subr.mxu0 %v6225_v34 }
 0xc6e   :  { %3433 = vmatpush1.msra.mxu1 %v6228_v39  ;;  %3504 = vmatpush1.msra.mxu0 %v6231_v40 }
 0xc6f   :  { %3434 = vmatprep.subr.mxu1 %v6234_v42  ;;  %3505 = vmatprep.subr.mxu0 %v6237_v43 }
 0xc70   :  { %3435 = vmatpush1.msra.mxu1 %v6240_v45  ;;  %3506 = vmatpush1.msra.mxu0 %v6243_v46 }
 0xc71   :  { %3436 = vmatprep.subr.mxu1 %v6246_v48  ;;  %3507 = vmatprep.subr.mxu0 %v6249_v49 }
 0xc72   :  { %3437 = vmatpush1.msra.mxu1 %v6252_v51  ;;  %3508 = vmatpush1.msra.mxu0 %v6255_v52 }
 0xc73   :  { %3438 = vmatprep.subr.mxu1 %v6258_v56  ;;  %3509 = vmatprep.subr.mxu0 %v6261_v59 }
 0xc74   :  { %3439 = vmatpush1.msra.mxu1 %v6264_v60  ;;  %3510 = vmatpush1.msra.mxu0 %v6267_v61 }
 0xc75   :  { %3440 = vmatprep.subr.mxu1 %v6270_v62  ;;  %3511 = vmatprep.subr.mxu0 %v6273_v1 }
 0xc76   :  { %3441 = vmatpush1.msra.mxu1 %v6276_v5  ;;  %3512 = vmatpush1.msra.mxu0 %v6279_v6 }
 0xc77   :  { %3442 = vmatprep.subr.mxu1 %v6282_v7  ;;  %3513 = vmatprep.subr.mxu0 %v6285_v8 }
 0xc78   :  { %3443 = vmatpush1.msra.mxu1 %v6288_v9  ;;  %3514 = vmatpush1.msra.mxu0 %v6291_v11 }
 0xc79   :  { %3444 = vmatprep.subr.mxu1 %v6294_v12  ;;  %3515 = vmatprep.subr.mxu0 %v6297_v14 }
 0xc7a   :  { %3445 = vmatpush1.msra.mxu1 %v6300_v15  ;;  %3516 = vmatpush1.msra.mxu0 %v6303_v16 }
 0xc7b   :  { %3446 = vmatprep.subr.mxu1 %v6306_v17  ;;  %3517 = vmatprep.subr.mxu0 %v7100_v57 }
 0xc7c   :  { %3447 = vmatpush1.msra.mxu1 %v7101_v41  ;;  %3518 = vmatpush1.msra.mxu0 %v7102_v44 }
 0xc7d   :  { %3448 = vmatprep.subr.mxu1 %v7103_v58  ;;  %3519 = vmatprep.subr.mxu0 %v7104_v19 }
 0xc7e   :  { %3449 = vmatpush1.msra.mxu1 %v7105_v20  ;;  %3520 = vmatpush1.msra.mxu0 %v7106_v24 }
 0xc7f   :  { %3450 = vmatprep.subr.mxu1 %v7107_v54  ;;  %3521 = vmatprep.subr.mxu0 %v7108_v26  ;;  %v7119_v26 = vld [vmem:[#allocation34_spill] sm:$0xff] }
 0xc80   :  { %3451 = vmatpush1.msra.mxu1 %v7109_v13  ;;  %3522 = vmatpush1.msra.mxu0 %v7110_v37  ;;  %v7120_v37 = vld [vmem:[#allocation37_spill] sm:$0xff] }
 0xc81   :  { %3452 = vmatprep.subr.mxu1 %v7111_v55  ;;  %3523 = vmatprep.subr.mxu0 %v7112_v53  ;;  %v7121_v55 = vld [vmem:[#allocation38_spill] sm:$0xff] }
 0xc82   :  { %3453 = vmatpush1.msra.mxu1 %v7113_v10  ;;  %3524 = vmatpush1.msra.mxu0 %v7114_v21 }
 0xc83   :  { %3454 = vmatprep.subr.mxu1 %v7115_v25  ;;  %3525 = vmatprep.subr.mxu0 %v7116_v18 }
 0xc84   :  { %3455 = vmatpush1.msra.mxu1 %v7117_v30  ;;  %3488 = vmatprep.mubr.f32.mxu1 %v7118_v22 }
 0xc85   :  { %3526 = vmatpush1.msra.mxu0 %v7119_v26  ;;  %3559 = vmatprep.mubr.f32.mxu0 %v7118_v22  ;;  %v3218_v26 = vld [vmem:[#allocation2 + $0x23] ss:$8 sm:$0xf] }
 0xc86   :  { %3629 = vmatprep.subr.mxu1 %v7120_v37  ;;  %3700 = vmatprep.subr.mxu0 %v7121_v55 }
 0xd25   :  { %v3285_v53 = vpop.f32.mrf.mxu1  ;;  %v3356_v10 = vpop.f32.mrf.mxu0 }
 0xd27   :  { %v3287_v13 = vpop.f32.mrf.mxu1  ;;  %v3358_v21 = vpop.f32.mrf.mxu0 }
 0xd28   :  { %v3365_v54 = vcombine.low %v3285_v53, %v3287_v13  ;;  %v3366_v25 = vcombine.low %v3356_v10, %v3358_v21 }
 0xd2a   :  { %v3373_v18 = vrot.slane %v3365_v54, %v5456_v33  ;;  %v3380_v30 = vrot.slane %v3366_v25, %v5456_v33 }
 0xd2c   :  { %v3381_v24 = vcombine.low %v3373_v18, %v3380_v30  ;;  %v7125_v18 = vld [vmem:[#allocation17_spill] sm:$0xff]  ;;  %v7126_v30 = vld [vmem:[#allocation20_spill] sm:$0xff] }
 0xd2e   :  { %v3388_v20 = vrot.slane %v3381_v24, %v5456_v33 }
 0xd30   :  { %v3390_v19 = vadd.f32 %v3388_v20, %v3218_v26 }
 0xd32   :  { %v4403_v22 = vmul.f32 -1.442695, %v3390_v19  ;;  %v3398_v58 = vrot.slane %v3390_v19, 1  ;;  %v3409_v55 = vrot.slane %v3390_v19, 3  ;;  %v3406_v57 = vrot.slane %v3390_v19, 2 }
 0xd34   :  { %4660 = vpow2.f32 %v4403_v22  ;;  %v4404_v37 = vmul.f32 -1.442695, %v3398_v58  ;;  %v4405_v44 = vmul.f32 -1.442695, %v3409_v55  ;;  %v7124_v55 = vld [vmem:[#allocation16_spill] sm:$0xff]  ;;  %v7127_v22 = vld [vmem:[#allocation21_spill] sm:$0xff] }
 0xd36   :  { %4662 = vpow2.f32 %v4404_v37 }
 0xd37   :  { %4664 = vpow2.f32 %v4405_v44 }
 0xd41   :  { %v4661_v41 = vpop.eup %4660 }
 0xd42   :  { %v3394_v13 = vadd.f32 1.0, %v4661_v41 }
 0xd43   :  { %v4663_v53 = vpop.eup %4662 }
 0xd44   :  { %4666 = vrcp.f32 %v3394_v13  ;;  %v3403_v54 = vadd.f32 1.0, %v4663_v53  ;;  %v4665_v10 = vpop.eup %4664  ;;  %v7128_v13 = vld [vmem:[#allocation22_spill] sm:$0xff]  ;;  %v7129_v53 = vld [vmem:[#allocation23_spill] sm:$0xff] }
 0xd45   :  { %4668 = vtanh.f32 %v3406_v57  ;;  %v3414_v26 = vadd.f32 1.0, %v4665_v10  ;;  %v7123_v57 = vld [vmem:[#allocation19_spill] sm:$0xff]  ;;  %v7131_v10 = vld [vmem:[#allocation25_spill] sm:$0xff] }
 0xd46   :  { %4670 = vrcp.f32 %v3403_v54  ;;  %v7130_v54 = vld [vmem:[#allocation24_spill] sm:$0xff] }
 0xd47   :  { %4672 = vrcp.f32 %v3414_v26  ;;  %v7135_v26 = vld [vmem:[#allocation29_spill] sm:$0xff] }
 0xd51   :  { %v4667_v24 = vpop.eup %4666 }
 0xd52   :  { %v4669_v21 = vpop.eup %4668 }
 0xd53   :  { %v4671_v20 = vpop.eup %4670  ;;  %v3418_v58 = vmul.f32 %v4669_v21, %v4667_v24  ;;  %v7132_v24 = vld [vmem:[#allocation26_spill] sm:$0xff]  ;;  %v7133_v21 = vld [vmem:[#allocation27_spill] sm:$0xff] }
 0xd54   :  { %v3417_v25 = vmul.f32 %v4671_v20, %v6447_v27  ;;  %v4673_v41 = vpop.eup %4672  ;;  %v7122_v27 = vld [vmem:[#allocation18_spill] sm:$0xff]  ;;  %v7134_v20 = vld [vmem:[#allocation28_spill] sm:$0xff] }
 0xd56   :  { %v6520_v37 = vadd.f32 %v3418_v58, %v3417_v25  ;;  %v7136_v25 = vld [vmem:[#allocation30_spill] sm:$0xff]  ;;  %v7137_v58 = vld [vmem:[#allocation31_spill] sm:$0xff] }
 0xd58   :  { %4674 = vtanh.f32 %v6520_v37 }
 0xd65   :  { %v4675_v19 = vpop.eup %4674 }
 0xd66   :  { %v3421_v44 = vmul.f32 %v4675_v19, %v4673_v41  ;;  %v7138_v41 = vld [vmem:[#allocation32_spill] sm:$0xff]  ;;  %v7139_v19 = vld [vmem:[#allocation33_spill] sm:$0xff] }
 0xd68   :  { %3489 = vmatmul.mubr.f32.vlgmr.msra.gmra.mxu1 %v3421_v44  ;;  %3560 = vmatmul.mubr.f32.vlgmr.msra.gmra.mxu0 %v3421_v44  ;;  %v7140_v44 = vmov 0.0  }
 0xd69   :  { %3630 = vmatpush1.msra.mxu1 %v6180_v50  ;;  %3701 = vmatpush1.msra.mxu0 %v6183_v32 }
 0xd6a   :  { %3631 = vmatprep.subr.mxu1 %v6186_v4  ;;  %3702 = vmatprep.subr.mxu0 %v6189_v23 }
 0xd6b   :  { %3632 = vmatpush1.msra.mxu1 %v6192_v31  ;;  %3703 = vmatpush1.msra.mxu0 %v6195_v2 }
 0xd6c   :  { %3633 = vmatprep.subr.mxu1 %v6198_v35  ;;  %3704 = vmatprep.subr.mxu0 %v6201_v63 }
 0xd6d   :  { %3634 = vmatpush1.msra.mxu1 %v6204_v38  ;;  %3705 = vmatpush1.msra.mxu0 %v6207_v36 }
 0xd6e   :  { %3635 = vmatprep.subr.mxu1 %v6210_v3  ;;  %3706 = vmatprep.subr.mxu0 %v6213_v28 }
 0xd6f   :  { %3636 = vmatpush1.msra.mxu1 %v6216_v47  ;;  %3707 = vmatpush1.msra.mxu0 %v6219_v0 }
 0xd70   :  { %3637 = vmatprep.subr.mxu1 %v6222_v29  ;;  %3708 = vmatprep.subr.mxu0 %v6225_v34 }
 0xd71   :  { %3638 = vmatpush1.msra.mxu1 %v6228_v39  ;;  %3709 = vmatpush1.msra.mxu0 %v6231_v40 }
 0xd72   :  { %3639 = vmatprep.subr.mxu1 %v6234_v42  ;;  %3710 = vmatprep.subr.mxu0 %v6237_v43 }
 0xd73   :  { %3640 = vmatpush1.msra.mxu1 %v6240_v45  ;;  %3711 = vmatpush1.msra.mxu0 %v6243_v46 }
 0xd74   :  { %3641 = vmatprep.subr.mxu1 %v6246_v48  ;;  %3712 = vmatprep.subr.mxu0 %v6249_v49 }
 0xd75   :  { %3642 = vmatpush1.msra.mxu1 %v6252_v51  ;;  %3713 = vmatpush1.msra.mxu0 %v6255_v52 }
 0xd76   :  { %3643 = vmatprep.subr.mxu1 %v6258_v56  ;;  %3714 = vmatprep.subr.mxu0 %v6261_v59 }
 0xd77   :  { %3644 = vmatpush1.msra.mxu1 %v6264_v60  ;;  %3715 = vmatpush1.msra.mxu0 %v6267_v61 }
 0xd78   :  { %3645 = vmatprep.subr.mxu1 %v6270_v62  ;;  %3716 = vmatprep.subr.mxu0 %v6273_v1 }
 0xd79   :  { %3646 = vmatpush1.msra.mxu1 %v6276_v5  ;;  %3717 = vmatpush1.msra.mxu0 %v6279_v6 }
 0xd7a   :  { %3647 = vmatprep.subr.mxu1 %v6282_v7  ;;  %3718 = vmatprep.subr.mxu0 %v6285_v8 }
 0xd7b   :  { %3648 = vmatpush1.msra.mxu1 %v6288_v9  ;;  %3719 = vmatpush1.msra.mxu0 %v6291_v11 }
 0xd7c   :  { %3649 = vmatprep.subr.mxu1 %v6294_v12  ;;  %3720 = vmatprep.subr.mxu0 %v6297_v14 }
 0xd7d   :  { %3650 = vmatpush1.msra.mxu1 %v6300_v15  ;;  %3721 = vmatpush1.msra.mxu0 %v6303_v16 }
 0xd7e   :  { %3651 = vmatprep.subr.mxu1 %v6306_v17  ;;  %3722 = vmatprep.subr.mxu0 %v7122_v27 }
 0xd7f   :  { %3652 = vmatpush1.msra.mxu1 %v7123_v57  ;;  %3723 = vmatpush1.msra.mxu0 %v7124_v55 }
 0xd80   :  { %3653 = vmatprep.subr.mxu1 %v7125_v18  ;;  %3724 = vmatprep.subr.mxu0 %v7126_v30 }
 0xd81   :  { %3654 = vmatpush1.msra.mxu1 %v7127_v22  ;;  %3725 = vmatpush1.msra.mxu0 %v7128_v13 }
 0xd82   :  { %3655 = vmatprep.subr.mxu1 %v7129_v53  ;;  %3726 = vmatprep.subr.mxu0 %v7130_v54  ;;  %v7141_v54 = vld [vmem:[#allocation34_spill] sm:$0xff] }
 0xd83   :  { %3656 = vmatpush1.msra.mxu1 %v7131_v10  ;;  %3727 = vmatpush1.msra.mxu0 %v7132_v24  ;;  %v7142_v24 = vld [vmem:[#allocation37_spill] sm:$0xff] }
 0xd84   :  { %3657 = vmatprep.subr.mxu1 %v7133_v21  ;;  %3728 = vmatprep.subr.mxu0 %v7134_v20  ;;  %v7143_v21 = vld [vmem:[#allocation38_spill] sm:$0xff] }
 0xd85   :  { %3658 = vmatpush1.msra.mxu1 %v7135_v26  ;;  %3729 = vmatpush1.msra.mxu0 %v7136_v25 }
 0xd86   :  { %3659 = vmatprep.subr.mxu1 %v7137_v58  ;;  %3730 = vmatprep.subr.mxu0 %v7138_v41 }
 0xd87   :  { %3660 = vmatpush1.msra.mxu1 %v7139_v19  ;;  %3693 = vmatprep.mubr.f32.mxu1 %v7140_v44 }
 0xd88   :  { %3731 = vmatpush1.msra.mxu0 %v7141_v54  ;;  %3764 = vmatprep.mubr.f32.mxu0 %v7140_v44  ;;  %v3423_v54 = vld [vmem:[#allocation2 + $0x24] ss:$8 sm:$0xf] }
 0xd89   :  { %3834 = vmatprep.subr.mxu1 %v7142_v24  ;;  %3905 = vmatprep.subr.mxu0 %v7143_v21 }
 0xe28   :  { %v3490_v20 = vpop.f32.mrf.mxu1  ;;  %v3561_v26 = vpop.f32.mrf.mxu0 }
 0xe2a   :  { %v3492_v10 = vpop.f32.mrf.mxu1  ;;  %v3563_v25 = vpop.f32.mrf.mxu0 }
 0xe2b   :  { %v3570_v53 = vcombine.low %v3490_v20, %v3492_v10  ;;  %v3571_v58 = vcombine.low %v3561_v26, %v3563_v25 }
 0xe2d   :  { %v3578_v41 = vrot.slane %v3570_v53, %v5456_v33  ;;  %v3585_v19 = vrot.slane %v3571_v58, %v5456_v33 }
 0xe2f   :  { %v3586_v13 = vcombine.low %v3578_v41, %v3585_v19 }
 0xe31   :  { %v3593_v22 = vrot.slane %v3586_v13, %v5456_v33 }
 0xe33   :  { %v3595_v30 = vadd.f32 %v3593_v22, %v3423_v54 }
 0xe35   :  { %v4406_v44 = vmul.f32 -1.442695, %v3595_v30  ;;  %v3603_v18 = vrot.slane %v3595_v30, 1  ;;  %v3614_v21 = vrot.slane %v3595_v30, 3  ;;  %v3611_v27 = vrot.slane %v3595_v30, 2 }
 0xe37   :  { %4676 = vpow2.f32 %v4406_v44  ;;  %v4407_v24 = vmul.f32 -1.442695, %v3603_v18  ;;  %v4408_v55 = vmul.f32 -1.442695, %v3614_v21 }
 0xe39   :  { %4678 = vpow2.f32 %v4407_v24 }
 0xe3a   :  { %4680 = vpow2.f32 %v4408_v55 }
 0xe44   :  { %v4677_v57 = vpop.eup %4676 }
 0xe45   :  { %v3599_v10 = vadd.f32 1.0, %v4677_v57 }
 0xe46   :  { %v4679_v20 = vpop.eup %4678 }
 0xe47   :  { %4682 = vrcp.f32 %v3599_v10  ;;  %v3608_v53 = vadd.f32 1.0, %v4679_v20  ;;  %v4681_v26 = vpop.eup %4680 }
 0xe48   :  { %4684 = vtanh.f32 %v3611_v27  ;;  %v3619_v54 = vadd.f32 1.0, %v4681_v26 }
 0xe49   :  { %4686 = vrcp.f32 %v3608_v53 }
 0xe4a   :  { %4688 = vrcp.f32 %v3619_v54  ;;  %v4875_v54 = vld [vmem:[#allocation8 + $0x1f0] sm:$0xff] }
 0xe54   :  { %v4683_v13 = vpop.eup %4682 }
 0xe55   :  { %v4685_v25 = vpop.eup %4684 }
 0xe56   :  { %v4687_v22 = vpop.eup %4686  ;;  %v3623_v18 = vmul.f32 %v4685_v25, %v4683_v13 }
 0xe57   :  { %v3622_v58 = vmul.f32 %v4687_v22, %v6520_v37  ;;  %v4689_v57 = vpop.eup %4688  ;;  %v4874_v22 = vld [vmem:[#allocation8 + $0x1e0] sm:$0xff] }
 0xe59   :  { %v6593_v41 = vadd.f32 %v3623_v18, %v3622_v58  ;;  %v4876_v58 = vld [vmem:[#allocation8 + $0x1c8] sm:$0xff]  ;;  %v4877_v18 = vld [vmem:[#allocation8 + $0x1d8] sm:$0xff] }
 0xe5b   :  { %4690 = vtanh.f32 %v6593_v41 }
 0xe68   :  { %v4691_v30 = vpop.eup %4690 }
 0xe69   :  { %v3626_v55 = vmul.f32 %v4691_v30, %v4689_v57  ;;  %v4879_v57 = vld [vmem:[#allocation8 + $0x1d0] sm:$0xff]  ;;  %v4880_v30 = vld [vmem:[#allocation8 + $0x1a8] sm:$0xff] }
 0xe6b   :  { %3694 = vmatmul.mubr.f32.vlgmr.msra.gmra.mxu1 %v3626_v55  ;;  %3765 = vmatmul.mubr.f32.vlgmr.msra.gmra.mxu0 %v3626_v55  ;;  %v4881_v55 = vld [vmem:[#allocation8 + $0x1b8] sm:$0xff] }
 0xe6c   :  { %3835 = vmatpush1.msra.mxu1 %v6180_v50  ;;  %3906 = vmatpush1.msra.mxu0 %v6183_v32  ;;  %v7144_v50 = vld [vmem:[#allocation18_spill] sm:$0xff]  ;;  %v7145_v32 = vld [vmem:[#allocation19_spill] sm:$0xff] }
 0xe6d   :  { %3836 = vmatprep.subr.mxu1 %v6186_v4  ;;  %3907 = vmatprep.subr.mxu0 %v6189_v23  ;;  %v7146_v4 = vld [vmem:[#allocation16_spill] sm:$0xff]  ;;  %v7147_v23 = vld [vmem:[#allocation17_spill] sm:$0xff] }
 0xe6e   :  { %3837 = vmatpush1.msra.mxu1 %v6192_v31  ;;  %3908 = vmatpush1.msra.mxu0 %v6195_v2  ;;  %v7148_v31 = vld [vmem:[#allocation20_spill] sm:$0xff]  ;;  %v7149_v2 = vld [vmem:[#allocation21_spill] sm:$0xff] }
 0xe6f   :  { %3838 = vmatprep.subr.mxu1 %v6198_v35  ;;  %3909 = vmatprep.subr.mxu0 %v6201_v63  ;;  %v7150_v35 = vld [vmem:[#allocation22_spill] sm:$0xff]  ;;  %v7151_v63 = vld [vmem:[#allocation23_spill] sm:$0xff] }
 0xe70   :  { %3839 = vmatpush1.msra.mxu1 %v6204_v38  ;;  %3910 = vmatpush1.msra.mxu0 %v6207_v36  ;;  %v7152_v38 = vld [vmem:[#allocation24_spill] sm:$0xff]  ;;  %v7153_v36 = vld [vmem:[#allocation25_spill] sm:$0xff] }
 0xe71   :  { %3840 = vmatprep.subr.mxu1 %v6210_v3  ;;  %3911 = vmatprep.subr.mxu0 %v6213_v28  ;;  %v7154_v3 = vld [vmem:[#allocation26_spill] sm:$0xff]  ;;  %v7155_v28 = vld [vmem:[#allocation27_spill] sm:$0xff] }
 0xe72   :  { %3841 = vmatpush1.msra.mxu1 %v6216_v47  ;;  %3912 = vmatpush1.msra.mxu0 %v6219_v0  ;;  %v7156_v47 = vld [vmem:[#allocation28_spill] sm:$0xff]  ;;  %v7157_v0 = vld [vmem:[#allocation29_spill] sm:$0xff] }
 0xe73   :  { %3842 = vmatprep.subr.mxu1 %v6222_v29  ;;  %3913 = vmatprep.subr.mxu0 %v6225_v34  ;;  %v7158_v29 = vld [vmem:[#allocation30_spill] sm:$0xff]  ;;  %v7159_v34 = vld [vmem:[#allocation31_spill] sm:$0xff] }
 0xe74   :  { %3843 = vmatpush1.msra.mxu1 %v6228_v39  ;;  %3914 = vmatpush1.msra.mxu0 %v6231_v40  ;;  %v7160_v39 = vld [vmem:[#allocation32_spill] sm:$0xff]  ;;  %v7161_v40 = vld [vmem:[#allocation33_spill] sm:$0xff] }
 0xe75   :  { %3844 = vmatprep.subr.mxu1 %v6234_v42  ;;  %3915 = vmatprep.subr.mxu0 %v6237_v43  ;;  %v7162_v42 = vmov 0.0   ;;  %v7163_v43 = vld [vmem:[#allocation34_spill] sm:$0xff] }
 0xe76   :  { %3845 = vmatpush1.msra.mxu1 %v6240_v45  ;;  %3916 = vmatpush1.msra.mxu0 %v6243_v46  ;;  %v4872_v45 = vld [vmem:[#allocation8 + $0x1e8] sm:$0xff]  ;;  %v4873_v46 = vld [vmem:[#allocation8 + $0x1f8] sm:$0xff] }
 0xe77   :  { %3846 = vmatprep.subr.mxu1 %v6246_v48  ;;  %3917 = vmatprep.subr.mxu0 %v6249_v49 }
 0xe78   :  { %3847 = vmatpush1.msra.mxu1 %v6252_v51  ;;  %3918 = vmatpush1.msra.mxu0 %v6255_v52 }
 0xe79   :  { %3848 = vmatprep.subr.mxu1 %v6258_v56  ;;  %3919 = vmatprep.subr.mxu0 %v6261_v59 }
 0xe7a   :  { %3849 = vmatpush1.msra.mxu1 %v6264_v60  ;;  %3920 = vmatpush1.msra.mxu0 %v6267_v61 }
 0xe7b   :  { %3850 = vmatprep.subr.mxu1 %v6270_v62  ;;  %3921 = vmatprep.subr.mxu0 %v6273_v1 }
 0xe7c   :  { %3851 = vmatpush1.msra.mxu1 %v6276_v5  ;;  %3922 = vmatpush1.msra.mxu0 %v6279_v6  ;;  %v3628_v5 = vld [vmem:[#allocation2 + $0x25] ss:$8 sm:$0xf] }
 0xe7d   :  { %3852 = vmatprep.subr.mxu1 %v6282_v7  ;;  %3923 = vmatprep.subr.mxu0 %v6285_v8 }
 0xe7e   :  { %3853 = vmatpush1.msra.mxu1 %v6288_v9  ;;  %3924 = vmatpush1.msra.mxu0 %v6291_v11 }
 0xe7f   :  { %3854 = vmatprep.subr.mxu1 %v6294_v12  ;;  %3925 = vmatprep.subr.mxu0 %v6297_v14 }
 0xe80   :  { %3855 = vmatpush1.msra.mxu1 %v6300_v15  ;;  %3926 = vmatpush1.msra.mxu0 %v6303_v16 }
 0xe81   :  { %3856 = vmatprep.subr.mxu1 %v6306_v17  ;;  %3927 = vmatprep.subr.mxu0 %v7144_v50  ;;  %v4882_v50 = vld [vmem:[#allocation8 + $0x1a0] sm:$0xff] }
 0xe82   :  { %3857 = vmatpush1.msra.mxu1 %v7145_v32  ;;  %3928 = vmatpush1.msra.mxu0 %v7146_v4  ;;  %v4883_v32 = vld [vmem:[#allocation8 + $0x1b0] sm:$0xff]  ;;  %v4884_v4 = vld [vmem:[#allocation8 + $0x188] sm:$0xff] }
 0xe83   :  { %3858 = vmatprep.subr.mxu1 %v7147_v23  ;;  %3929 = vmatprep.subr.mxu0 %v7148_v31  ;;  %v4885_v23 = vld [vmem:[#allocation8 + $0x198] sm:$0xff]  ;;  %v4886_v31 = vld [vmem:[#allocation8 + $0x180] sm:$0xff] }
 0xe84   :  { %3859 = vmatpush1.msra.mxu1 %v7149_v2  ;;  %3930 = vmatpush1.msra.mxu0 %v7150_v35  ;;  %v4887_v2 = vld [vmem:[#allocation8 + $0x190] sm:$0xff]  ;;  %v4888_v35 = vld [vmem:[#allocation8 + $0x168] sm:$0xff] }
 0xe85   :  { %3860 = vmatprep.subr.mxu1 %v7151_v63  ;;  %3931 = vmatprep.subr.mxu0 %v7152_v38  ;;  %v4889_v63 = vld [vmem:[#allocation8 + $0x178] sm:$0xff]  ;;  %v4890_v38 = vld [vmem:[#allocation8 + $0x160] sm:$0xff] }
 0xe86   :  { %3861 = vmatpush1.msra.mxu1 %v7153_v36  ;;  %3932 = vmatpush1.msra.mxu0 %v7154_v3  ;;  %v4891_v36 = vld [vmem:[#allocation8 + $0x170] sm:$0xff]  ;;  %v4892_v3 = vld [vmem:[#allocation8 + $0x148] sm:$0xff] }
 0xe87   :  { %3862 = vmatprep.subr.mxu1 %v7155_v28  ;;  %3933 = vmatprep.subr.mxu0 %v7156_v47  ;;  %v4893_v28 = vld [vmem:[#allocation8 + $0x158] sm:$0xff]  ;;  %v4894_v47 = vld [vmem:[#allocation8 + $0x140] sm:$0xff] }
 0xe88   :  { %3863 = vmatpush1.msra.mxu1 %v7157_v0  ;;  %3934 = vmatpush1.msra.mxu0 %v7158_v29  ;;  %v4895_v0 = vld [vmem:[#allocation8 + $0x150] sm:$0xff]  ;;  %v4896_v29 = vld [vmem:[#allocation8 + $0x128] sm:$0xff] }
 0xe89   :  { %3864 = vmatprep.subr.mxu1 %v7159_v34  ;;  %3935 = vmatprep.subr.mxu0 %v7160_v39  ;;  %v4897_v34 = vld [vmem:[#allocation8 + $0x138] sm:$0xff]  ;;  %v4898_v39 = vld [vmem:[#allocation8 + $0x120] sm:$0xff] }
 0xe8a   :  { %3865 = vmatpush1.msra.mxu1 %v7161_v40  ;;  %3898 = vmatprep.mubr.f32.mxu1 %v7162_v42  ;;  %v4899_v40 = vld [vmem:[#allocation8 + $0x130] sm:$0xff] }
 0xe8b   :  { %3936 = vmatpush1.msra.mxu0 %v7163_v43  ;;  %3969 = vmatprep.mubr.f32.mxu0 %v7162_v42  ;;  %v4900_v43 = vld [vmem:[#allocation8 + $0x108] sm:$0xff] }
 0xe8c   :  { %4039 = vmatprep.subr.mxu1 %v4872_v45  ;;  %4110 = vmatprep.subr.mxu0 %v4873_v46  ;;  %v4901_v45 = vld [vmem:[#allocation8 + $0x118] sm:$0xff]  ;;  %v4902_v46 = vld [vmem:[#allocation8 + $0x100] sm:$0xff] }
 0xf2b   :  { %v3695_v48 = vpop.f32.mrf.mxu1  ;;  %v3766_v49 = vpop.f32.mrf.mxu0 }
 0xf2d   :  { %v3697_v51 = vpop.f32.mrf.mxu1  ;;  %v3768_v52 = vpop.f32.mrf.mxu0 }
 0xf2e   :  { %v3775_v56 = vcombine.low %v3695_v48, %v3697_v51  ;;  %v3776_v59 = vcombine.low %v3766_v49, %v3768_v52  ;;  %v4903_v48 = vld [vmem:[#allocation8 + $0x110] sm:$0xff]  ;;  %v4904_v49 = vld [vmem:[#allocation8 + $0xe8] sm:$0xff]  ;;  %v4905_v51 = vld [vmem:[#allocation8 + $0xf8] sm:$0xff] }
 0xf2f   :  { %v4906_v52 = vld [vmem:[#allocation8 + $0xe0] sm:$0xff] }
 0xf30   :  { %v3783_v60 = vrot.slane %v3775_v56, %v5456_v33  ;;  %v3790_v61 = vrot.slane %v3776_v59, %v5456_v33  ;;  %v4907_v56 = vld [vmem:[#allocation8 + $0xf0] sm:$0xff]  ;;  %v4908_v59 = vld [vmem:[#allocation8 + $0xc8] sm:$0xff] }
 0xf32   :  { %v3791_v62 = vcombine.low %v3783_v60, %v3790_v61  ;;  %v4909_v60 = vld [vmem:[#allocation8 + $0xd8] sm:$0xff]  ;;  %v4910_v61 = vld [vmem:[#allocation8 + $0xc0] sm:$0xff] }
 0xf34   :  { %v3798_v1 = vrot.slane %v3791_v62, %v5456_v33  ;;  %v4911_v62 = vld [vmem:[#allocation8 + $0xd0] sm:$0xff] }
 0xf36   :  { %v3800_v6 = vadd.f32 %v3798_v1, %v3628_v5  ;;  %v4912_v1 = vld [vmem:[#allocation8 + $0xa8] sm:$0xff]  ;;  %v4913_v5 = vld [vmem:[#allocation8 + $0xb8] sm:$0xff] }
 0xf38   :  { %v4409_v7 = vmul.f32 -1.442695, %v3800_v6  ;;  %v3808_v8 = vrot.slane %v3800_v6, 1  ;;  %v3819_v11 = vrot.slane %v3800_v6, 3  ;;  %v3816_v15 = vrot.slane %v3800_v6, 2  ;;  %v4914_v6 = vld [vmem:[#allocation8 + $0xa0] sm:$0xff] }
 0xf3a   :  { %4692 = vpow2.f32 %v4409_v7  ;;  %v4410_v9 = vmul.f32 -1.442695, %v3808_v8  ;;  %v4411_v12 = vmul.f32 -1.442695, %v3819_v11  ;;  %v4915_v7 = vld [vmem:[#allocation8 + $0xb0] sm:$0xff]  ;;  %v4916_v8 = vld [vmem:[#allocation8 + $0x88] sm:$0xff] }
 0xf3b   :  { %v4918_v11 = vld [vmem:[#allocation8 + $0x80] sm:$0xff] }
 0xf3c   :  { %4694 = vpow2.f32 %v4410_v9  ;;  %v4917_v9 = vld [vmem:[#allocation8 + $0x98] sm:$0xff] }
 0xf3d   :  { %4696 = vpow2.f32 %v4411_v12  ;;  %v4919_v12 = vld [vmem:[#allocation8 + $0x90] sm:$0xff] }
 0xf47   :  { %v4693_v14 = vpop.eup %4692 }
 0xf48   :  { %v3804_v16 = vadd.f32 1.0, %v4693_v14  ;;  %v4920_v14 = vld [vmem:[#allocation8 + $0x68] sm:$0xff] }
 0xf49   :  { %v4695_v17 = vpop.eup %4694 }
 0xf4a   :  { %4698 = vrcp.f32 %v3804_v16  ;;  %v3813_v37 = vadd.f32 1.0, %v4695_v17  ;;  %v4697_v27 = vpop.eup %4696  ;;  %v4922_v16 = vld [vmem:[#allocation8 + $0x60] sm:$0xff]  ;;  %v4923_v17 = vld [vmem:[#allocation8 + $0x70] sm:$0xff] }
 0xf4b   :  { %4700 = vtanh.f32 %v3816_v15  ;;  %v3824_v21 = vadd.f32 1.0, %v4697_v27  ;;  %v4921_v15 = vld [vmem:[#allocation8 + $0x78] sm:$0xff] }
 0xf4c   :  { %4702 = vrcp.f32 %v3813_v37  ;;  %v4924_v37 = vld [vmem:[#allocation8 + $0x48] sm:$0xff]  ;;  %v4925_v27 = vld [vmem:[#allocation8 + $0x58] sm:$0xff] }
 0xf4d   :  { %4704 = vrcp.f32 %v3824_v21  ;;  %v4929_v21 = vld [vmem:[#allocation8 + $0x38] sm:$0xff] }
 0xf57   :  { %v4699_v19 = vpop.eup %4698 }
 0xf58   :  { %v4701_v44 = vpop.eup %4700 }
 0xf59   :  { %v4703_v24 = vpop.eup %4702  ;;  %v3828_v20 = vmul.f32 %v4701_v44, %v4699_v19  ;;  %v4926_v19 = vld [vmem:[#allocation8 + $0x40] sm:$0xff]  ;;  %v4927_v44 = vld [vmem:[#allocation8 + $0x50] sm:$0xff] }
 0xf5a   :  { %v3827_v10 = vmul.f32 %v4703_v24, %v6593_v41  ;;  %v4705_v26 = vpop.eup %4704  ;;  %v4878_v41 = vld [vmem:[#allocation8 + $0x1c0] sm:$0xff]  ;;  %v4928_v24 = vld [vmem:[#allocation8 + $0x28] sm:$0xff] }
 0xf5c   :  { %v6664_v53 = vadd.f32 %v3828_v20, %v3827_v10  ;;  %v4930_v10 = vld [vmem:[#allocation8 + $0x20] sm:$0xff]  ;;  %v4931_v20 = vld [vmem:[#allocation8 + $0x30] sm:$0xff] }
 0xf5e   :  { %4706 = vtanh.f32 %v6664_v53 }
 0xf6b   :  { %v4707_v13 = vpop.eup %4706 }
 0xf6c   :  { %v3831_v25 = vmul.f32 %v4707_v13, %v4705_v26  ;;  %v4932_v26 = vld [vmem:[#allocation8 + $0x8] sm:$0xff]  ;;  %v4933_v13 = vld [vmem:[#allocation8 + $0x18] sm:$0xff] }
 0xf6e   :  { %3899 = vmatmul.mubr.f32.vlgmr.msra.gmra.mxu1 %v3831_v25  ;;  %3970 = vmatmul.mubr.f32.vlgmr.msra.gmra.mxu0 %v3831_v25  ;;  %v4934_v25 = vld [vmem:[#allocation8] sm:$0xff] }
 0xf6f   :  { %4040 = vmatpush1.msra.mxu1 %v4874_v22  ;;  %4111 = vmatpush1.msra.mxu0 %v4875_v54  ;;  %v4935_v22 = vld [vmem:[#allocation8 + $0x10] sm:$0xff] }
 0xf70   :  { %4041 = vmatprep.subr.mxu1 %v4876_v58  ;;  %4112 = vmatprep.subr.mxu0 %v4877_v18 }
 0xf71   :  { %4042 = vmatpush1.msra.mxu1 %v4878_v41  ;;  %4113 = vmatpush1.msra.mxu0 %v4879_v57 }
 0xf72   :  { %4043 = vmatprep.subr.mxu1 %v4880_v30  ;;  %4114 = vmatprep.subr.mxu0 %v4881_v55 }
 0xf73   :  { %4044 = vmatpush1.msra.mxu1 %v4882_v50  ;;  %4115 = vmatpush1.msra.mxu0 %v4883_v32 }
 0xf74   :  { %4045 = vmatprep.subr.mxu1 %v4884_v4  ;;  %4116 = vmatprep.subr.mxu0 %v4885_v23  ;;  %v3833_v23 = vld [vmem:[#allocation2 + $0x26] ss:$8 sm:$0xf] }
 0xf75   :  { %4046 = vmatpush1.msra.mxu1 %v4886_v31  ;;  %4117 = vmatpush1.msra.mxu0 %v4887_v2 }
 0xf76   :  { %4047 = vmatprep.subr.mxu1 %v4888_v35  ;;  %4118 = vmatprep.subr.mxu0 %v4889_v63 }
 0xf77   :  { %4048 = vmatpush1.msra.mxu1 %v4890_v38  ;;  %4119 = vmatpush1.msra.mxu0 %v4891_v36 }
 0xf78   :  { %4049 = vmatprep.subr.mxu1 %v4892_v3  ;;  %4120 = vmatprep.subr.mxu0 %v4893_v28 }
 0xf79   :  { %4050 = vmatpush1.msra.mxu1 %v4894_v47  ;;  %4121 = vmatpush1.msra.mxu0 %v4895_v0 }
 0xf7a   :  { %4051 = vmatprep.subr.mxu1 %v4896_v29  ;;  %4122 = vmatprep.subr.mxu0 %v4897_v34 }
 0xf7b   :  { %4052 = vmatpush1.msra.mxu1 %v4898_v39  ;;  %4123 = vmatpush1.msra.mxu0 %v4899_v40 }
 0xf7c   :  { %4053 = vmatprep.subr.mxu1 %v4900_v43  ;;  %4124 = vmatprep.subr.mxu0 %v4901_v45 }
 0xf7d   :  { %4054 = vmatpush1.msra.mxu1 %v4902_v46  ;;  %4125 = vmatpush1.msra.mxu0 %v4903_v48 }
 0xf7e   :  { %4055 = vmatprep.subr.mxu1 %v4904_v49  ;;  %4126 = vmatprep.subr.mxu0 %v4905_v51 }
 0xf7f   :  { %4056 = vmatpush1.msra.mxu1 %v4906_v52  ;;  %4127 = vmatpush1.msra.mxu0 %v4907_v56 }
 0xf80   :  { %4057 = vmatprep.subr.mxu1 %v4908_v59  ;;  %4128 = vmatprep.subr.mxu0 %v4909_v60  ;;  %v4257_v59 = vld [vmem:[#allocation9 + $0x78] sm:$0xff]  ;;  %v4256_v60 = vld [vmem:[#allocation9 + $0x70] sm:$0xff] }
 0xf81   :  { %4058 = vmatpush1.msra.mxu1 %v4910_v61  ;;  %4129 = vmatpush1.msra.mxu0 %v4911_v62  ;;  %v4254_v61 = vld [vmem:[#allocation9 + $0x60] sm:$0xff]  ;;  %v4253_v62 = vld [vmem:[#allocation9 + $0x58] sm:$0xff] }
 0xf82   :  { %4059 = vmatprep.subr.mxu1 %v4912_v1  ;;  %4130 = vmatprep.subr.mxu0 %v4913_v5  ;;  %v4252_v1 = vld [vmem:[#allocation9 + $0x50] sm:$0xff]  ;;  %v4251_v5 = vld [vmem:[#allocation9 + $0x48] sm:$0xff] }
 0xf83   :  { %4060 = vmatpush1.msra.mxu1 %v4914_v6  ;;  %4131 = vmatpush1.msra.mxu0 %v4915_v7  ;;  %v4250_v6 = vld [vmem:[#allocation9 + $0x40] sm:$0xff]  ;;  %v4249_v7 = vld [vmem:[#allocation9 + $0x38] sm:$0xff] }
 0xf84   :  { %4061 = vmatprep.subr.mxu1 %v4916_v8  ;;  %4132 = vmatprep.subr.mxu0 %v4917_v9  ;;  %v4248_v8 = vld [vmem:[#allocation9 + $0x30] sm:$0xff]  ;;  %v4247_v9 = vld [vmem:[#allocation9 + $0x28] sm:$0xff] }
 0xf85   :  { %4062 = vmatpush1.msra.mxu1 %v4918_v11  ;;  %4133 = vmatpush1.msra.mxu0 %v4919_v12  ;;  %v4246_v11 = vld [vmem:[#allocation9 + $0x20] sm:$0xff]  ;;  %v4245_v12 = vld [vmem:[#allocation9 + $0x18] sm:$0xff] }
 0xf86   :  { %4063 = vmatprep.subr.mxu1 %v4920_v14  ;;  %4134 = vmatprep.subr.mxu0 %v4921_v15  ;;  %v4244_v14 = vld [vmem:[#allocation9 + $0x10] sm:$0xff]  ;;  %v4243_v15 = vld [vmem:[#allocation9 + $0x8] sm:$0xff] }
 0xf87   :  { %4064 = vmatpush1.msra.mxu1 %v4922_v16  ;;  %4135 = vmatpush1.msra.mxu0 %v4923_v17  ;;  %v4242_v16 = vld [vmem:[#allocation9] sm:$0xff] }
 0xf88   :  { %4065 = vmatprep.subr.mxu1 %v4924_v37  ;;  %4136 = vmatprep.subr.mxu0 %v4925_v27 }
 0xf89   :  { %4066 = vmatpush1.msra.mxu1 %v4926_v19  ;;  %4137 = vmatpush1.msra.mxu0 %v4927_v44 }
 0xf8a   :  { %4067 = vmatprep.subr.mxu1 %v4928_v24  ;;  %4138 = vmatprep.subr.mxu0 %v4929_v21 }
 0xf8b   :  { %4068 = vmatpush1.msra.mxu1 %v4930_v10  ;;  %4139 = vmatpush1.msra.mxu0 %v4931_v20 }
 0xf8c   :  { %4069 = vmatprep.subr.mxu1 %v4932_v26  ;;  %4140 = vmatprep.subr.mxu0 %v4933_v13  ;;  %v4038_v13 = vld [vmem:[#allocation2 + $0x27] ss:$8 sm:$0xf] }
 0xf8d   :  { %4070 = vmatpush1.msra.mxu1 %v4934_v25  ;;  %4103 = vmatprep.mubr.f32.mxu1 %v7162_v42 }
 0xf8e   :  { %4141 = vmatpush1.msra.mxu0 %v4935_v22  ;;  %4174 = vmatprep.mubr.f32.mxu0 %v7162_v42 }
 0xf8f   :  { %4435 = vmatprep.subr.mxu1 %v7162_v42 }
0x102e   :  { %v3900_v54 = vpop.f32.mrf.mxu1  ;;  %v3971_v58 = vpop.f32.mrf.mxu0 }
0x1030   :  { %v3902_v18 = vpop.f32.mrf.mxu1  ;;  %v3973_v41 = vpop.f32.mrf.mxu0 }
0x1031   :  { %v3980_v57 = vcombine.low %v3900_v54, %v3902_v18  ;;  %v3981_v30 = vcombine.low %v3971_v58, %v3973_v41 }
0x1033   :  { %v3988_v55 = vrot.slane %v3980_v57, %v5456_v33  ;;  %v3995_v50 = vrot.slane %v3981_v30, %v5456_v33 }
0x1035   :  { %v3996_v32 = vcombine.low %v3988_v55, %v3995_v50 }
0x1037   :  { %v4003_v4 = vrot.slane %v3996_v32, %v5456_v33 }
0x1039   :  { %v4005_v31 = vadd.f32 %v4003_v4, %v3833_v23 }
0x103b   :  { %v4412_v2 = vmul.f32 -1.442695, %v4005_v31  ;;  %v4013_v35 = vrot.slane %v4005_v31, 1  ;;  %v4024_v38 = vrot.slane %v4005_v31, 3  ;;  %v4021_v28 = vrot.slane %v4005_v31, 2 }
0x103d   :  { %4708 = vpow2.f32 %v4412_v2  ;;  %v4413_v63 = vmul.f32 -1.442695, %v4013_v35  ;;  %v4414_v36 = vmul.f32 -1.442695, %v4024_v38 }
0x103f   :  { %4710 = vpow2.f32 %v4413_v63 }
0x1040   :  { %4712 = vpow2.f32 %v4414_v36 }
0x104a   :  { %v4709_v3 = vpop.eup %4708 }
0x104b   :  { %v4009_v47 = vadd.f32 1.0, %v4709_v3 }
0x104c   :  { %v4711_v0 = vpop.eup %4710 }
0x104d   :  { %4714 = vrcp.f32 %v4009_v47  ;;  %v4018_v29 = vadd.f32 1.0, %v4711_v0  ;;  %v4713_v34 = vpop.eup %4712 }
0x104e   :  { %4716 = vtanh.f32 %v4021_v28  ;;  %v4029_v45 = vadd.f32 1.0, %v4713_v34  ;;  %v4258_v28 = vld [vmem:[%s6710_s7] sm:$0x1]  ;;  %s5016_s7 = scalar_lea.vmem %s4350_s27, 16 }
0x104f   :  { %4718 = vrcp.f32 %v4018_v29  ;;  %p5017_p6 = scmp.ne.s32.totalorder %s4350_s27, %s5016_s7  ;;  %p5022_p8 = scmp.lt.s32.totalorder %s5020_s28, %s5016_s7 }
0x1050   :  { %4720 = vrcp.f32 %v4029_v45 }
0x1051   :  { %p5023_p9 = por %p5022_p8, %p5021_p7 }
0x1053   :  { %p5024_p10 = pnand %p5023_p9, %p5017_p6 }
0x105a   :  { %v4715_v39 = vpop.eup %4714 }
0x105b   :  { %v4717_v40 = vpop.eup %4716 }
0x105c   :  { %v4719_v43 = vpop.eup %4718  ;;  %v4033_v48 = vmul.f32 %v4717_v40, %v4715_v39 }
0x105d   :  { %v4032_v46 = vmul.f32 %v4719_v43, %v6664_v53  ;;  %v4721_v51 = vpop.eup %4720  ;;  %v4255_v53 = vld [vmem:[#allocation9 + $0x68] sm:$0xff] }
0x105f   :  { %v6674_v49 = vadd.f32 %v4033_v48, %v4032_v46 }
0x1061   :  { %4722 = vtanh.f32 %v6674_v49 }
0x106e   :  { %v4723_v52 = vpop.eup %4722 }
0x106f   :  { %v4036_v56 = vmul.f32 %v4723_v52, %v4721_v51 }
0x1071   :  { %4104 = vmatmul.mubr.f32.vlgmr.msra.gmra.mxu1 %v4036_v56  ;;  %4175 = vmatmul.mubr.f32.vlgmr.msra.gmra.mxu0 %v4036_v56 }
0x1072   :  { %4436 = vmatpush3.msra.mxu1 %v4257_v59  ;;  %4467 = vmatprep.mubr.msk.f32.mxu1 %vm5056_vm1, %v7162_v42 }
0x1073   :  { %4437 = vmatprep.subr.mxu1 %v7162_v42 }
0x1074   :  { %4438 = vmatpush3.msra.mxu1 %v4256_v60 }
0x1075   :  { %4439 = vmatprep.subr.mxu1 %v7162_v42 }
0x1076   :  { %4440 = vmatpush3.msra.mxu1 %v4255_v53 }
0x1077   :  { %4441 = vmatprep.subr.mxu1 %v7162_v42 }
0x1078   :  { %4442 = vmatpush3.msra.mxu1 %v4254_v61 }
0x1079   :  { %4443 = vmatprep.subr.mxu1 %v7162_v42 }
0x107a   :  { %4444 = vmatpush3.msra.mxu1 %v4253_v62 }
0x107b   :  { %4445 = vmatprep.subr.mxu1 %v7162_v42 }
0x107c   :  { %4446 = vmatpush3.msra.mxu1 %v4252_v1 }
0x107d   :  { %4447 = vmatprep.subr.mxu1 %v7162_v42 }
0x107e   :  { %4448 = vmatpush3.msra.mxu1 %v4251_v5 }
0x107f   :  { %4449 = vmatprep.subr.mxu1 %v7162_v42 }
0x1080   :  { %4450 = vmatpush3.msra.mxu1 %v4250_v6 }
0x1081   :  { %4451 = vmatprep.subr.mxu1 %v7162_v42 }
0x1082   :  { %4452 = vmatpush3.msra.mxu1 %v4249_v7 }
0x1083   :  { %4453 = vmatprep.subr.mxu1 %v7162_v42 }
0x1084   :  { %4454 = vmatpush3.msra.mxu1 %v4248_v8 }
0x1085   :  { %4455 = vmatprep.subr.mxu1 %v7162_v42 }
0x1086   :  { %4456 = vmatpush3.msra.mxu1 %v4247_v9 }
0x1087   :  { %4457 = vmatprep.subr.mxu1 %v7162_v42 }
0x1088   :  { %4458 = vmatpush3.msra.mxu1 %v4246_v11 }
0x1089   :  { %4459 = vmatprep.subr.mxu1 %v7162_v42 }
0x108a   :  { %4460 = vmatpush3.msra.mxu1 %v4245_v12 }
0x108b   :  { %4461 = vmatprep.subr.mxu1 %v7162_v42 }
0x108c   :  { %4462 = vmatpush3.msra.mxu1 %v4244_v14 }
0x108d   :  { %4463 = vmatprep.subr.mxu1 %v7162_v42 }
0x108e   :  { %4464 = vmatpush3.msra.mxu1 %v4243_v15 }
0x108f   :  { %4465 = vmatprep.subr.mxu1 %v7162_v42 }
0x1090   :  { %4466 = vmatpush3.msra.mxu1 %v4242_v16 }
0x1131   :  { %v4105_v17 = vpop.f32.mrf.mxu1  ;;  %v4176_v37 = vpop.f32.mrf.mxu0 }
0x1133   :  { %v4107_v27 = vpop.f32.mrf.mxu1  ;;  %v4178_v19 = vpop.f32.mrf.mxu0 }
0x1134   :  { %v4185_v44 = vcombine.low %v4105_v17, %v4107_v27  ;;  %v4186_v24 = vcombine.low %v4176_v37, %v4178_v19 }
0x1136   :  { %v4193_v21 = vrot.slane %v4185_v44, %v5456_v33  ;;  %v4200_v10 = vrot.slane %v4186_v24, %v5456_v33 }
0x1138   :  { %v4201_v20 = vcombine.low %v4193_v21, %v4200_v10 }
0x113a   :  { %v4208_v26 = vrot.slane %v4201_v20, %v5456_v33 }
0x113c   :  { %v4210_v25 = vadd.f32 %v4208_v26, %v4038_v13 }
0x113e   :  { %v4415_v22 = vmul.f32 -1.442695, %v4210_v25  ;;  %v4218_v54 = vrot.slane %v4210_v25, 1  ;;  %v4229_v58 = vrot.slane %v4210_v25, 3  ;;  %v4226_v57 = vrot.slane %v4210_v25, 2 }
0x1140   :  { %4724 = vpow2.f32 %v4415_v22  ;;  %v4416_v42 = vmul.f32 -1.442695, %v4218_v54  ;;  %v4417_v18 = vmul.f32 -1.442695, %v4229_v58 }
0x1142   :  { %4726 = vpow2.f32 %v4416_v42 }
0x1143   :  { %4728 = vpow2.f32 %v4417_v18 }
0x114d   :  { %v4725_v41 = vpop.eup %4724 }
0x114e   :  { %v4214_v30 = vadd.f32 1.0, %v4725_v41 }
0x114f   :  { %v4727_v55 = vpop.eup %4726 }
0x1150   :  { %4730 = vrcp.f32 %v4214_v30  ;;  %v4223_v50 = vadd.f32 1.0, %v4727_v55  ;;  %v4729_v32 = vpop.eup %4728 }
0x1151   :  { %4732 = vtanh.f32 %v4226_v57  ;;  %v4234_v31 = vadd.f32 1.0, %v4729_v32 }
0x1152   :  { %4734 = vrcp.f32 %v4223_v50 }
0x1153   :  { %4736 = vrcp.f32 %v4234_v31 }
0x115d   :  { %v4731_v33 = vpop.eup %4730 }
0x115e   :  { %v4733_v4 = vpop.eup %4732 }
0x115f   :  { %v4735_v23 = vpop.eup %4734  ;;  %v4238_v35 = vmul.f32 %v4733_v4, %v4731_v33 }
0x1160   :  { %v4237_v2 = vmul.f32 %v4735_v23, %v6674_v49  ;;  %v4737_v38 = vpop.eup %4736 }
0x1162   :  { %v4239_v63 = vadd.f32 %v4238_v35, %v4237_v2 }
0x1164   :  { %4738 = vtanh.f32 %v4239_v63 }
0x1171   :  { %v4739_v36 = vpop.eup %4738 }
0x1172   :  { %v4241_v3 = vmul.f32 %v4739_v36, %v4737_v38 }
0x1174   :  { %4468 = vmatmul.mubr.f32.vlgmr.msra.gmra.mxu1 %v4241_v3 }
0x1234   :  { %v4325_v47 = vpop.f32.mrf.mxu1 }
0x1235   :  { %v4326_v0 = vadd.f32 %v4325_v47, %v4258_v28 }
0x1236   :  { %v4469_v29 = vpop.f32.mrf.mxu1 }
0x1237   :  { %v4330_v34 = vsel %vm4329_vm2, %v4326_v0, -inf }
0x1238   :  { %4331 = vmax.xlane.f32.xlu0 %v4330_v34 }
0x12c1   :  { %v4332_v39 = vpop.xlane.xlu0 %4331 }
0x12c2   :  { %v4333_v40 = vsub.f32 %v4326_v0, %v4332_v39 }
0x12c4   :  { %v4334_v43 = vmul.f32 1.442695, %v4333_v40 }
0x12c6   :  { %4740 = vpow2.f32 %v4334_v43 }
0x12d3   :  { %v4741_v45 = vpop.eup %4740 }
0x12d4   :  { %v4336_v46 = vsel %vm4329_vm2, %v4741_v45, 0.0 }
0x12d5   :  { %4337 = vadd.xlane.f32.xlu0 %v4336_v46 }
0x135e   :  { %v4338_v48 = vpop.xlane.xlu0 %4337 }
0x135f   :  { %4742 = vlog2.f32 %v4338_v48 }
0x136c   :  { %v4743_v49 = vpop.eup %4742 }
0x136d   :  { %v4340_v51 = vmul.f32 0.6931472, %v4743_v49 }
0x136f   :  { %v4341_v52 = vsub.f32 %v4333_v40, %v4340_v51 }
0x1371   :  { %4342 = vst [vmem:[#allocation11] sm:$0x1] %v4341_v52 }
0x1372   :  { %5027 = shalt.err (!%p5024_p10)
}
0x1373   :  { %4352 = dma.vmem_to_hbm [thread:$0]  %s4350_s27, 16, %s6711_s8, [#allocation5]  }
0x1374   :  { %5042 = dma.done.wait [#allocation5], 16  }
0x1375   :  { %5043 = vsyncadd [#allocation5], 4294967280 }
0x1376   :  { %4356 = vsyncpa [#allocation4], 1 }
0x1377   :  { %4357 = vsyncpa [#allocation7], 1 }
0x1378   :  { %4358 = vsyncpa [#allocation10], 1 }
0x1379   :  { %4359 = vsyncpa [#allocation5], 1 }

</bundles_post_ra>
